<compile_context>
chip_gen: v7x
topology: tpu7x:2x2x1
jax: 0.10.0
libtpu: 0.0.40
codegen_flags: <defaults>
</compile_context>

<pallas_src>
import jax
import jax.numpy as jnp
from jax.experimental import pallas as pl
from jax.experimental.pallas import tpu as pltpu


def _gather_linear_stats_kernel(nodes_ref, nidx_ref,           # SMEM scalar prefetch
                                table_ref, invcnt_ref, w_ref,  # inputs
                                lin_ref, stats_ref,            # outputs
                                self_buf, neigh_buf, cat_buf, sem):  # scratch
    """Pass A: fused gather + neighbor mean + cat-matmul + per-tile BN partials."""
    i = pl.program_id(0)
    tn, e = self_buf.shape
    k_max = neigh_buf.shape[1]

    # ---- fused embedding gather: one row-DMA per (row, slot) from HBM -------
    @pl.loop(0, tn)
    def _(r):
        g = i * tn + r
        pltpu.make_async_copy(table_ref.at[nodes_ref[g]], self_buf.at[r],
                              sem).start()
        for k in range(k_max):                      # static unroll, K is small
            pltpu.make_async_copy(table_ref.at[nidx_ref[g * k_max + k]],
                                  neigh_buf.at[r, k], sem).start()

    # All row copies have identical byte size, so waiting once per issued copy
    # on the shared semaphore drains them all (wait tied to each dest buffer).
    @pl.loop(0, tn)
    def _(_):
        pltpu.make_async_copy(table_ref.at[0], self_buf.at[0], sem).wait()

    @pl.loop(0, tn * k_max)
    def _(_):
        pltpu.make_async_copy(table_ref.at[0], neigh_buf.at[0, 0], sem).wait()

    # ---- neighbor mean: padded slots were routed to the zero row, so this is
    # a plain sum times the precomputed exact reciprocal count (no mask mult) -
    acc = neigh_buf[:, 0, :]
    for k in range(1, k_max):
        acc = acc + neigh_buf[:, k, :]
    neigh_mean = acc * invcnt_ref[...]              # (TN, E) * (TN, 1)

    # ---- cat([self, neigh_mean]) as ONE bf16 MXU contraction of depth 2E ----
    cat_buf[:, :e] = self_buf[...].astype(jnp.bfloat16)
    cat_buf[:, e:] = neigh_mean.astype(jnp.bfloat16)
    lin = jnp.dot(cat_buf[...], w_ref[...], preferred_element_type=jnp.float32)
    lin_ref[...] = lin

    # ---- per-tile BatchNorm partial statistics (sum, sum of squares) --------
    s1 = jnp.sum(lin, axis=0, keepdims=True)            # (1, E)
    s2 = jnp.sum(lin * lin, axis=0, keepdims=True)      # (1, E)
    stats_ref[...] = jnp.concatenate([s1, s2], axis=0)[None]   # (1, 2, E)


def _bn_relu_kernel(lin_ref, scale_ref, shift_ref, out_ref):
    """Pass B: out = relu(lin * scale + shift) with global (combined) BN stats."""
    out_ref[...] = jnp.maximum(
        lin_ref[...] * scale_ref[...] + shift_ref[...], 0.0
    ).astype(out_ref.dtype)


def u_social_encoder_forward(nodes, neigh_idx, neigh_mask, features_table,
                             w_lin, bias, gamma, beta,
                             *, row_tile=128, eps=1e-5):
    """Forward of U_Social_Encoder.

    nodes:          (N,)    int32 node ids
    neigh_idx:      (N, K)  int32 padded neighbor ids
    neigh_mask:     (N, K)  f32   1.0 for valid neighbor slots
    features_table: (V, E)  f32   embedding table (self.features)
    w_lin:          (E, 2E) f32   linear1.weight (torch layout: out, in)
    bias:           (E,)    f32   linear1.bias -- cancels exactly under
                                  train-mode BatchNorm, so it is unused.
    gamma, beta:    (E,)    f32   BatchNorm1d affine parameters.
    """
    del bias  # +b cancels in (lin - mean(lin)); equality checked vs. reference.

    v, e = features_table.shape
    n = nodes.shape[0]
    k = neigh_idx.shape[1]
    tn = min(row_tile, n)
    assert n % tn == 0 and tn % 8 == 0, "batch must tile into multiples of 8"
    t = n // tn

    # --- host-side glue (index plumbing only, no big HBM intermediates) ------
    # Append an all-zero row; padded neighbor slots gather it -> masked sum for
    # free.  Exact reciprocal counts are precomputed (no in-kernel divide).
    table_pad = jnp.concatenate(
        [features_table.astype(jnp.float32), jnp.zeros((1, e), jnp.float32)], 0)
    nidx_safe = jnp.where(neigh_mask > 0, neigh_idx, v).astype(jnp.int32)
    nidx_flat = nidx_safe.reshape(-1)                 # 1-D -> tiny SMEM padding
    cnt = jnp.maximum(jnp.sum(neigh_mask, axis=1, keepdims=True), 1.0)
    inv_cnt = (1.0 / cnt).astype(jnp.float32)         # (N, 1)
    # cat([a, b]) @ W.T == [a b] @ W.T  -> single resident (2E, E) bf16 weight.
    w_cat = w_lin.T.astype(jnp.bfloat16)              # (2E, E)

    cparams = pltpu.CompilerParams(
        dimension_semantics=("parallel",),
        vmem_limit_bytes=32 * 1024 * 1024)

    cost_a = pl.CostEstimate(
        flops=2 * n * (2 * e) * e + n * k * e,
        transcendentals=0,
        bytes_accessed=(n * (k + 1) * e * 4 + n * e * 4 + 2 * e * e * 2
                        + t * 2 * e * 4 + n * 4 + n * k * 4))

    lin, stats = pl.pallas_call(
        _gather_linear_stats_kernel,
        out_shape=(jax.ShapeDtypeStruct((n, e), jnp.float32),
                   jax.ShapeDtypeStruct((t, 2, e), jnp.float32)),
        grid_spec=pltpu.PrefetchScalarGridSpec(
            num_scalar_prefetch=2,
            grid=(t,),
            in_specs=[
                pl.BlockSpec(memory_space=pl.ANY),                 # HBM table
                pl.BlockSpec((tn, 1), lambda i, *_: (i, 0)),       # 1/count
                pl.BlockSpec((2 * e, e), lambda i, *_: (0, 0)),    # resident W
            ],
            out_specs=[
                pl.BlockSpec((tn, e), lambda i, *_: (i, 0)),       # lin
                pl.BlockSpec((1, 2, e), lambda i, *_: (i, 0, 0)),  # partials
            ],
            scratch_shapes=[
                pltpu.VMEM((tn, e), jnp.float32),        # gathered self rows
                pltpu.VMEM((tn, k, e), jnp.float32),     # gathered neighbor rows
                pltpu.VMEM((tn, 2 * e), jnp.bfloat16),   # cat buffer (MXU input)
                pltpu.SemaphoreType.DMA(()),
            ]),
        compiler_params=cparams,
        cost_estimate=cost_a,
    )(nodes.astype(jnp.int32), nidx_flat, table_pad, inv_cnt, w_cat)

    # --- tiny global combine of per-tile partials (exact, O(T*E) work) -------
    mu = jnp.sum(stats[:, 0, :], axis=0) / n
    var = jnp.maximum(jnp.sum(stats[:, 1, :], axis=0) / n - mu * mu, 0.0)
    inv_std = jax.lax.rsqrt(var + eps)
    scale = (gamma.astype(jnp.float32) * inv_std).reshape(1, e)
    shift = (beta.astype(jnp.float32) - mu * gamma * inv_std).reshape(1, e)

    cost_b = pl.CostEstimate(flops=2 * n * e, transcendentals=0,
                             bytes_accessed=2 * n * e * 4 + 2 * e * 4)

    out = pl.pallas_call(
        _bn_relu_kernel,
        out_shape=jax.ShapeDtypeStruct((n, e), jnp.float32),
        grid_spec=pltpu.PrefetchScalarGridSpec(
            num_scalar_prefetch=0,
            grid=(t,),
            in_specs=[pl.BlockSpec((tn, e), lambda i: (i, 0)),
                      pl.BlockSpec((1, e), lambda i: (0, 0)),
                      pl.BlockSpec((1, e), lambda i: (0, 0))],
            out_specs=pl.BlockSpec((tn, e), lambda i: (i, 0))),
        compiler_params=cparams,
        cost_estimate=cost_b,
    )(lin, scale.astype(jnp.float32), shift.astype(jnp.float32))
    return out


def reference_forward(nodes, neigh_idx, neigh_mask, features_table,
                      w_lin, bias, gamma, beta, eps=1e-5):
    """Pure-JAX reference (train-mode BN).  It INCLUDES the linear bias that the
    kernel drops (it cancels in lin - mean(lin)); the matmul mirrors the
    kernel's bf16 operand precision with f32 accumulation."""
    self_f = features_table[nodes]                               # (N, E)
    neigh = features_table[neigh_idx] * neigh_mask[:, :, None]   # (N, K, E)
    cnt = jnp.maximum(jnp.sum(neigh_mask, axis=1, keepdims=True), 1.0)
    neigh_mean = jnp.sum(neigh, axis=1) / cnt
    cat = jnp.concatenate([self_f, neigh_mean], axis=1)
    lin = jnp.dot(cat.astype(jnp.bfloat16), w_lin.T.astype(jnp.bfloat16),
                  preferred_element_type=jnp.float32) + bias[None, :]
    mu = jnp.mean(lin, axis=0, keepdims=True)
    var = jnp.mean((lin - mu) ** 2, axis=0, keepdims=True)
    norm = (lin - mu) * jax.lax.rsqrt(var + eps)
    return jnp.maximum(norm * gamma[None, :] + beta[None, :], 0.0)


if __name__ == "__main__":
    key = jax.random.PRNGKey(0)
    k_feat, k_w, k_b, k_nodes, k_neigh, k_mask = jax.random.split(key, 6)

    num_nodes = 500      # embedding-table size (self.features)
    embed_dim = 128      # self.embed_dim (lane-dense; pad to 128 if smaller)
    N = 256              # len(nodes) -- batch of node ids (2 row tiles)
    K = 8                # max neighbors per node (padded + masked)

    features_table = jax.random.normal(k_feat, (num_nodes, embed_dim),
                                       dtype=jnp.float32)
    # nn.Linear(2E, E): torch weight shape (E, 2E); out = x @ W.T + b.
    w_lin = jax.random.normal(k_w, (embed_dim, 2 * embed_dim),
                              dtype=jnp.float32) * 0.1
    bias = jax.random.normal(k_b, (embed_dim,), dtype=jnp.float32) * 0.1
    gamma = jnp.ones((embed_dim,), jnp.float32)      # BatchNorm1d defaults
    beta = jnp.zeros((embed_dim,), jnp.float32)

    nodes = jax.random.randint(k_nodes, (N,), 0, num_nodes, dtype=jnp.int32)
    neigh_idx = jax.random.randint(k_neigh, (N, K), 0, num_nodes,
                                   dtype=jnp.int32)
    # TODO(synk): the per-node Python adjacency-list walk (social_adj_lists dict
    # + try/except [node] fallback) has no kernel equivalent; it is represented
    # as a padded (N, K) neighbor-index matrix with a validity mask (never empty).
    neigh_mask = (jax.random.uniform(k_mask, (N, K)) > 0.3).astype(jnp.float32)
    neigh_mask = neigh_mask.at[:, 0].set(1.0)

    out = u_social_encoder_forward(nodes, neigh_idx, neigh_mask,
                                   features_table, w_lin, bias, gamma, beta,
                                   row_tile=128)
    out = jax.block_until_ready(out)

    ref = reference_forward(nodes, neigh_idx, neigh_mask, features_table,
                            w_lin, bias, gamma, beta)
    assert out.shape == (N, embed_dim)
    assert jnp.allclose(out, ref, atol=2e-3, rtol=2e-3), float(
        jnp.max(jnp.abs(out - ref)))

    print("KERNEL_OK")
</pallas_src>

<mosaic_0001>
module attributes {stable_mosaic.version = 11 : i64} {
  func.func @_gather_linear_stats_kernel(%arg0: i32, %arg1: memref<256xi32, #tpu.memory_space<smem>>, %arg2: memref<2048xi32, #tpu.memory_space<smem>>, %arg3: memref<501x128xf32, #tpu.memory_space<any>>, %arg4: memref<128x1xf32, #tpu.memory_space<vmem>>, %arg5: memref<256x128xbf16, #tpu.memory_space<vmem>>, %arg6: memref<128x128xf32, #tpu.memory_space<vmem>>, %arg7: memref<1x2x128xf32, #tpu.memory_space<vmem>>, %arg8: memref<128x128xf32, #tpu.memory_space<vmem>>, %arg9: memref<128x8x128xf32, #tpu.memory_space<vmem>>, %arg10: memref<128x256xbf16, #tpu.memory_space<vmem>>, %arg11: memref<!tpu.dma_semaphore, #tpu.memory_space<semaphore_mem>>) attributes {dimension_semantics = [#tpu.dimension_semantics<parallel>], iteration_bounds = array<i64: 2>, scalar_prefetch = 2 : i64, scratch_operands = 4 : i64, tpu.core_type = #tpu.core_type<tc>, window_params = [{}, {transform_indices = @transform_1, window_bounds = array<i64: 128, 1>}, {pipeline_mode = #tpu.pipeline_mode<synchronous>, transform_indices = @transform_2, window_bounds = array<i64: 256, 128>}, {transform_indices = @transform_3, window_bounds = array<i64: 128, 128>}, {transform_indices = @transform_4, window_bounds = array<i64: 1, 2, 128>}]} {
    %c0_i32 = arith.constant 0 : i32
    %c128_i32 = arith.constant 128 : i32
    %0 = arith.addi %c0_i32, %c128_i32 : i32
    %c1_i32 = arith.constant 1 : i32
    scf.for %arg12 = %c0_i32 to %0 step %c1_i32  : i32 {
      %c1_i32_40 = arith.constant 1 : i32
      %46 = arith.muli %arg12, %c1_i32_40 : i32
      %c0_i32_41 = arith.constant 0 : i32
      %47 = arith.addi %c0_i32_41, %46 : i32
      %c128_i32_42 = arith.constant 128 : i32
      %48 = arith.muli %arg0, %c128_i32_42 : i32
      %49 = arith.addi %48, %47 : i32
      %50 = arith.index_cast %49 : i32 to index
      %51 = memref.load %arg1[%50] : memref<256xi32, #tpu.memory_space<smem>>
      %c0_i32_43 = arith.constant 0 : i32
      %52 = tpu.memref_slice %arg3[%51, %c0_i32_43] : memref<501x128xf32, #tpu.memory_space<any>> -> memref<1x128xf32, #tpu.memory_space<any>>
      %53 = tpu.memref_squeeze %52 : memref<1x128xf32, #tpu.memory_space<any>> -> memref<128xf32, #tpu.memory_space<any>>
      %c0_i32_44 = arith.constant 0 : i32
      %54 = tpu.memref_slice %arg8[%47, %c0_i32_44] : memref<128x128xf32, #tpu.memory_space<vmem>> -> memref<1x128xf32, #tpu.memory_space<vmem>>
      %55 = tpu.memref_squeeze %54 : memref<1x128xf32, #tpu.memory_space<vmem>> -> memref<128xf32, #tpu.memory_space<vmem>>
      tpu.enqueue_dma source(%53 : memref<128xf32, #tpu.memory_space<any>>) target(%55 : memref<128xf32, #tpu.memory_space<vmem>>) target_semaphore(%arg11 : memref<!tpu.dma_semaphore, #tpu.memory_space<semaphore_mem>>)
      %c8_i32 = arith.constant 8 : i32
      %56 = arith.muli %49, %c8_i32 : i32
      %c0_i32_45 = arith.constant 0 : i32
      %57 = arith.addi %56, %c0_i32_45 : i32
      %58 = arith.index_cast %57 : i32 to index
      %59 = memref.load %arg2[%58] : memref<2048xi32, #tpu.memory_space<smem>>
      %c0_i32_46 = arith.constant 0 : i32
      %c0_i32_47 = arith.constant 0 : i32
      %60 = tpu.memref_slice %arg3[%59, %c0_i32_47] : memref<501x128xf32, #tpu.memory_space<any>> -> memref<1x128xf32, #tpu.memory_space<any>>
      %61 = tpu.memref_squeeze %60 : memref<1x128xf32, #tpu.memory_space<any>> -> memref<128xf32, #tpu.memory_space<any>>
      %c0_i32_48 = arith.constant 0 : i32
      %62 = tpu.memref_slice %arg9[%47, %c0_i32_46, %c0_i32_48] : memref<128x8x128xf32, #tpu.memory_space<vmem>> -> memref<1x1x128xf32, #tpu.memory_space<vmem>>
      %63 = tpu.memref_squeeze %62 : memref<1x1x128xf32, #tpu.memory_space<vmem>> -> memref<128xf32, #tpu.memory_space<vmem>>
      tpu.enqueue_dma source(%61 : memref<128xf32, #tpu.memory_space<any>>) target(%63 : memref<128xf32, #tpu.memory_space<vmem>>) target_semaphore(%arg11 : memref<!tpu.dma_semaphore, #tpu.memory_space<semaphore_mem>>)
      %c8_i32_49 = arith.constant 8 : i32
      %64 = arith.muli %49, %c8_i32_49 : i32
      %c1_i32_50 = arith.constant 1 : i32
      %65 = arith.addi %64, %c1_i32_50 : i32
      %66 = arith.index_cast %65 : i32 to index
      %67 = memref.load %arg2[%66] : memref<2048xi32, #tpu.memory_space<smem>>
      %c1_i32_51 = arith.constant 1 : i32
      %c0_i32_52 = arith.constant 0 : i32
      %68 = tpu.memref_slice %arg3[%67, %c0_i32_52] : memref<501x128xf32, #tpu.memory_space<any>> -> memref<1x128xf32, #tpu.memory_space<any>>
      %69 = tpu.memref_squeeze %68 : memref<1x128xf32, #tpu.memory_space<any>> -> memref<128xf32, #tpu.memory_space<any>>
      %c0_i32_53 = arith.constant 0 : i32
      %70 = tpu.memref_slice %arg9[%47, %c1_i32_51, %c0_i32_53] : memref<128x8x128xf32, #tpu.memory_space<vmem>> -> memref<1x1x128xf32, #tpu.memory_space<vmem>>
      %71 = tpu.memref_squeeze %70 : memref<1x1x128xf32, #tpu.memory_space<vmem>> -> memref<128xf32, #tpu.memory_space<vmem>>
      tpu.enqueue_dma source(%69 : memref<128xf32, #tpu.memory_space<any>>) target(%71 : memref<128xf32, #tpu.memory_space<vmem>>) target_semaphore(%arg11 : memref<!tpu.dma_semaphore, #tpu.memory_space<semaphore_mem>>)
      %c8_i32_54 = arith.constant 8 : i32
      %72 = arith.muli %49, %c8_i32_54 : i32
      %c2_i32 = arith.constant 2 : i32
      %73 = arith.addi %72, %c2_i32 : i32
      %74 = arith.index_cast %73 : i32 to index
      %75 = memref.load %arg2[%74] : memref<2048xi32, #tpu.memory_space<smem>>
      %c2_i32_55 = arith.constant 2 : i32
      %c0_i32_56 = arith.constant 0 : i32
      %76 = tpu.memref_slice %arg3[%75, %c0_i32_56] : memref<501x128xf32, #tpu.memory_space<any>> -> memref<1x128xf32, #tpu.memory_space<any>>
      %77 = tpu.memref_squeeze %76 : memref<1x128xf32, #tpu.memory_space<any>> -> memref<128xf32, #tpu.memory_space<any>>
      %c0_i32_57 = arith.constant 0 : i32
      %78 = tpu.memref_slice %arg9[%47, %c2_i32_55, %c0_i32_57] : memref<128x8x128xf32, #tpu.memory_space<vmem>> -> memref<1x1x128xf32, #tpu.memory_space<vmem>>
      %79 = tpu.memref_squeeze %78 : memref<1x1x128xf32, #tpu.memory_space<vmem>> -> memref<128xf32, #tpu.memory_space<vmem>>
      tpu.enqueue_dma source(%77 : memref<128xf32, #tpu.memory_space<any>>) target(%79 : memref<128xf32, #tpu.memory_space<vmem>>) target_semaphore(%arg11 : memref<!tpu.dma_semaphore, #tpu.memory_space<semaphore_mem>>)
      %c8_i32_58 = arith.constant 8 : i32
      %80 = arith.muli %49, %c8_i32_58 : i32
      %c3_i32 = arith.constant 3 : i32
      %81 = arith.addi %80, %c3_i32 : i32
      %82 = arith.index_cast %81 : i32 to index
      %83 = memref.load %arg2[%82] : memref<2048xi32, #tpu.memory_space<smem>>
      %c3_i32_59 = arith.constant 3 : i32
      %c0_i32_60 = arith.constant 0 : i32
      %84 = tpu.memref_slice %arg3[%83, %c0_i32_60] : memref<501x128xf32, #tpu.memory_space<any>> -> memref<1x128xf32, #tpu.memory_space<any>>
      %85 = tpu.memref_squeeze %84 : memref<1x128xf32, #tpu.memory_space<any>> -> memref<128xf32, #tpu.memory_space<any>>
      %c0_i32_61 = arith.constant 0 : i32
      %86 = tpu.memref_slice %arg9[%47, %c3_i32_59, %c0_i32_61] : memref<128x8x128xf32, #tpu.memory_space<vmem>> -> memref<1x1x128xf32, #tpu.memory_space<vmem>>
      %87 = tpu.memref_squeeze %86 : memref<1x1x128xf32, #tpu.memory_space<vmem>> -> memref<128xf32, #tpu.memory_space<vmem>>
      tpu.enqueue_dma source(%85 : memref<128xf32, #tpu.memory_space<any>>) target(%87 : memref<128xf32, #tpu.memory_space<vmem>>) target_semaphore(%arg11 : memref<!tpu.dma_semaphore, #tpu.memory_space<semaphore_mem>>)
      %c8_i32_62 = arith.constant 8 : i32
      %88 = arith.muli %49, %c8_i32_62 : i32
      %c4_i32 = arith.constant 4 : i32
      %89 = arith.addi %88, %c4_i32 : i32
      %90 = arith.index_cast %89 : i32 to index
      %91 = memref.load %arg2[%90] : memref<2048xi32, #tpu.memory_space<smem>>
      %c4_i32_63 = arith.constant 4 : i32
      %c0_i32_64 = arith.constant 0 : i32
      %92 = tpu.memref_slice %arg3[%91, %c0_i32_64] : memref<501x128xf32, #tpu.memory_space<any>> -> memref<1x128xf32, #tpu.memory_space<any>>
      %93 = tpu.memref_squeeze %92 : memref<1x128xf32, #tpu.memory_space<any>> -> memref<128xf32, #tpu.memory_space<any>>
      %c0_i32_65 = arith.constant 0 : i32
      %94 = tpu.memref_slice %arg9[%47, %c4_i32_63, %c0_i32_65] : memref<128x8x128xf32, #tpu.memory_space<vmem>> -> memref<1x1x128xf32, #tpu.memory_space<vmem>>
      %95 = tpu.memref_squeeze %94 : memref<1x1x128xf32, #tpu.memory_space<vmem>> -> memref<128xf32, #tpu.memory_space<vmem>>
      tpu.enqueue_dma source(%93 : memref<128xf32, #tpu.memory_space<any>>) target(%95 : memref<128xf32, #tpu.memory_space<vmem>>) target_semaphore(%arg11 : memref<!tpu.dma_semaphore, #tpu.memory_space<semaphore_mem>>)
      %c8_i32_66 = arith.constant 8 : i32
      %96 = arith.muli %49, %c8_i32_66 : i32
      %c5_i32 = arith.constant 5 : i32
      %97 = arith.addi %96, %c5_i32 : i32
      %98 = arith.index_cast %97 : i32 to index
      %99 = memref.load %arg2[%98] : memref<2048xi32, #tpu.memory_space<smem>>
      %c5_i32_67 = arith.constant 5 : i32
      %c0_i32_68 = arith.constant 0 : i32
      %100 = tpu.memref_slice %arg3[%99, %c0_i32_68] : memref<501x128xf32, #tpu.memory_space<any>> -> memref<1x128xf32, #tpu.memory_space<any>>
      %101 = tpu.memref_squeeze %100 : memref<1x128xf32, #tpu.memory_space<any>> -> memref<128xf32, #tpu.memory_space<any>>
      %c0_i32_69 = arith.constant 0 : i32
      %102 = tpu.memref_slice %arg9[%47, %c5_i32_67, %c0_i32_69] : memref<128x8x128xf32, #tpu.memory_space<vmem>> -> memref<1x1x128xf32, #tpu.memory_space<vmem>>
      %103 = tpu.memref_squeeze %102 : memref<1x1x128xf32, #tpu.memory_space<vmem>> -> memref<128xf32, #tpu.memory_space<vmem>>
      tpu.enqueue_dma source(%101 : memref<128xf32, #tpu.memory_space<any>>) target(%103 : memref<128xf32, #tpu.memory_space<vmem>>) target_semaphore(%arg11 : memref<!tpu.dma_semaphore, #tpu.memory_space<semaphore_mem>>)
      %c8_i32_70 = arith.constant 8 : i32
      %104 = arith.muli %49, %c8_i32_70 : i32
      %c6_i32 = arith.constant 6 : i32
      %105 = arith.addi %104, %c6_i32 : i32
      %106 = arith.index_cast %105 : i32 to index
      %107 = memref.load %arg2[%106] : memref<2048xi32, #tpu.memory_space<smem>>
      %c6_i32_71 = arith.constant 6 : i32
      %c0_i32_72 = arith.constant 0 : i32
      %108 = tpu.memref_slice %arg3[%107, %c0_i32_72] : memref<501x128xf32, #tpu.memory_space<any>> -> memref<1x128xf32, #tpu.memory_space<any>>
      %109 = tpu.memref_squeeze %108 : memref<1x128xf32, #tpu.memory_space<any>> -> memref<128xf32, #tpu.memory_space<any>>
      %c0_i32_73 = arith.constant 0 : i32
      %110 = tpu.memref_slice %arg9[%47, %c6_i32_71, %c0_i32_73] : memref<128x8x128xf32, #tpu.memory_space<vmem>> -> memref<1x1x128xf32, #tpu.memory_space<vmem>>
      %111 = tpu.memref_squeeze %110 : memref<1x1x128xf32, #tpu.memory_space<vmem>> -> memref<128xf32, #tpu.memory_space<vmem>>
      tpu.enqueue_dma source(%109 : memref<128xf32, #tpu.memory_space<any>>) target(%111 : memref<128xf32, #tpu.memory_space<vmem>>) target_semaphore(%arg11 : memref<!tpu.dma_semaphore, #tpu.memory_space<semaphore_mem>>)
      %c8_i32_74 = arith.constant 8 : i32
      %112 = arith.muli %49, %c8_i32_74 : i32
      %c7_i32 = arith.constant 7 : i32
      %113 = arith.addi %112, %c7_i32 : i32
      %114 = arith.index_cast %113 : i32 to index
      %115 = memref.load %arg2[%114] : memref<2048xi32, #tpu.memory_space<smem>>
      %c7_i32_75 = arith.constant 7 : i32
      %c0_i32_76 = arith.constant 0 : i32
      %116 = tpu.memref_slice %arg3[%115, %c0_i32_76] : memref<501x128xf32, #tpu.memory_space<any>> -> memref<1x128xf32, #tpu.memory_space<any>>
      %117 = tpu.memref_squeeze %116 : memref<1x128xf32, #tpu.memory_space<any>> -> memref<128xf32, #tpu.memory_space<any>>
      %c0_i32_77 = arith.constant 0 : i32
      %118 = tpu.memref_slice %arg9[%47, %c7_i32_75, %c0_i32_77] : memref<128x8x128xf32, #tpu.memory_space<vmem>> -> memref<1x1x128xf32, #tpu.memory_space<vmem>>
      %119 = tpu.memref_squeeze %118 : memref<1x1x128xf32, #tpu.memory_space<vmem>> -> memref<128xf32, #tpu.memory_space<vmem>>
      tpu.enqueue_dma source(%117 : memref<128xf32, #tpu.memory_space<any>>) target(%119 : memref<128xf32, #tpu.memory_space<vmem>>) target_semaphore(%arg11 : memref<!tpu.dma_semaphore, #tpu.memory_space<semaphore_mem>>)
    }
    %c128_i32_0 = arith.constant 128 : i32
    %c0_i32_1 = arith.constant 0 : i32
    %c128_i32_2 = arith.constant 128 : i32
    %1 = arith.addi %c0_i32_1, %c128_i32_2 : i32
    %c1_i32_3 = arith.constant 1 : i32
    scf.for %arg12 = %c0_i32_1 to %1 step %c1_i32_3  : i32 {
      %c0_i32_40 = arith.constant 0 : i32
      %c0_i32_41 = arith.constant 0 : i32
      %c0_i32_42 = arith.constant 0 : i32
      %46 = tpu.memref_slice %arg3[%c0_i32_40, %c0_i32_42] : memref<501x128xf32, #tpu.memory_space<any>> -> memref<1x128xf32, #tpu.memory_space<any>>
      %47 = tpu.memref_squeeze %46 : memref<1x128xf32, #tpu.memory_space<any>> -> memref<128xf32, #tpu.memory_space<any>>
      %c0_i32_43 = arith.constant 0 : i32
      %48 = tpu.memref_slice %arg8[%c0_i32_41, %c0_i32_43] : memref<128x128xf32, #tpu.memory_space<vmem>> -> memref<1x128xf32, #tpu.memory_space<vmem>>
      %49 = tpu.memref_squeeze %48 : memref<1x128xf32, #tpu.memory_space<vmem>> -> memref<128xf32, #tpu.memory_space<vmem>>
      tpu.wait_dma2 semaphore(%arg11 : memref<!tpu.dma_semaphore, #tpu.memory_space<semaphore_mem>>) src(%47 : memref<128xf32, #tpu.memory_space<any>>) dst(%49 : memref<128xf32, #tpu.memory_space<vmem>>)
    }
    %c0_i32_4 = arith.constant 0 : i32
    %c1024_i32 = arith.constant 1024 : i32
    %2 = arith.addi %c0_i32_4, %c1024_i32 : i32
    %c1_i32_5 = arith.constant 1 : i32
    scf.for %arg12 = %c0_i32_4 to %2 step %c1_i32_5  : i32 {
      %c0_i32_40 = arith.constant 0 : i32
      %c0_i32_41 = arith.constant 0 : i32
      %c0_i32_42 = arith.constant 0 : i32
      %c0_i32_43 = arith.constant 0 : i32
      %46 = tpu.memref_slice %arg3[%c0_i32_40, %c0_i32_43] : memref<501x128xf32, #tpu.memory_space<any>> -> memref<1x128xf32, #tpu.memory_space<any>>
      %47 = tpu.memref_squeeze %46 : memref<1x128xf32, #tpu.memory_space<any>> -> memref<128xf32, #tpu.memory_space<any>>
      %c0_i32_44 = arith.constant 0 : i32
      %48 = tpu.memref_slice %arg9[%c0_i32_41, %c0_i32_42, %c0_i32_44] : memref<128x8x128xf32, #tpu.memory_space<vmem>> -> memref<1x1x128xf32, #tpu.memory_space<vmem>>
      %49 = tpu.memref_squeeze %48 : memref<1x1x128xf32, #tpu.memory_space<vmem>> -> memref<128xf32, #tpu.memory_space<vmem>>
      tpu.wait_dma2 semaphore(%arg11 : memref<!tpu.dma_semaphore, #tpu.memory_space<semaphore_mem>>) src(%47 : memref<128xf32, #tpu.memory_space<any>>) dst(%49 : memref<128xf32, #tpu.memory_space<vmem>>)
    }
    %c0 = arith.constant 0 : index
    %c0_6 = arith.constant 0 : index
    %c0_7 = arith.constant 0 : index
    %3 = vector.load %arg9[%c0, %c0_6, %c0_7] : memref<128x8x128xf32, #tpu.memory_space<vmem>>, vector<128x1x128xf32>
    %4 = vector.shape_cast %3 : vector<128x1x128xf32> to vector<128x128xf32>
    %c0_8 = arith.constant 0 : index
    %c1 = arith.constant 1 : index
    %c0_9 = arith.constant 0 : index
    %5 = vector.load %arg9[%c0_8, %c1, %c0_9] : memref<128x8x128xf32, #tpu.memory_space<vmem>>, vector<128x1x128xf32>
    %6 = vector.shape_cast %5 : vector<128x1x128xf32> to vector<128x128xf32>
    %7 = arith.addf %4, %6 : vector<128x128xf32>
    %c0_10 = arith.constant 0 : index
    %c2 = arith.constant 2 : index
    %c0_11 = arith.constant 0 : index
    %8 = vector.load %arg9[%c0_10, %c2, %c0_11] : memref<128x8x128xf32, #tpu.memory_space<vmem>>, vector<128x1x128xf32>
    %9 = vector.shape_cast %8 : vector<128x1x128xf32> to vector<128x128xf32>
    %10 = arith.addf %7, %9 : vector<128x128xf32>
    %c0_12 = arith.constant 0 : index
    %c3 = arith.constant 3 : index
    %c0_13 = arith.constant 0 : index
    %11 = vector.load %arg9[%c0_12, %c3, %c0_13] : memref<128x8x128xf32, #tpu.memory_space<vmem>>, vector<128x1x128xf32>
    %12 = vector.shape_cast %11 : vector<128x1x128xf32> to vector<128x128xf32>
    %13 = arith.addf %10, %12 : vector<128x128xf32>
    %c0_14 = arith.constant 0 : index
    %c4 = arith.constant 4 : index
    %c0_15 = arith.constant 0 : index
    %14 = vector.load %arg9[%c0_14, %c4, %c0_15] : memref<128x8x128xf32, #tpu.memory_space<vmem>>, vector<128x1x128xf32>
    %15 = vector.shape_cast %14 : vector<128x1x128xf32> to vector<128x128xf32>
    %16 = arith.addf %13, %15 : vector<128x128xf32>
    %c0_16 = arith.constant 0 : index
    %c5 = arith.constant 5 : index
    %c0_17 = arith.constant 0 : index
    %17 = vector.load %arg9[%c0_16, %c5, %c0_17] : memref<128x8x128xf32, #tpu.memory_space<vmem>>, vector<128x1x128xf32>
    %18 = vector.shape_cast %17 : vector<128x1x128xf32> to vector<128x128xf32>
    %19 = arith.addf %16, %18 : vector<128x128xf32>
    %c0_18 = arith.constant 0 : index
    %c6 = arith.constant 6 : index
    %c0_19 = arith.constant 0 : index
    %20 = vector.load %arg9[%c0_18, %c6, %c0_19] : memref<128x8x128xf32, #tpu.memory_space<vmem>>, vector<128x1x128xf32>
    %21 = vector.shape_cast %20 : vector<128x1x128xf32> to vector<128x128xf32>
    %22 = arith.addf %19, %21 : vector<128x128xf32>
    %c0_20 = arith.constant 0 : index
    %c7 = arith.constant 7 : index
    %c0_21 = arith.constant 0 : index
    %23 = vector.load %arg9[%c0_20, %c7, %c0_21] : memref<128x8x128xf32, #tpu.memory_space<vmem>>, vector<128x1x128xf32>
    %24 = vector.shape_cast %23 : vector<128x1x128xf32> to vector<128x128xf32>
    %25 = arith.addf %22, %24 : vector<128x128xf32>
    %c0_22 = arith.constant 0 : index
    %c0_23 = arith.constant 0 : index
    %26 = vector.load %arg4[%c0_22, %c0_23] : memref<128x1xf32, #tpu.memory_space<vmem>>, vector<128x1xf32>
    %27 = vector.broadcast %26 : vector<128x1xf32> to vector<128x128xf32>
    %28 = arith.mulf %25, %27 : vector<128x128xf32>
    %c0_24 = arith.constant 0 : index
    %c0_25 = arith.constant 0 : index
    %29 = vector.load %arg8[%c0_24, %c0_25] : memref<128x128xf32, #tpu.memory_space<vmem>>, vector<128x128xf32>
    %30 = arith.truncf %29 : vector<128x128xf32> to vector<128x128xbf16>
    %c0_26 = arith.constant 0 : index
    %c0_27 = arith.constant 0 : index
    %31 = vector.load %arg10[%c0_26, %c0_27] : memref<128x256xbf16, #tpu.memory_space<vmem>>, vector<128x128xbf16>
    tpu.vector_store %arg10[%c0_26, %c0_27], %30 {strides = array<i32>} : memref<128x256xbf16, #tpu.memory_space<vmem>>, vector<128x128xbf16>,
    %32 = arith.truncf %28 : vector<128x128xf32> to vector<128x128xbf16>
    %c0_28 = arith.constant 0 : index
    %c128 = arith.constant 128 : index
    %33 = vector.load %arg10[%c0_28, %c128] : memref<128x256xbf16, #tpu.memory_space<vmem>>, vector<128x128xbf16>
    tpu.vector_store %arg10[%c0_28, %c128], %32 {strides = array<i32>} : memref<128x256xbf16, #tpu.memory_space<vmem>>, vector<128x128xbf16>,
    %c0_29 = arith.constant 0 : index
    %c0_30 = arith.constant 0 : index
    %34 = vector.load %arg10[%c0_29, %c0_30] : memref<128x256xbf16, #tpu.memory_space<vmem>>, vector<128x256xbf16>
    %c0_31 = arith.constant 0 : index
    %c0_32 = arith.constant 0 : index
    %35 = vector.load %arg5[%c0_31, %c0_32] : memref<256x128xbf16, #tpu.memory_space<vmem>>, vector<256x128xbf16>
    %cst = arith.constant dense<0.000000e+00> : vector<128x128xf32>
    %36 = tpu.matmul %34, %35, %cst {dimension_numbers = #tpu.dot_dimension_numbers<[1], [0], [0], [1], [0, 0, 1, 1], [], []>} : vector<128x256xbf16>, vector<256x128xbf16>, vector<128x128xf32> -> vector<128x128xf32>
    %c0_33 = arith.constant 0 : index
    %c0_34 = arith.constant 0 : index
    %37 = vector.load %arg6[%c0_33, %c0_34] : memref<128x128xf32, #tpu.memory_space<vmem>>, vector<128x128xf32>
    tpu.vector_store %arg6[%c0_33, %c0_34], %36 {strides = array<i32>} : memref<128x128xf32, #tpu.memory_space<vmem>>, vector<128x128xf32>,
    %cst_35 = arith.constant dense<0.000000e+00> : vector<128xf32>
    %38 = vector.multi_reduction <add>, %36, %cst_35 [0] : vector<128x128xf32> to vector<128xf32>
    %39 = vector.shape_cast %38 : vector<128xf32> to vector<1x128xf32>
    %40 = arith.mulf %36, %36 : vector<128x128xf32>
    %cst_36 = arith.constant dense<0.000000e+00> : vector<128xf32>
    %41 = vector.multi_reduction <add>, %40, %cst_36 [0] : vector<128x128xf32> to vector<128xf32>
    %42 = vector.shape_cast %41 : vector<128xf32> to vector<1x128xf32>
    %43 = tpu.concatenate %39, %42 in 0 : vector<1x128xf32>, vector<1x128xf32> -> vector<2x128xf32>
    %44 = vector.shape_cast %43 : vector<2x128xf32> to vector<1x2x128xf32>
    %c0_37 = arith.constant 0 : index
    %c0_38 = arith.constant 0 : index
    %c0_39 = arith.constant 0 : index
    %45 = vector.load %arg7[%c0_37, %c0_38, %c0_39] : memref<1x2x128xf32, #tpu.memory_space<vmem>>, vector<1x2x128xf32>
    tpu.vector_store %arg7[%c0_37, %c0_38, %c0_39], %44 {strides = array<i32>} : memref<1x2x128xf32, #tpu.memory_space<vmem>>, vector<1x2x128xf32>,
    return
  }
  func.func @transform_1(%arg0: i32, %arg1: memref<256xi32, #tpu.memory_space<smem>>, %arg2: memref<2048xi32, #tpu.memory_space<smem>>) -> (i32, i32) {
    %c0_i32 = arith.constant 0 : i32
    %c0_i32_0 = arith.constant 0 : i32
    return %arg0, %c0_i32 : i32, i32
  }
  func.func @transform_2(%arg0: i32, %arg1: memref<256xi32, #tpu.memory_space<smem>>, %arg2: memref<2048xi32, #tpu.memory_space<smem>>) -> (i32, i32) {
    %c0_i32 = arith.constant 0 : i32
    %c0_i32_0 = arith.constant 0 : i32
    %c0_i32_1 = arith.constant 0 : i32
    return %c0_i32, %c0_i32_0 : i32, i32
  }
  func.func @transform_3(%arg0: i32, %arg1: memref<256xi32, #tpu.memory_space<smem>>, %arg2: memref<2048xi32, #tpu.memory_space<smem>>) -> (i32, i32) {
    %c0_i32 = arith.constant 0 : i32
    %c0_i32_0 = arith.constant 0 : i32
    return %arg0, %c0_i32 : i32, i32
  }
  func.func @transform_4(%arg0: i32, %arg1: memref<256xi32, #tpu.memory_space<smem>>, %arg2: memref<2048xi32, #tpu.memory_space<smem>>) -> (i32, i32, i32) {
    %c0_i32 = arith.constant 0 : i32
    %c0_i32_0 = arith.constant 0 : i32
    %c0_i32_1 = arith.constant 0 : i32
    return %arg0, %c0_i32, %c0_i32_0 : i32, i32, i32
  }
}

</mosaic_0001>

<bundles_post_ra>
// kernel: tpu_custom_call.1
= control target key start
LH: loop header
LB: loop body
LE: loop exit
PB: predicated region body
PF: predicated region fallthrough
CT: control target
= control target key end

     0   :  { %s5745_s0 = inlined_call_operand.vmem [shape: s32[256], index: 0, kind: input, shape index: {}]   ;;  %s5746_s2 = inlined_call_operand.hbm [shape: f32[501,128], index: 2, kind: input, shape index: {}]   ;;  %s5747_s3 = inlined_call_operand.vmem [shape: f32[256,1], index: 3, kind: input, shape index: {}]   ;;  %s5748_s4 = inlined_call_operand.vmem [shape: bf16[256,128], index: 4, kind: input, shape index: {}]   ;;  %s5749_s5 = inlined_call_operand.hbm [shape: f32[256,128], index: 5, kind: output, shape index: {0}]   ;;  %s5750_s6 = inlined_call_operand.hbm [shape: f32[2,2,128], index: 6, kind: output, shape index: {1}]   ;;  %s5751_s1 = inlined_call_operand.vmem [shape: s32[2048], index: 1, kind: input, shape index: {}]  }
   0x1   :  { %5782 = sst [smem:[#allocation83_spill]] %s5747_s3  ;;  %s12_s23 = sshll.u32 %s5745_s0, 4  ;;  %s13_s23 = int_to_ptr.vmem [resolvable:$true] %s12_s23 }
   0x2   :  { %5783 = sst [smem:[#allocation84_spill]] %s5750_s6  ;;  %s16_s26 = sshll.u32 %s5751_s1, 4  ;;  %s17_s26 = int_to_ptr.vmem [resolvable:$true] %s16_s26 }
   0x3   :  { %s4141_s27 = scalar_lea.vmem %s13_s23, 32  ;;  %p4146_p1 = scmp.lt.s32.totalorder %s13_s23, %s13_s23 }
   0x4   :  { %p4142_p0 = scmp.ne.s32.totalorder %s13_s23, %s4141_s27  ;;  %p4147_p2 = scmp.lt.s32.totalorder %s4141_s27, %s4141_s27 }
   0x6   :  { %p4148_p3 = por %p4147_p2, %p4146_p1 }
   0x8   :  { %p4149_p4 = pnand %p4148_p3, %p4142_p0 }
   0xa   :  { %4152 = shalt.err (!%p4149_p4)  }
   0xb   :  { %s4507_s28 = smov [#allocation7]   ;;  %s4153_s29 = scalar_lea.vmem %s17_s26, 256 }
   0xc   :  { %15 = dma.vmem_to_smem %s13_s23, 32, %s4507_s28, [#allocation6] }
   0xd   :  { %p4154_p5 = scmp.ne.s32.totalorder %s17_s26, %s4153_s29  ;;  %p4158_p6 = scmp.lt.s32.totalorder %s17_s26, %s17_s26 }
   0xe   :  { %p4159_p7 = scmp.lt.s32.totalorder %s4153_s29, %s4153_s29 }
  0x10   :  { %p4160_p8 = por %p4159_p7, %p4158_p6 }
  0x12   :  { %p4161_p9 = pnand %p4160_p8, %p4154_p5 }
  0x14   :  { %4164 = shalt.err (!%p4161_p9)  }
  0x15   :  { %s4508_s0 = smov [#allocation8]  }
  0x16   :  { %19 = dma.vmem_to_smem %s17_s26, 256, %s4508_s0, [#allocation6] }
  0x17   :  { %4465 = dma.done.wait [#allocation6], 288 }
  0x18   :  { %4466 = vsyncadd [#allocation6], 4294967008 }
  0x19   :  { %21 = sfence }
  0x1a   :  { %22 = vsyncpa [#allocation10], 0 }
  0x1b   :  { %24 = vsyncpa [#allocation10 + $0x1], 0 }
  0x1c   :  { %25 = vsyncpa [#allocation12], 0 }
  0x1d   :  { %27 = vsyncpa [#allocation12 + $0x1], 0  ;;  %s4557_s1 = smov 0   ;;  %s4559_s30 = smov 0  }
  0x1e   :  { %s4561_s7 = smov 0   ;;  %s4563_s8 = smov 0  }
  0x1f LB: > { %5784 = sst [smem:[#allocation38_spill]] %s4481_s1  ;;  %s4578_s9 = sadd.s32 4294967295, %s4493_s8   ;;  %s4493_s8 = sphi %s4563_s8, %s5937_s8   ;;  %s4489_s7 = sphi %s4561_s7, %s5940_s7   ;;  %s4485_s30 = sphi %s4559_s30, %s5939_s30   ;;  %s4481_s1 = sphi %s4557_s1, %s5938_s1  }
  0x20   : > { %5785 = sst [smem:[#allocation39_spill]] %s4485_s30  ;;  %s3918_s10 = sadd.s32 4294967294, %s4493_s8  }
  0x21   : > { %5786 = sst [smem:[#allocation40_spill]] %s4489_s7  ;;  %s4582_s11 = sadd.s32 1, %s4493_s8  }
  0x22   : > { %5787 = sst [smem:[#allocation41_spill]] %s4493_s8  ;;  %s87_s12 = sadd.s32 1, %s4489_s7 }
  0x23   : > { %5788 = sst [smem:[#allocation42_spill]] %s4582_s11  ;;  %s84_s13 = ssub.s32 %s4493_s8, %s4582_s11 }
  0x24   : > { %p97_p10 = scmp.ne.s32.totalorder %s4489_s7, %s4485_s30  ;;  %p85_p11 = scmp.eq.s32.totalorder %s84_s13, 0 }
  0x25   : > { %p98_p12 = scmp.eq.s32.totalorder %s4578_s9, 1  ;;  %p103_p13 = scmp.ne.s32.totalorder %s4485_s30, %s4481_s1 }
  0x26   : > { %p104_p0 = scmp.eq.s32.totalorder %s3918_s10, 1  ;;  %p3921_p3 = scmp.ge.s32.totalorder %s4493_s8, 1 }
  0x27   : > { %s4593_s14 = scalar_select %p85_p11, %s4489_s7, %s87_s12  }
  0x28   : > { %p4595_p1 = por %p98_p12, %p97_p10  ;;  %p4599_p2 = por %p104_p0, %p103_p13 }
  0x29   : > { %5789 = sst [smem:[#allocation43_spill]] %s4593_s14  ;;  %p160_p4 = scmp.lt.s32.totalorder %s4493_s8, 3 }
  0x2a   : > { %s5791_s16 = scalar_select %p4599_p2, 1, 0 }
  0x2b   : > { %p161_p5 = pnand %p3921_p3, %p160_p4 }
  0x2c   : > { %5792 = sst [smem:[#allocation44_spill]] %s5791_s16 }
  0x2d   : > { %164 = sbr.rel (%p161_p5) target bundleno = 1036 (0x40c), region = 28 }
  0x34   : > { %s4606_s17 = sand.u32 1, %s4485_s30   ;;  %s3924_s18 = sshll.u32 %s4578_s9, 4 }
  0x35   : > { %s3922_s19 = sshll.u32 %s4606_s17, 7  ;;  %s3923_s20 = sshll.u32 %s4606_s17, 1 }
  0x36   : > { %p190_p6 = scmp.lt.s32.totalorder %s3924_s18, 31  ;;  %s5793_s3 = sld [smem:[#allocation83_spill]] }
  0x37   : > { %s4616_s25 = scalar_lea.vmem [#allocation9], %s3922_s19  ;;  %s4618_s26 = scalar_lea.vmem [#allocation11], %s3923_s20 }
  0x38   : > { %s5942_s18 = smov (!%p190_p6, %s3924_s18), 31  ;;  %s4620_s27 = smov 0  }
  0x39   : > { %s3925_s21 = sshll.u32 %s5942_s18, 3 }
  0x3c   : > { %s4614_s24 = scalar_lea.vmem %s5793_s3, %s3925_s21 }
  0x3d LB: >> { %s3926_s28 = sshll.u32 %s4578_s9, 7  ;;  %s208_s10 = scalar_lea.vmem [#allocation2], %s4497_s27  ;;  %s4497_s27 = sphi %s4620_s27, %s202_s27  }
  0x3e   : >> { %s204_s29 = sadd.s32 %s4497_s27, %s3926_s28  ;;  %s216_s12 = sshll.u32 %s208_s10, 4  ;;  %s4628_s12 = int_to_ptr.vmem [resolvable:$true] %s216_s12 }
  0x3f   : >> { %s205_s0 = sld [smem:[#allocation7 + %s204_s29]]  ;;  %s4630_s13 = sshll.u32 %s204_s29, 3 }
  0x40   : >> { %s3930_s18 = sshll.u32 %s4497_s27, 3  ;;  %s4634_s19 = sld [smem:[#allocation8 + %s4630_s13]] }
  0x41   : >> { %s237_s20 = sadd.s32 1, %s4630_s13  ;;  %s4637_s21 = scalar_lea.vmem [#allocation3], %s3930_s18 }
  0x42   : >> { %s233_s22 = sshll.u32 %s4637_s21, 4  ;;  %s4640_s23 = sld [smem:[#allocation8 + %s237_s20]]  ;;  %s4642_s22 = int_to_ptr.vmem [resolvable:$true] %s233_s22 }
  0x43   : >> { %s3826_s28 = scalar_lea.vmem %s4637_s21, 1 [#allocation3]  ;;  %s4653_s16 = scalar_lea.hbm %s5746_s2, 8064 }
  0x44   : >> { %s250_s3 = sshll.u32 %s3826_s28, 4  ;;  %s4648_s3 = int_to_ptr.vmem [resolvable:$true] %s250_s3 }
  0x45   : >> { %s3927_s10 = sshll.u32 %s205_s0, 4 }
  0x46   : >> { %s207_s7 = scalar_lea.hbm %s5746_s2, %s3927_s10 }
  0x47   : >> { %s4165_s30 = scalar_lea.hbm %s207_s7, 16  ;;  %p4168_p8 = scmp.lt.u32.totalorder %s207_s7, %s5746_s2 }
  0x48   : >> { %p4166_p7 = scmp.ne.s32.totalorder %s207_s7, %s4165_s30  ;;  %p4169_p9 = scmp.lt.u32.totalorder %s4653_s16, %s4165_s30 }
  0x49   : >> { %p4171_p11 = scmp.lt.u32.totalorder %s4165_s30, %s207_s7 }
  0x4a   : >> { %p4170_p10 = por %p4169_p9, %p4168_p8 }
  0x4c   : >> { %p4172_p12 = por %p4171_p11, %p4170_p10 }
  0x4e   : >> { %p4173_p13 = pnand %p4172_p12, %p4166_p7 }
  0x50   : >> { %4176 = shalt.err (!%p4173_p13)  }
  0x51   : >> { %s4177_s14 = scalar_lea.vmem %s4628_s12, 16  ;;  %s4509_s0 = smov [#allocation2]  }
  0x52   : >> { %p4178_p0 = scmp.ne.s32.totalorder %s4628_s12, %s4177_s14  ;;  %s4179_s11 = sshll.u32 %s4509_s0, 4  ;;  %s4180_s11 = int_to_ptr.vmem [resolvable:$false] %s4179_s11 }
  0x53   : >> { %s4181_s28 = scalar_lea.vmem %s4180_s11, 2048  ;;  %p4182_p3 = scmp.lt.s32.totalorder %s4628_s12, %s4180_s11 }
  0x54   : >> { %p4183_p4 = scmp.lt.s32.totalorder %s4181_s28, %s4177_s14 }
  0x56   : >> { %p4184_p5 = por %p4183_p4, %p4182_p3 }
  0x58   : >> { %p4185_p6 = pnand %p4184_p5, %p4178_p0 }
  0x5a   : >> { %4188 = shalt.err (!%p4185_p6)  }
  0x5b   : >> { %219 = dma.hbm_to_vmem [thread:$0]  %s207_s7, 16, %s4628_s12, [#allocation5] }
  0x5c   : >> { %s3929_s1 = sshll.u32 %s4634_s19, 4  ;;  %s254_s30 = sadd.s32 2, %s4630_s13 }
  0x5d   : >> { %s223_s18 = scalar_lea.hbm %s5746_s2, %s3929_s1  ;;  %s3931_s20 = sshll.u32 %s4640_s23, 4 }
  0x5e   : >> { %s4189_s0 = scalar_lea.hbm %s223_s18, 16  ;;  %p4192_p8 = scmp.lt.u32.totalorder %s223_s18, %s5746_s2 }
  0x5f   : >> { %p4190_p7 = scmp.ne.s32.totalorder %s223_s18, %s4189_s0  ;;  %p4193_p9 = scmp.lt.u32.totalorder %s4653_s16, %s4189_s0 }
  0x60   : >> { %p4195_p11 = scmp.lt.u32.totalorder %s4189_s0, %s223_s18 }
  0x61   : >> { %p4194_p10 = por %p4193_p9, %p4192_p8 }
  0x63   : >> { %p4196_p12 = por %p4195_p11, %p4194_p10 }
  0x65   : >> { %p4197_p13 = pnand %p4196_p12, %p4190_p7 }
  0x67   : >> { %4200 = shalt.err (!%p4197_p13)  }
  0x68   : >> { %s4201_s7 = scalar_lea.vmem %s4642_s22, 16  ;;  %s4510_s12 = smov [#allocation3]  }
  0x69   : >> { %p4202_p0 = scmp.ne.s32.totalorder %s4642_s22, %s4201_s7  ;;  %s4203_s19 = sshll.u32 %s4510_s12, 4  ;;  %s4675_s19 = int_to_ptr.vmem [resolvable:$false] %s4203_s19 }
  0x6a   : >> { %s4678_s23 = scalar_lea.vmem %s4675_s19, 16384  ;;  %p4206_p3 = scmp.lt.s32.totalorder %s4642_s22, %s4675_s19 }
  0x6b   : >> { %p4207_p4 = scmp.lt.s32.totalorder %s4678_s23, %s4201_s7 }
  0x6d   : >> { %p4208_p5 = por %p4207_p4, %p4206_p3 }
  0x6f   : >> { %p4209_p6 = pnand %p4208_p5, %p4202_p0 }
  0x71   : >> { %4212 = shalt.err (!%p4209_p6)  }
  0x72   : >> { %236 = dma.hbm_to_vmem [thread:$0]  %s223_s18, 16, %s4642_s22, [#allocation5] }
  0x73   : >> { %s240_s10 = scalar_lea.hbm %s5746_s2, %s3931_s20  ;;  %s4687_s29 = sld [smem:[#allocation8 + %s254_s30]] }
  0x74   : >> { %s4213_s0 = scalar_lea.hbm %s240_s10, 16  ;;  %p4216_p8 = scmp.lt.u32.totalorder %s240_s10, %s5746_s2 }
  0x75   : >> { %p4214_p7 = scmp.ne.s32.totalorder %s240_s10, %s4213_s0  ;;  %p4217_p9 = scmp.lt.u32.totalorder %s4653_s16, %s4213_s0 }
  0x76   : >> { %p4219_p11 = scmp.lt.u32.totalorder %s4213_s0, %s240_s10 }
  0x77   : >> { %p4218_p10 = por %p4217_p9, %p4216_p8 }
  0x79   : >> { %p4220_p12 = por %p4219_p11, %p4218_p10 }
  0x7b   : >> { %p4221_p13 = pnand %p4220_p12, %p4214_p7 }
  0x7d   : >> { %4224 = shalt.err (!%p4221_p13)  }
  0x7e   : >> { %s4225_s22 = scalar_lea.vmem %s4648_s3, 16  ;;  %p4230_p3 = scmp.lt.s32.totalorder %s4648_s3, %s4675_s19 }
  0x7f   : >> { %p4226_p0 = scmp.ne.s32.totalorder %s4648_s3, %s4225_s22  ;;  %p4231_p4 = scmp.lt.s32.totalorder %s4678_s23, %s4225_s22 }
  0x81   : >> { %p4232_p5 = por %p4231_p4, %p4230_p3 }
  0x83   : >> { %p4233_p6 = pnand %p4232_p5, %p4226_p0 }
  0x85   : >> { %4236 = shalt.err (!%p4233_p6)  }
  0x86   : >> { %253 = dma.hbm_to_vmem [thread:$0]  %s240_s10, 16, %s4648_s3, [#allocation5] }
  0x87   : >> { %s3831_s30 = scalar_lea.vmem %s4637_s21, 2 [#allocation3]  ;;  %s271_s18 = sadd.s32 3, %s4630_s13 }
  0x88   : >> { %s267_s20 = sshll.u32 %s3831_s30, 4  ;;  %s4701_s7 = sld [smem:[#allocation8 + %s271_s18]]  ;;  %s268_s20 = int_to_ptr.vmem [resolvable:$true] %s267_s20 }
  0x89   : >> { %s3836_s12 = scalar_lea.vmem %s4637_s21, 3 [#allocation3]  ;;  %s288_s1 = sadd.s32 4, %s4630_s13 }
  0x8a   : >> { %s284_s28 = sshll.u32 %s3836_s12, 4  ;;  %s3933_s0 = sshll.u32 %s4687_s29, 4  ;;  %s4706_s28 = int_to_ptr.vmem [resolvable:$true] %s284_s28 }
  0x8b   : >> { %s257_s22 = scalar_lea.hbm %s5746_s2, %s3933_s0  ;;  %s4711_s8 = sld [smem:[#allocation8 + %s288_s1]] }
  0x8c   : >> { %s4237_s3 = scalar_lea.hbm %s257_s22, 16  ;;  %p4240_p8 = scmp.lt.u32.totalorder %s257_s22, %s5746_s2 }
  0x8d   : >> { %p4238_p7 = scmp.ne.s32.totalorder %s257_s22, %s4237_s3  ;;  %p4241_p9 = scmp.lt.u32.totalorder %s4653_s16, %s4237_s3 }
  0x8e   : >> { %p4243_p11 = scmp.lt.u32.totalorder %s4237_s3, %s257_s22 }
  0x8f   : >> { %p4242_p10 = por %p4241_p9, %p4240_p8 }
  0x91   : >> { %p4244_p12 = por %p4243_p11, %p4242_p10 }
  0x93   : >> { %p4245_p13 = pnand %p4244_p12, %p4238_p7 }
  0x95   : >> { %4248 = shalt.err (!%p4245_p13)  }
  0x96   : >> { %s4249_s29 = scalar_lea.vmem %s268_s20, 16  ;;  %p4254_p3 = scmp.lt.s32.totalorder %s268_s20, %s4675_s19 }
  0x97   : >> { %p4250_p0 = scmp.ne.s32.totalorder %s268_s20, %s4249_s29  ;;  %p4255_p4 = scmp.lt.s32.totalorder %s4678_s23, %s4249_s29 }
  0x99   : >> { %p4256_p5 = por %p4255_p4, %p4254_p3 }
  0x9b   : >> { %p4257_p6 = pnand %p4256_p5, %p4250_p0 }
  0x9d   : >> { %4260 = shalt.err (!%p4257_p6)  }
  0x9e   : >> { %270 = dma.hbm_to_vmem [thread:$0]  %s257_s22, 16, %s268_s20, [#allocation5] }
  0x9f   : >> { %s3935_s6 = sshll.u32 %s4701_s7, 4  ;;  %s3841_s30 = scalar_lea.vmem %s4637_s21, 4 [#allocation3] }
  0xa0   : >> { %s274_s1 = scalar_lea.hbm %s5746_s2, %s3935_s6  ;;  %s301_s0 = sshll.u32 %s3841_s30, 4  ;;  %s302_s0 = int_to_ptr.vmem [resolvable:$true] %s301_s0 }
  0xa1   : >> { %s4261_s11 = scalar_lea.hbm %s274_s1, 16  ;;  %p4264_p8 = scmp.lt.u32.totalorder %s274_s1, %s5746_s2 }
  0xa2   : >> { %p4262_p7 = scmp.ne.s32.totalorder %s274_s1, %s4261_s11  ;;  %p4265_p9 = scmp.lt.u32.totalorder %s4653_s16, %s4261_s11 }
  0xa3   : >> { %p4267_p11 = scmp.lt.u32.totalorder %s4261_s11, %s274_s1 }
  0xa4   : >> { %p4266_p10 = por %p4265_p9, %p4264_p8 }
  0xa6   : >> { %p4268_p12 = por %p4267_p11, %p4266_p10 }
  0xa8   : >> { %p4269_p13 = pnand %p4268_p12, %p4262_p7 }
  0xaa   : >> { %4272 = shalt.err (!%p4269_p13)  }
  0xab   : >> { %s4273_s20 = scalar_lea.vmem %s4706_s28, 16  ;;  %p4278_p3 = scmp.lt.s32.totalorder %s4706_s28, %s4675_s19 }
  0xac   : >> { %p4274_p0 = scmp.ne.s32.totalorder %s4706_s28, %s4273_s20  ;;  %p4279_p4 = scmp.lt.s32.totalorder %s4678_s23, %s4273_s20 }
  0xae   : >> { %p4280_p5 = por %p4279_p4, %p4278_p3 }
  0xb0   : >> { %p4281_p6 = pnand %p4280_p5, %p4274_p0 }
  0xb2   : >> { %4284 = shalt.err (!%p4281_p6)  }
  0xb3   : >> { %287 = dma.hbm_to_vmem [thread:$0]  %s274_s1, 16, %s4706_s28, [#allocation5] }
  0xb4   : >> { %s305_s7 = sadd.s32 5, %s4630_s13  ;;  %s3937_s22 = sshll.u32 %s4711_s8, 4 }
  0xb5   : >> { %s4736_s10 = sld [smem:[#allocation8 + %s305_s7]]  ;;  %s291_s30 = scalar_lea.hbm %s5746_s2, %s3937_s22 }
  0xb6   : >> { %s3846_s18 = scalar_lea.vmem %s4637_s21, 5 [#allocation3]  ;;  %s4285_s12 = scalar_lea.hbm %s291_s30, 16 }
  0xb7   : >> { %p4286_p7 = scmp.ne.s32.totalorder %s291_s30, %s4285_s12  ;;  %p4288_p8 = scmp.lt.u32.totalorder %s291_s30, %s5746_s2 }
  0xb8   : >> { %p4289_p9 = scmp.lt.u32.totalorder %s4653_s16, %s4285_s12  ;;  %p4291_p11 = scmp.lt.u32.totalorder %s4285_s12, %s291_s30 }
  0xba   : >> { %p4290_p10 = por %p4289_p9, %p4288_p8 }
  0xbc   : >> { %p4292_p12 = por %p4291_p11, %p4290_p10 }
  0xbe   : >> { %p4293_p13 = pnand %p4292_p12, %p4286_p7 }
  0xc0   : >> { %4296 = shalt.err (!%p4293_p13)  }
  0xc1   : >> { %s4297_s8 = scalar_lea.vmem %s302_s0, 16  ;;  %p4302_p3 = scmp.lt.s32.totalorder %s302_s0, %s4675_s19 }
  0xc2   : >> { %p4298_p0 = scmp.ne.s32.totalorder %s302_s0, %s4297_s8  ;;  %p4303_p4 = scmp.lt.s32.totalorder %s4678_s23, %s4297_s8 }
  0xc4   : >> { %p4304_p5 = por %p4303_p4, %p4302_p3 }
  0xc6   : >> { %p4305_p6 = pnand %p4304_p5, %p4298_p0 }
  0xc8   : >> { %4308 = shalt.err (!%p4305_p6)  }
  0xc9   : >> { %304 = dma.hbm_to_vmem [thread:$0]  %s291_s30, 16, %s302_s0, [#allocation5] }
  0xca   : >> { %s318_s28 = sshll.u32 %s3846_s18, 4  ;;  %s322_s1 = sadd.s32 6, %s4630_s13  ;;  %s319_s28 = int_to_ptr.vmem [resolvable:$true] %s318_s28 }
  0xcb   : >> { %s323_s3 = sld [smem:[#allocation8 + %s322_s1]]  ;;  %s3851_s20 = scalar_lea.vmem %s4637_s21, 6 [#allocation3] }
  0xcc   : >> { %s339_s7 = sadd.s32 7, %s4630_s13  ;;  %s3939_s22 = sshll.u32 %s4736_s10, 4 }
  0xcd   : >> { %s335_s29 = sshll.u32 %s3851_s20, 4  ;;  %s308_s11 = scalar_lea.hbm %s5746_s2, %s3939_s22  ;;  %s4755_s29 = int_to_ptr.vmem [resolvable:$true] %s335_s29 }
  0xce   : >> { %s4309_s0 = scalar_lea.hbm %s308_s11, 16  ;;  %p4312_p8 = scmp.lt.u32.totalorder %s308_s11, %s5746_s2 }
  0xcf   : >> { %p4310_p7 = scmp.ne.s32.totalorder %s308_s11, %s4309_s0  ;;  %p4313_p9 = scmp.lt.u32.totalorder %s4653_s16, %s4309_s0 }
  0xd0   : >> { %p4315_p11 = scmp.lt.u32.totalorder %s4309_s0, %s308_s11 }
  0xd1   : >> { %p4314_p10 = por %p4313_p9, %p4312_p8 }
  0xd3   : >> { %p4316_p12 = por %p4315_p11, %p4314_p10 }
  0xd5   : >> { %p4317_p13 = pnand %p4316_p12, %p4310_p7 }
  0xd7   : >> { %4320 = shalt.err (!%p4317_p13)  }
  0xd8   : >> { %s4321_s13 = scalar_lea.vmem %s319_s28, 16  ;;  %p4326_p3 = scmp.lt.s32.totalorder %s319_s28, %s4675_s19 }
  0xd9   : >> { %p4322_p0 = scmp.ne.s32.totalorder %s319_s28, %s4321_s13  ;;  %p4327_p4 = scmp.lt.s32.totalorder %s4678_s23, %s4321_s13 }
  0xdb   : >> { %p4328_p5 = por %p4327_p4, %p4326_p3 }
  0xdd   : >> { %p4329_p6 = pnand %p4328_p5, %p4322_p0 }
  0xdf   : >> { %4332 = shalt.err (!%p4329_p6)  }
  0xe0   : >> { %321 = dma.hbm_to_vmem [thread:$0]  %s308_s11, 16, %s319_s28, [#allocation5] }
  0xe1   : >> { %s340_s10 = sld [smem:[#allocation8 + %s339_s7]]  ;;  %s3856_s18 = scalar_lea.vmem %s4637_s21, 7 [#allocation3] }
  0xe2   : >> { %s3941_s8 = sshll.u32 %s323_s3, 4  ;;  %s352_s6 = sshll.u32 %s3856_s18, 4  ;;  %s353_s6 = int_to_ptr.vmem [resolvable:$true] %s352_s6 }
  0xe3   : >> { %s325_s22 = scalar_lea.hbm %s5746_s2, %s3941_s8 }
  0xe4   : >> { %s4333_s12 = scalar_lea.hbm %s325_s22, 16  ;;  %p4336_p8 = scmp.lt.u32.totalorder %s325_s22, %s5746_s2 }
  0xe5   : >> { %p4334_p7 = scmp.ne.s32.totalorder %s325_s22, %s4333_s12  ;;  %p4337_p9 = scmp.lt.u32.totalorder %s4653_s16, %s4333_s12 }
  0xe6   : >> { %p4339_p11 = scmp.lt.u32.totalorder %s4333_s12, %s325_s22 }
  0xe7   : >> { %p4338_p10 = por %p4337_p9, %p4336_p8 }
  0xe9   : >> { %p4340_p12 = por %p4339_p11, %p4338_p10 }
  0xeb   : >> { %p4341_p13 = pnand %p4340_p12, %p4334_p7 }
  0xed   : >> { %4344 = shalt.err (!%p4341_p13)  }
  0xee   : >> { %s4345_s21 = scalar_lea.vmem %s4755_s29, 16  ;;  %p4350_p3 = scmp.lt.s32.totalorder %s4755_s29, %s4675_s19 }
  0xef   : >> { %p4346_p0 = scmp.ne.s32.totalorder %s4755_s29, %s4345_s21  ;;  %p4351_p4 = scmp.lt.s32.totalorder %s4678_s23, %s4345_s21 }
  0xf1   : >> { %p4352_p5 = por %p4351_p4, %p4350_p3 }
  0xf3   : >> { %p4353_p6 = pnand %p4352_p5, %p4346_p0 }
  0xf5   : >> { %4356 = shalt.err (!%p4353_p6)  }
  0xf6   : >> { %338 = dma.hbm_to_vmem [thread:$0]  %s325_s22, 16, %s4755_s29, [#allocation5] }
  0xf7   : >> { %s3943_s28 = sshll.u32 %s340_s10, 4 }
  0xf8   : >> { %s342_s11 = scalar_lea.hbm %s5746_s2, %s3943_s28 }
  0xf9   : >> { %s4357_s14 = scalar_lea.hbm %s342_s11, 16  ;;  %p4360_p8 = scmp.lt.u32.totalorder %s342_s11, %s5746_s2 }
  0xfa   : >> { %p4358_p7 = scmp.ne.s32.totalorder %s342_s11, %s4357_s14  ;;  %p4361_p9 = scmp.lt.u32.totalorder %s4653_s16, %s4357_s14 }
  0xfb   : >> { %p4363_p11 = scmp.lt.u32.totalorder %s4357_s14, %s342_s11 }
  0xfc   : >> { %p4362_p10 = por %p4361_p9, %p4360_p8 }
  0xfe   : >> { %p4364_p12 = por %p4363_p11, %p4362_p10 }
 0x100   : >> { %p4365_p13 = pnand %p4364_p12, %p4358_p7 }
 0x102   : >> { %4368 = shalt.err (!%p4365_p13)  }
 0x103   : >> { %s4369_s8 = scalar_lea.vmem %s353_s6, 16  ;;  %p4374_p3 = scmp.lt.s32.totalorder %s353_s6, %s4675_s19 }
 0x104   : >> { %p4370_p0 = scmp.ne.s32.totalorder %s353_s6, %s4369_s8  ;;  %p4375_p4 = scmp.lt.s32.totalorder %s4678_s23, %s4369_s8 }
 0x106   : >> { %p4376_p5 = por %p4375_p4, %p4374_p3 }
 0x108   : >> { %p4377_p6 = pnand %p4376_p5, %p4370_p0 }
 0x10a   : >> { %4380 = shalt.err (!%p4377_p6)  }
 0x10b   : >> { %355 = dma.hbm_to_vmem [thread:$0]  %s342_s11, 16, %s353_s6, [#allocation5] }
 0x10c   : >> { %s202_s27 = sadd.s32 1, %s4497_s27  }
 0x10d   : >> { %p199_p2 = scmp.ge.s32.totalorder %s202_s27, 128  }
 0x10e   : > { %s4499_s16 = smov (%p199_p2), 0  }
 0x10f   : > { %201 = sbr.rel (!%p199_p2) target bundleno = 61 (0x3d), region = 155 }
 0x116 LB: >> { %4467 = dma.done.wait [#allocation5], 16  ;;  %s4501_s16 = sphi %s4499_s16, %s361_s16  }
 0x117   : >> { %4468 = vsyncadd [#allocation5], 4294967280  ;;  %s361_s16 = sadd.s32 1, %s4501_s16  }
 0x118   : >> { %p358_p7 = scmp.ge.s32.totalorder %s361_s16, 128  }
 0x119   : > { %s4503_s19 = smov (%p358_p7), 0  }
 0x11a   : > { %360 = sbr.rel (!%p358_p7) target bundleno = 278 (0x116), region = 166 }
 0x121 LB: >> { %4469 = dma.done.wait [#allocation5], 16  ;;  %s4505_s19 = sphi %s4503_s19, %s369_s19  }
 0x122   : >> { %4470 = vsyncadd [#allocation5], 4294967280  ;;  %s369_s19 = sadd.s32 1, %s4505_s19  }
 0x123   : >> { %p366_p8 = scmp.ge.s32.totalorder %s369_s19, 1024  }
 0x124   : > { %v2294_v0 = vld [vmem:[%s4614_s24 + $0x10] sm:$0xff] (%p366_p8)  ;;  %v2292_v1 = vld [vmem:[%s4614_s24] sm:$0xff] (%p366_p8)  ;;  %v4511_v2 = vmov (%p366_p8), 0   ;;  %v2295_v3 = vld [vmem:[%s4614_s24 + $0x18] sm:$0xff] (%p366_p8)  ;;  %vm3157_vm0 = vcmask (%p366_p8), 1041409   ;;  %vm3160_vm1 = vcmask (%p366_p8), 1042434  }
 0x125   : > { %368 = sbr.rel (!%p366_p8) target bundleno = 289 (0x121), region = 177  ;;  %4124 = vset.pattern.permute.xlu1 (%p366_p8), %v4511_v2  ;;  %4123 = vset.pattern.permute.xlu0 (%p366_p8), %v4511_v2  ;;  %v2293_v4 = vld [vmem:[%s4614_s24 + $0x8] sm:$0xff] (%p366_p8)  ;;  %v2296_v6 = vld [vmem:[%s4614_s24 + $0x20] sm:$0xff] (%p366_p8)  ;;  %v2299_v13 = vld [vmem:[%s4614_s24 + $0x38] sm:$0xff] (%p366_p8)  ;;  %vm3163_vm2 = vcmask (%p366_p8), 1043459   ;;  %vm3166_vm3 = vcmask (%p366_p8), 1044484  }
 0x126   : > { %2318 = vperm.xlu1 (%p366_p8), %4124, %v2294_v0   ;;  %2310 = vperm.xlu0 (%p366_p8), %4123, %v2292_v1   ;;  %v2297_v5 = vld [vmem:[%s4614_s24 + $0x28] sm:$0xff] (%p366_p8)  ;;  %v4125_v7 = vld [vmem:[%s5748_s4 + $0x40] sm:$0xff] (%p366_p8)   ;;  %v2298_v14 = vld [vmem:[%s4614_s24 + $0x30] sm:$0xff] (%p366_p8)  ;;  %vm3169_vm4 = vcmask (%p366_p8), 1045509   ;;  %vm3172_vm5 = vcmask (%p366_p8), 1046534   ;;  %vm3175_vm6 = vcmask (%p366_p8), 1047559  }
 0x127   : > { %v4126_v8 = vld [vmem:[%s5748_s4] sm:$0xff] (%p366_p8)   ;;  %3970 = vmatprep.subr.bf16.mxu0 (%p366_p8), %v4125_v7  ;;  %v4127_v9 = vld [vmem:[%s5748_s4 + $0x48] sm:$0xff] (%p366_p8)   ;;  %4034 = vmatprep.subr.bf16.mxu1 (%p366_p8), %v4125_v7  ;;  %v2303_v15 = vld [vmem:[%s4614_s24 + $0x58] sm:$0xff] (%p366_p8)  ;;  %s3969_s0 = sshll.u32 (%p366_p8), %s4578_s9, 11  ;;  %s3748_s30 = sshll.u32 (%p366_p8), %s4616_s25, 4  ;;  %s5668_s30 = int_to_ptr.vmem [resolvable:$true] %s3748_s30 }
 0x128   : > { %3971 = vmatpush3.bf16.msra.mxu0 (%p366_p8), %v4126_v8  ;;  %v4128_v10 = vld [vmem:[%s5748_s4 + $0x8] sm:$0xff] (%p366_p8)   ;;  %4042 = vmatpush3.bf16.msra.mxu1 (%p366_p8), %v4126_v8  ;;  %v2300_v12 = vld [vmem:[%s4614_s24 + $0x40] sm:$0xff] (%p366_p8)  ;;  %v2302_v16 = vld [vmem:[%s4614_s24 + $0x50] sm:$0xff] (%p366_p8)  ;;  %s5666_s3 = scalar_lea.hbm (%p366_p8), %s5749_s5, %s3969_s0  ;;  %s3730_s7 = scalar_lea.sflag (%p366_p8), [#allocation10], %s4606_s17 }
 0x129   : > { %v2301_v11 = vld [vmem:[%s4614_s24 + $0x48] sm:$0xff] (%p366_p8)  ;;  %3972 = vmatprep.subr.bf16.mxu0 (%p366_p8), %v4127_v9  ;;  %4035 = vmatprep.subr.bf16.mxu1 (%p366_p8), %v4127_v9  ;;  %v4129_v17 = vld [vmem:[%s5748_s4 + $0x50] sm:$0xff] (%p366_p8)   ;;  %v2304_v20 = vld [vmem:[%s4614_s24 + $0x60] sm:$0xff] (%p366_p8)  ;;  %s4381_s11 = scalar_lea.vmem (%p366_p8), %s5668_s30, 2048 }
 0x12a   : > { %2322 = vperm.xlu1 (%p366_p8), %4124, %v2295_v3   ;;  %2314 = vperm.xlu0 (%p366_p8), %4123, %v2293_v4   ;;  %v4130_v18 = vld [vmem:[%s5748_s4 + $0x10] sm:$0xff] (%p366_p8)   ;;  %v2305_v19 = vld [vmem:[%s4614_s24 + $0x68] sm:$0xff] (%p366_p8)  ;;  %v2307_v21 = vld [vmem:[%s4614_s24 + $0x78] sm:$0xff] (%p366_p8)  ;;  %p4382_p2 = scmp.ne.s32.totalorder (%p366_p8), %s5668_s30, %s4381_s11 }
 0x12b   : > { %v2306_v22 = vld [vmem:[%s4614_s24 + $0x70] sm:$0xff] (%p366_p8)  ;;  %v4131_v23 = vld [vmem:[%s5748_s4 + $0x58] sm:$0xff] (%p366_p8)   ;;  %v388_v25 = vld [vmem:[#allocation3 + $0x80] sm:$0x1] (%p366_p8)  ;;  %s4512_s24 = smov (%p366_p8), [#allocation9]  }
 0x12c   : > { %3973 = vmatpush3.bf16.msra.mxu0 %v4128_v10  ;;  %4043 = vmatpush3.bf16.msra.mxu1 %v4128_v10  ;;  %v4132_v24 = vld [vmem:[%s5748_s4 + $0x18] sm:$0xff]   ;;  %v516_v26 = vld [vmem:[#allocation3 + $0x81] sm:$0x1]  ;;  %v389_v27 = vld [vmem:[#allocation3 + $0x88] sm:$0x1]  ;;  %p4383_p9 = pnand %p4382_p2, %p4595_p1  ;;  %s4385_s14 = sshll.u32 %s4512_s24, 4  ;;  %s4386_s14 = int_to_ptr.vmem [resolvable:$false] %s4385_s14 }
 0x12d   : > { %3974 = vmatprep.subr.bf16.mxu0 %v4129_v17  ;;  %4036 = vmatprep.subr.bf16.mxu1 %v4129_v17  ;;  %v517_v28 = vld [vmem:[#allocation3 + $0x89] sm:$0x1]  ;;  %v390_v29 = vld [vmem:[#allocation3 + $0x90] sm:$0x1]  ;;  %v518_v30 = vld [vmem:[#allocation3 + $0x91] sm:$0x1]  ;;  %v644_v31 = vadd.f32 %v516_v26, %v388_v25  ;;  %p4388_p11 = scmp.lt.s32.totalorder %s5668_s30, %s4386_s14 }
 0x12e   : > { %2330 = vperm.xlu1 %4124, %v2297_v5   ;;  %2326 = vperm.xlu0 %4123, %v2296_v6   ;;  %v772_v32 = vld [vmem:[#allocation3 + $0x82] sm:$0x1]  ;;  %v773_v33 = vld [vmem:[#allocation3 + $0x8a] sm:$0x1]  ;;  %v645_v34 = vadd.f32 %v517_v28, %v389_v27  ;;  %v774_v35 = vld [vmem:[#allocation3 + $0x92] sm:$0x1]  ;;  %v646_v37 = vadd.f32 %v518_v30, %v390_v29  ;;  %p4384_p10 = pneg %p4383_p9 }
 0x12f   : > { %v372_v36 = vld [vmem:[#allocation3] sm:$0x1]  ;;  %v900_v39 = vadd.f32 %v772_v32, %v644_v31  ;;  %v500_v40 = vld [vmem:[#allocation3 + $0x1] sm:$0x1]  ;;  %v1028_v42 = vld [vmem:[#allocation3 + $0x83] sm:$0x1] }
 0x130   : > { %3975 = vmatpush3.bf16.msra.mxu0 %v4130_v18  ;;  %4044 = vmatpush3.bf16.msra.mxu1 %v4130_v18  ;;  %v4133_v38 = vld [vmem:[%s5748_s4 + $0x60] sm:$0xff]   ;;  %v901_v43 = vadd.f32 %v773_v33, %v645_v34  ;;  %v902_v44 = vadd.f32 %v774_v35, %v646_v37  ;;  %v1029_v45 = vld [vmem:[#allocation3 + $0x8b] sm:$0x1]  ;;  %v1030_v46 = vld [vmem:[#allocation3 + $0x93] sm:$0x1]  ;;  %v628_v48 = vadd.f32 %v500_v40, %v372_v36  ;;  %s4387_s13 = scalar_lea.vmem %s4386_s14, 4096 }
 0x131   : > { %3976 = vmatprep.subr.bf16.mxu0 %v4131_v23  ;;  %4037 = vmatprep.subr.bf16.mxu1 %v4131_v23  ;;  %v4134_v41 = vld [vmem:[%s5748_s4 + $0x20] sm:$0xff]   ;;  %v1156_v49 = vadd.f32 %v1028_v42, %v900_v39  ;;  %v1285_v53 = vld [vmem:[#allocation3 + $0x8c] sm:$0x1]  ;;  %v397_v54 = vld [vmem:[#allocation3 + $0xc8] sm:$0x1]  ;;  %p4389_p12 = scmp.lt.s32.totalorder %s4387_s13, %s4381_s11 }
 0x132   : > { %2346 = vperm.xlu1 %4124, %v2301_v11   ;;  %2342 = vperm.xlu0 %4123, %v2300_v12   ;;  %v1284_v47 = vld [vmem:[#allocation3 + $0x84] sm:$0x1]  ;;  %v756_v50 = vld [vmem:[#allocation3 + $0x2] sm:$0x1]  ;;  %v396_v51 = vld [vmem:[#allocation3 + $0xc0] sm:$0x1]  ;;  %v1157_v56 = vadd.f32 %v1029_v45, %v901_v43  ;;  %v1158_v63 = vadd.f32 %v1030_v46, %v902_v44 }
 0x133   : > { %v524_v52 = vld [vmem:[#allocation3 + $0xc1] sm:$0x1]  ;;  %v525_v55 = vld [vmem:[#allocation3 + $0xc9] sm:$0x1]  ;;  %v1286_v57 = vld [vmem:[#allocation3 + $0x94] sm:$0x1]  ;;  %v884_v1 = vadd.f32 %v756_v50, %v628_v48  ;;  %v1412_v4 = vadd.f32 %v1284_v47, %v1156_v49  ;;  %p4390_p13 = por %p4389_p12, %p4388_p11 }
 0x134   : > { %3977 = vmatpush3.bf16.msra.mxu0 %v4132_v24  ;;  %4045 = vmatpush3.bf16.msra.mxu1 %v4132_v24  ;;  %v1012_v58 = vld [vmem:[#allocation3 + $0x3] sm:$0x1]  ;;  %v398_v59 = vld [vmem:[#allocation3 + $0xd0] sm:$0x1]  ;;  %v526_v60 = vld [vmem:[#allocation3 + $0xd1] sm:$0x1]  ;;  %v652_v2 = vadd.f32 %v524_v52, %v396_v51  ;;  %v653_v5 = vadd.f32 %v525_v55, %v397_v54 }
 0x135   : > { %3978 = vmatprep.subr.bf16.mxu0 %v4133_v38  ;;  %4038 = vmatprep.subr.bf16.mxu1 %v4133_v38  ;;  %v780_v61 = vld [vmem:[#allocation3 + $0xc2] sm:$0x1]  ;;  %v4135_v62 = vld [vmem:[%s5748_s4 + $0x68] sm:$0xff]   ;;  %v1540_v0 = vld [vmem:[#allocation3 + $0x85] sm:$0x1]  ;;  %v654_v23 = vadd.f32 %v526_v60, %v398_v59  ;;  %p4391_p0 = pnand %p4390_p13, %p4384_p10 }
 0x136   : > { %2338 = vperm.xlu1 %4124, %v2299_v13   ;;  %2334 = vperm.xlu0 %4123, %v2298_v14   ;;  %v4136_v3 = vld [vmem:[%s5748_s4 + $0x28] sm:$0xff]   ;;  %v380_v7 = vld [vmem:[#allocation3 + $0x40] sm:$0x1]  ;;  %v508_v8 = vld [vmem:[#allocation3 + $0x41] sm:$0x1]  ;;  %v1413_v13 = vadd.f32 %v1285_v53, %v1157_v56  ;;  %v908_v24 = vadd.f32 %v780_v61, %v652_v2  ;;  %v1668_v28 = vadd.f32 %v1540_v0, %v1412_v4 }
 0x137   : > { %v781_v6 = vld [vmem:[#allocation3 + $0xca] sm:$0x1]  ;;  %v1541_v9 = vld [vmem:[#allocation3 + $0x8d] sm:$0x1]  ;;  %v412_v10 = vld [vmem:[#allocation3 + $0x140] sm:$0x1]  ;;  %v636_v31 = vadd.f32 %v508_v8, %v380_v7 }
 0x138   : > { %3979 = vmatpush3.bf16.msra.mxu0 %v4134_v41  ;;  %4046 = vmatpush3.bf16.msra.mxu1 %v4134_v41  ;;  %v413_v11 = vld [vmem:[#allocation3 + $0x148] sm:$0x1]  ;;  %v414_v12 = vld [vmem:[#allocation3 + $0x150] sm:$0x1]  ;;  %v1542_v14 = vld [vmem:[#allocation3 + $0x95] sm:$0x1]  ;;  %v909_v29 = vadd.f32 %v781_v6, %v653_v5  ;;  %v1669_v41 = vadd.f32 %v1541_v9, %v1413_v13 }
 0x139   : > { %3980 = vmatprep.subr.bf16.mxu0 %v4135_v62  ;;  %4039 = vmatprep.subr.bf16.mxu1 %v4135_v62  ;;  %v540_v17 = vld [vmem:[#allocation3 + $0x141] sm:$0x1]  ;;  %v541_v18 = vld [vmem:[#allocation3 + $0x149] sm:$0x1]  ;;  %v1036_v25 = vld [vmem:[#allocation3 + $0xc3] sm:$0x1] }
 0x13a   : > { %2354 = vperm.xlu1 %4124, %v2303_v15   ;;  %2350 = vperm.xlu0 %4123, %v2302_v16   ;;  %v1268_v15 = vld [vmem:[#allocation3 + $0x4] sm:$0x1]  ;;  %v782_v16 = vld [vmem:[#allocation3 + $0xd2] sm:$0x1]  ;;  %v404_v26 = vld [vmem:[#allocation3 + $0x100] sm:$0x1]  ;;  %v668_v35 = vadd.f32 %v540_v17, %v412_v10  ;;  %v669_v36 = vadd.f32 %v541_v18, %v413_v11  ;;  %v1164_v53 = vadd.f32 %v1036_v25, %v908_v24 }
 0x13b   : > { %v532_v27 = vld [vmem:[#allocation3 + $0x101] sm:$0x1]  ;;  %v1037_v30 = vld [vmem:[#allocation3 + $0xcb] sm:$0x1]  ;;  %v764_v32 = vld [vmem:[#allocation3 + $0x42] sm:$0x1]  ;;  %v910_v52 = vadd.f32 %v782_v16, %v654_v23 }
 0x13c   : > { %3981 = vmatpush3.bf16.msra.mxu0 %v4136_v3  ;;  %4047 = vmatpush3.bf16.msra.mxu1 %v4136_v3  ;;  %v796_v33 = vld [vmem:[#allocation3 + $0x142] sm:$0x1]  ;;  %v1797_v34 = vld [vmem:[#allocation3 + $0x8e] sm:$0x1]  ;;  %v797_v38 = vld [vmem:[#allocation3 + $0x14a] sm:$0x1]  ;;  %v660_v48 = vadd.f32 %v532_v27, %v404_v26  ;;  %v892_v61 = vadd.f32 %v764_v32, %v636_v31 }
 0x13d   : > { %v405_v39 = vld [vmem:[#allocation3 + $0x108] sm:$0x1]  ;;  %v533_v40 = vld [vmem:[#allocation3 + $0x109] sm:$0x1]  ;;  %v1798_v42 = vld [vmem:[#allocation3 + $0x96] sm:$0x1]  ;;  %v925_v2 = vadd.f32 %v797_v38, %v669_v36  ;;  %v1925_v8 = vadd.f32 %v1797_v34, %v1669_v41 }
 0x13e   : > { %2362 = vperm.xlu1 %4124, %v2305_v19   ;;  %2358 = vperm.xlu0 %4123, %v2304_v20   ;;  %v542_v19 = vld [vmem:[#allocation3 + $0x151] sm:$0x1]  ;;  %v1414_v20 = vadd.f32 %v1286_v57, %v1158_v63  ;;  %v1524_v43 = vld [vmem:[#allocation3 + $0x5] sm:$0x1]  ;;  %v1038_v44 = vld [vmem:[#allocation3 + $0xd3] sm:$0x1]  ;;  %v661_v63 = vadd.f32 %v533_v40, %v405_v39 }
 0x13f   : > { %v670_v37 = vadd.f32 %v542_v19, %v414_v12  ;;  %v798_v45 = vld [vmem:[#allocation3 + $0x152] sm:$0x1]  ;;  %v406_v46 = vld [vmem:[#allocation3 + $0x110] sm:$0x1]  ;;  %v534_v47 = vld [vmem:[#allocation3 + $0x111] sm:$0x1] }
 0x140   : > { %v1670_v49 = vadd.f32 %v1542_v14, %v1414_v20  ;;  %v2052_v50 = vld [vmem:[#allocation3 + $0x87] sm:$0x1]  ;;  %v788_v54 = vld [vmem:[#allocation3 + $0x102] sm:$0x1]  ;;  %v444_v55 = vld [vmem:[#allocation3 + $0x240] sm:$0x1]  ;;  %v662_v6 = vadd.f32 %v534_v47, %v406_v46  ;;  %v1166_v20 = vadd.f32 %v1038_v44, %v910_v52 }
 0x141   : > { %v572_v56 = vld [vmem:[#allocation3 + $0x241] sm:$0x1]  ;;  %v1292_v59 = vld [vmem:[#allocation3 + $0xc4] sm:$0x1]  ;;  %v1293_v60 = vld [vmem:[#allocation3 + $0xcc] sm:$0x1]  ;;  %v926_v3 = vadd.f32 %v798_v45, %v670_v37 }
 0x142   : > { %2370 = vperm.xlu1 %4124, %v2307_v21   ;;  %2366 = vperm.xlu0 %4123, %v2306_v22   ;;  %v1796_v21 = vld [vmem:[#allocation3 + $0x86] sm:$0x1]  ;;  %v1140_v22 = vadd.f32 %v1012_v58, %v884_v1  ;;  %v1165_v58 = vadd.f32 %v1037_v30, %v909_v29  ;;  %v1020_v62 = vld [vmem:[#allocation3 + $0x43] sm:$0x1]  ;;  %v2053_v0 = vld [vmem:[#allocation3 + $0x8f] sm:$0x1]  ;;  %v924_v1 = vadd.f32 %v796_v33, %v668_v35 }
 0x143   : > { %v1924_v57 = vadd.f32 %v1796_v21, %v1668_v28  ;;  %v1052_v4 = vld [vmem:[#allocation3 + $0x143] sm:$0x1]  ;;  %v1053_v5 = vld [vmem:[#allocation3 + $0x14b] sm:$0x1]  ;;  %v789_v7 = vld [vmem:[#allocation3 + $0x10a] sm:$0x1]  ;;  %v700_v17 = vadd.f32 %v572_v56, %v444_v55  ;;  %v1926_v18 = vadd.f32 %v1798_v42, %v1670_v49  ;;  %v1420_v21 = vadd.f32 %v1292_v59, %v1164_v53 }
 0x144   : > { %v1396_v51 = vadd.f32 %v1268_v15, %v1140_v22  ;;  %v2054_v9 = vld [vmem:[#allocation3 + $0x97] sm:$0x1]  ;;  %v1780_v10 = vld [vmem:[#allocation3 + $0x6] sm:$0x1]  ;;  %v1294_v11 = vld [vmem:[#allocation3 + $0xd4] sm:$0x1]  ;;  %v916_v15 = vadd.f32 %v788_v54, %v660_v48  ;;  %v1421_v28 = vadd.f32 %v1293_v60, %v1165_v58  ;;  %v1148_v29 = vadd.f32 %v1020_v62, %v892_v61 }
 0x145   : > { %v1548_v12 = vld [vmem:[#allocation3 + $0xc5] sm:$0x1]  ;;  %v1054_v13 = vld [vmem:[#allocation3 + $0x153] sm:$0x1]  ;;  %v790_v14 = vld [vmem:[#allocation3 + $0x112] sm:$0x1]  ;;  %v4841_v27 = vadd.f32 %v2052_v50, %v1924_v57  ;;  %v917_v33 = vadd.f32 %v789_v7, %v661_v63  ;;  %v1180_v36 = vadd.f32 %v1052_v4, %v924_v1  ;;  %v1181_v37 = vadd.f32 %v1053_v5, %v925_v2 }
 0x146   : > { %v1044_v16 = vld [vmem:[#allocation3 + $0x103] sm:$0x1]  ;;  %v1652_v19 = vadd.f32 %v1524_v43, %v1396_v51  ;;  %v1549_v22 = vld [vmem:[#allocation3 + $0xcd] sm:$0x1]  ;;  %v1276_v23 = vld [vmem:[#allocation3 + $0x44] sm:$0x1]  ;;  %v1182_v38 = vadd.f32 %v1054_v13, %v926_v3  ;;  %v918_v39 = vadd.f32 %v790_v14, %v662_v6  ;;  %v4843_v44 = vadd.f32 %v2053_v0, %v1925_v8 }
 0x147   : > { %v828_v24 = vld [vmem:[#allocation3 + $0x242] sm:$0x1]  ;;  %v436_v25 = vld [vmem:[#allocation3 + $0x200] sm:$0x1]  ;;  %v564_v26 = vld [vmem:[#allocation3 + $0x201] sm:$0x1]  ;;  %v1172_v46 = vadd.f32 %v1044_v16, %v916_v15  ;;  %v4845_v52 = vadd.f32 %v2054_v9, %v1926_v18  ;;  %v1422_v54 = vadd.f32 %v1294_v11, %v1166_v20  ;;  %v1676_v55 = vadd.f32 %v1548_v12, %v1420_v21 }
 0x148   : > { %v1308_v30 = vld [vmem:[#allocation3 + $0x144] sm:$0x1]  ;;  %v1309_v31 = vld [vmem:[#allocation3 + $0x14c] sm:$0x1]  ;;  %v1310_v32 = vld [vmem:[#allocation3 + $0x154] sm:$0x1]  ;;  %v956_v47 = vadd.f32 %v828_v24, %v700_v17  ;;  %v692_v48 = vadd.f32 %v564_v26, %v436_v25  ;;  %v4847_v53 = vadd.f32 %v1780_v10, %v1652_v19  ;;  %v1677_v62 = vadd.f32 %v1549_v22, %v1421_v28 }
 0x149   : > { %v1045_v34 = vld [vmem:[#allocation3 + $0x10b] sm:$0x1]  ;;  %v1046_v35 = vld [vmem:[#allocation3 + $0x113] sm:$0x1]  ;;  %v1300_v40 = vld [vmem:[#allocation3 + $0x104] sm:$0x1]  ;;  %v1404_v63 = vadd.f32 %v1276_v23, %v1148_v29  ;;  %v1436_v5 = vadd.f32 %v1308_v30, %v1180_v36  ;;  %v1437_v6 = vadd.f32 %v1309_v31, %v1181_v37  ;;  %v1438_v7 = vadd.f32 %v1310_v32, %v1182_v38 }
 0x14a   : > { %v1084_v41 = vld [vmem:[#allocation3 + $0x243] sm:$0x1]  ;;  %v428_v42 = vld [vmem:[#allocation3 + $0x1c0] sm:$0x1]  ;;  %v556_v43 = vld [vmem:[#allocation3 + $0x1c1] sm:$0x1]  ;;  %v1173_v2 = vadd.f32 %v1045_v34, %v917_v33  ;;  %v1174_v8 = vadd.f32 %v1046_v35, %v918_v39  ;;  %v1428_v15 = vadd.f32 %v1300_v40, %v1172_v46 }
 0x14b   : > { %v1550_v45 = vld [vmem:[#allocation3 + $0xd5] sm:$0x1]  ;;  %v820_v49 = vld [vmem:[#allocation3 + $0x202] sm:$0x1]  ;;  %v429_v50 = vld [vmem:[#allocation3 + $0x1c8] sm:$0x1]  ;;  %v684_v3 = vadd.f32 %v556_v43, %v428_v42  ;;  %v1212_v16 = vadd.f32 %v1084_v41, %v956_v47 }
 0x14c   : > { %v430_v51 = vld [vmem:[#allocation3 + $0x1d0] sm:$0x1]  ;;  %v1804_v56 = vld [vmem:[#allocation3 + $0xc6] sm:$0x1]  ;;  %v1805_v57 = vld [vmem:[#allocation3 + $0xce] sm:$0x1]  ;;  %v948_v17 = vadd.f32 %v820_v49, %v692_v48  ;;  %v1678_v18 = vadd.f32 %v1550_v45, %v1422_v54 }
 0x14d   : > { %v1301_v58 = vld [vmem:[#allocation3 + $0x10c] sm:$0x1]  ;;  %v557_v59 = vld [vmem:[#allocation3 + $0x1c9] sm:$0x1]  ;;  %v558_v60 = vld [vmem:[#allocation3 + $0x1d1] sm:$0x1]  ;;  %v1932_v26 = vadd.f32 %v1804_v56, %v1676_v55  ;;  %v1933_v28 = vadd.f32 %v1805_v57, %v1677_v62 }
 0x14e   : > { %v812_v61 = vld [vmem:[#allocation3 + $0x1c2] sm:$0x1]  ;;  %v1532_v0 = vld [vmem:[#allocation3 + $0x45] sm:$0x1]  ;;  %v4137_v4 = vld [vmem:[%s5748_s4 + $0x70] sm:$0xff]   ;;  %v685_v24 = vadd.f32 %v557_v59, %v429_v50  ;;  %v686_v25 = vadd.f32 %v558_v60, %v430_v51  ;;  %v1429_v32 = vadd.f32 %v1301_v58, %v1173_v2 }
 0x14f   : > { %v1564_v1 = vld [vmem:[#allocation3 + $0x145] sm:$0x1]  ;;  %v4138_v9 = vld [vmem:[%s5748_s4 + $0x30] sm:$0xff]   ;;  %v2036_v10 = vld [vmem:[#allocation3 + $0x7] sm:$0x1]  ;;  %3982 = vmatprep.subr.bf16.mxu0 %v4137_v4  ;;  %4040 = vmatprep.subr.bf16.mxu1 %v4137_v4  ;;  %v940_v35 = vadd.f32 %v812_v61, %v684_v3  ;;  %v1660_v36 = vadd.f32 %v1532_v0, %v1404_v63 }
 0x150   : > { %v1806_v11 = vld [vmem:[#allocation3 + $0xd6] sm:$0x1]  ;;  %v1565_v12 = vld [vmem:[#allocation3 + $0x14d] sm:$0x1]  ;;  %v1566_v13 = vld [vmem:[#allocation3 + $0x155] sm:$0x1]  ;;  %3983 = vmatpush3.bf16.msra.mxu0 %v4138_v9  ;;  %4048 = vmatpush3.bf16.msra.mxu1 %v4138_v9  ;;  %v1692_v37 = vadd.f32 %v1564_v1, %v1436_v5  ;;  %v4856_v54 = vadd.f32 %v2036_v10, %v4847_v53 }
 0x151   : > { %v1302_v14 = vld [vmem:[#allocation3 + $0x114] sm:$0x1]  ;;  %v2060_v19 = vld [vmem:[#allocation3 + $0xc7] sm:$0x1]  ;;  %v2061_v20 = vld [vmem:[#allocation3 + $0xcf] sm:$0x1]  ;;  %v1693_v38 = vadd.f32 %v1565_v12, %v1437_v6  ;;  %v1694_v45 = vadd.f32 %v1566_v13, %v1438_v7  ;;  %v1934_v55 = vadd.f32 %v1806_v11, %v1678_v18 }
 0x152   : > { %v1556_v21 = vld [vmem:[#allocation3 + $0x105] sm:$0x1]  ;;  %v1340_v22 = vld [vmem:[#allocation3 + $0x244] sm:$0x1]  ;;  %v1076_v23 = vld [vmem:[#allocation3 + $0x203] sm:$0x1]  ;;  %v1430_v40 = vadd.f32 %v1302_v14, %v1174_v8  ;;  %v4858_v63 = vadd.f32 %v2060_v19, %v1932_v26  ;;  %v4860_v0 = vadd.f32 %v2061_v20, %v1933_v28 }
 0x153   : > { %v1788_v29 = vld [vmem:[#allocation3 + $0x46] sm:$0x1]  ;;  %v1821_v31 = vld [vmem:[#allocation3 + $0x14e] sm:$0x1]  ;;  %v813_v33 = vld [vmem:[#allocation3 + $0x1ca] sm:$0x1]  ;;  %v1684_v46 = vadd.f32 %v1556_v21, %v1428_v15  ;;  %v1468_v48 = vadd.f32 %v1340_v22, %v1212_v16  ;;  %v1204_v50 = vadd.f32 %v1076_v23, %v948_v17 }
 0x154   : > { %v1820_v30 = vld [vmem:[#allocation3 + $0x146] sm:$0x1]  ;;  %v814_v34 = vld [vmem:[#allocation3 + $0x1d2] sm:$0x1]  ;;  %v1822_v39 = vld [vmem:[#allocation3 + $0x156] sm:$0x1]  ;;  %v941_v58 = vadd.f32 %v813_v33, %v685_v24  ;;  %v1916_v9 = vadd.f32 %v1788_v29, %v1660_v36  ;;  %v1949_v11 = vadd.f32 %v1821_v31, %v1693_v38 }
 0x155   : > { %v1557_v41 = vld [vmem:[#allocation3 + $0x10d] sm:$0x1]  ;;  %v1558_v42 = vld [vmem:[#allocation3 + $0x115] sm:$0x1]  ;;  %v1068_v43 = vld [vmem:[#allocation3 + $0x1c3] sm:$0x1]  ;;  %v942_v59 = vadd.f32 %v814_v34, %v686_v25  ;;  %v1948_v10 = vadd.f32 %v1820_v30, %v1692_v37  ;;  %v1950_v19 = vadd.f32 %v1822_v39, %v1694_v45 }
 0x156   : > { %v1812_v47 = vld [vmem:[#allocation3 + $0x106] sm:$0x1]  ;;  %v1596_v49 = vld [vmem:[#allocation3 + $0x245] sm:$0x1]  ;;  %v1332_v51 = vld [vmem:[#allocation3 + $0x204] sm:$0x1]  ;;  %v1685_v4 = vadd.f32 %v1557_v41, %v1429_v32  ;;  %v1196_v6 = vadd.f32 %v1068_v43, %v940_v35  ;;  %v1686_v13 = vadd.f32 %v1558_v42, %v1430_v40 }
 0x157   : > { %v2062_v56 = vld [vmem:[#allocation3 + $0xd7] sm:$0x1]  ;;  %v1813_v57 = vld [vmem:[#allocation3 + $0x10e] sm:$0x1]  ;;  %v1069_v60 = vld [vmem:[#allocation3 + $0x1cb] sm:$0x1]  ;;  %v1940_v20 = vadd.f32 %v1812_v47, %v1684_v46  ;;  %v1724_v21 = vadd.f32 %v1596_v49, %v1468_v48  ;;  %v1460_v22 = vadd.f32 %v1332_v51, %v1204_v50 }
 0x158   : > { %v1070_v61 = vld [vmem:[#allocation3 + $0x1d3] sm:$0x1]  ;;  %v420_v62 = vld [vmem:[#allocation3 + $0x180] sm:$0x1]  ;;  %v2044_v1 = vld [vmem:[#allocation3 + $0x47] sm:$0x1]  ;;  %v1197_v28 = vadd.f32 %v1069_v60, %v941_v58  ;;  %v4862_v36 = vadd.f32 %v2062_v56, %v1934_v55  ;;  %v1941_v37 = vadd.f32 %v1813_v57, %v1685_v4 }
 0x159   : > { %v2076_v2 = vld [vmem:[#allocation3 + $0x147] sm:$0x1]  ;;  %v2077_v3 = vld [vmem:[#allocation3 + $0x14f] sm:$0x1]  ;;  %v1814_v5 = vld [vmem:[#allocation3 + $0x116] sm:$0x1]  ;;  %v1198_v32 = vadd.f32 %v1070_v61, %v942_v59  ;;  %v4864_v45 = vadd.f32 %v2044_v1, %v1916_v9 }
 0x15a   : > { %v421_v53 = vld [vmem:[#allocation3 + $0x188] sm:$0x1]  ;;  %v548_v7 = vld [vmem:[#allocation3 + $0x181] sm:$0x1]  ;;  %v549_v8 = vld [vmem:[#allocation3 + $0x189] sm:$0x1]  ;;  %v4866_v46 = vadd.f32 %v2076_v2, %v1948_v10  ;;  %v4868_v47 = vadd.f32 %v2077_v3, %v1949_v11  ;;  %v1942_v48 = vadd.f32 %v1814_v5, %v1686_v13 }
 0x15b   : > { %v2078_v12 = vld [vmem:[#allocation3 + $0x157] sm:$0x1]  ;;  %v2068_v14 = vld [vmem:[#allocation3 + $0x107] sm:$0x1]  ;;  %v1852_v15 = vld [vmem:[#allocation3 + $0x246] sm:$0x1]  ;;  %v676_v30 = vadd.f32 %v548_v7, %v420_v62  ;;  %v677_v31 = vadd.f32 %v549_v8, %v421_v53 }
 0x15c   : > { %v1324_v16 = vld [vmem:[#allocation3 + $0x1c4] sm:$0x1]  ;;  %v422_v17 = vld [vmem:[#allocation3 + $0x190] sm:$0x1]  ;;  %v550_v18 = vld [vmem:[#allocation3 + $0x191] sm:$0x1]  ;;  %v4870_v56 = vadd.f32 %v2078_v12, %v1950_v19  ;;  %v4872_v57 = vadd.f32 %v2068_v14, %v1940_v20  ;;  %v1980_v59 = vadd.f32 %v1852_v15, %v1724_v21 }
 0x15d   : > { %v1588_v23 = vld [vmem:[#allocation3 + $0x205] sm:$0x1]  ;;  %v1325_v24 = vld [vmem:[#allocation3 + $0x1cc] sm:$0x1]  ;;  %v1326_v25 = vld [vmem:[#allocation3 + $0x1d4] sm:$0x1]  ;;  %v1452_v39 = vadd.f32 %v1324_v16, %v1196_v6  ;;  %v678_v40 = vadd.f32 %v550_v18, %v422_v17 }
 0x15e   : > { %v2069_v26 = vld [vmem:[#allocation3 + $0x10f] sm:$0x1]  ;;  %v1580_v29 = vld [vmem:[#allocation3 + $0x1c5] sm:$0x1]  ;;  %v804_v33 = vld [vmem:[#allocation3 + $0x182] sm:$0x1]  ;;  %v1716_v60 = vadd.f32 %v1588_v23, %v1460_v22  ;;  %v1453_v53 = vadd.f32 %v1325_v24, %v1197_v28  ;;  %v1454_v5 = vadd.f32 %v1326_v25, %v1198_v32 }
 0x15f   : > { %v805_v34 = vld [vmem:[#allocation3 + $0x18a] sm:$0x1]  ;;  %v806_v35 = vld [vmem:[#allocation3 + $0x192] sm:$0x1]  ;;  %v2070_v38 = vld [vmem:[#allocation3 + $0x117] sm:$0x1]  ;;  %v932_v8 = vadd.f32 %v804_v33, %v676_v30  ;;  %v4874_v14 = vadd.f32 %v2069_v26, %v1941_v37  ;;  %v1708_v15 = vadd.f32 %v1580_v29, %v1452_v39 }
 0x160   : > { %v460_v41 = vld [vmem:[#allocation3 + $0x2c0] sm:$0x1]  ;;  %v461_v42 = vld [vmem:[#allocation3 + $0x2c8] sm:$0x1]  ;;  %v462_v43 = vld [vmem:[#allocation3 + $0x2d0] sm:$0x1]  ;;  %v933_v9 = vadd.f32 %v805_v34, %v677_v31  ;;  %v934_v16 = vadd.f32 %v806_v35, %v678_v40  ;;  %v4876_v21 = vadd.f32 %v2070_v38, %v1942_v48 }
 0x161   : > { %5794 = vst [vmem:[#allocation45_spill] sm:$0xff] %v4866_v46  ;;  %5795 = vst [vmem:[#allocation46_spill] sm:$0xff] %v4868_v47  ;;  %v2108_v49 = vld [vmem:[#allocation3 + $0x247] sm:$0x1]  ;;  %v1844_v50 = vld [vmem:[#allocation3 + $0x206] sm:$0x1] }
 0x162   : > { %v588_v51 = vld [vmem:[#allocation3 + $0x2c1] sm:$0x1]  ;;  %v589_v58 = vld [vmem:[#allocation3 + $0x2c9] sm:$0x1]  ;;  %v590_v55 = vld [vmem:[#allocation3 + $0x2d1] sm:$0x1]  ;;  %v4878_v30 = vadd.f32 %v2108_v49, %v1980_v59  ;;  %v4880_v31 = vadd.f32 %v1844_v50, %v1716_v60 }
 0x163   : > { %5796 = vst [vmem:[#allocation47_spill] sm:$0xff] %v4870_v56  ;;  %5797 = vst [vmem:[#allocation48_spill] sm:$0xff] %v4872_v57  ;;  %v1581_v61 = vld [vmem:[#allocation3 + $0x1cd] sm:$0x1]  ;;  %v1582_v62 = vld [vmem:[#allocation3 + $0x1d5] sm:$0x1]  ;;  %v716_v17 = vadd.f32 %v588_v51, %v460_v41  ;;  %v717_v22 = vadd.f32 %v589_v58, %v461_v42  ;;  %v718_v23 = vadd.f32 %v590_v55, %v462_v43 }
 0x164   : > { %v1060_v1 = vld [vmem:[#allocation3 + $0x183] sm:$0x1]  ;;  %v1061_v4 = vld [vmem:[#allocation3 + $0x18b] sm:$0x1]  ;;  %v452_v2 = vld [vmem:[#allocation3 + $0x280] sm:$0x1]  ;;  %v1709_v38 = vadd.f32 %v1581_v61, %v1453_v53  ;;  %v1710_v39 = vadd.f32 %v1582_v62, %v1454_v5 }
 0x165   : > { %v453_v6 = vld [vmem:[#allocation3 + $0x288] sm:$0x1]  ;;  %v580_v3 = vld [vmem:[#allocation3 + $0x281] sm:$0x1]  ;;  %v1836_v7 = vld [vmem:[#allocation3 + $0x1c6] sm:$0x1]  ;;  %v1188_v40 = vadd.f32 %v1060_v1, %v932_v8  ;;  %v1189_v41 = vadd.f32 %v1061_v4, %v933_v9 }
 0x166   : > { %v1062_v10 = vld [vmem:[#allocation3 + $0x193] sm:$0x1]  ;;  %v454_v11 = vld [vmem:[#allocation3 + $0x290] sm:$0x1]  ;;  %v581_v12 = vld [vmem:[#allocation3 + $0x289] sm:$0x1]  ;;  %v708_v24 = vadd.f32 %v580_v3, %v452_v2  ;;  %v1964_v49 = vadd.f32 %v1836_v7, %v1708_v15 }
 0x167   : > { %v582_v13 = vld [vmem:[#allocation3 + $0x291] sm:$0x1]  ;;  %5798 = vst [vmem:[#allocation49_spill] sm:$0xff] %v4874_v14  ;;  %v844_v18 = vld [vmem:[#allocation3 + $0x2c2] sm:$0x1]  ;;  %5799 = vst [vmem:[#allocation50_spill] sm:$0xff] %v4876_v21  ;;  %v709_v34 = vadd.f32 %v581_v12, %v453_v6  ;;  %v1190_v50 = vadd.f32 %v1062_v10, %v934_v16 }
 0x168   : > { %v845_v19 = vld [vmem:[#allocation3 + $0x2ca] sm:$0x1]  ;;  %v846_v20 = vld [vmem:[#allocation3 + $0x2d2] sm:$0x1]  ;;  %v836_v25 = vld [vmem:[#allocation3 + $0x282] sm:$0x1]  ;;  %v710_v35 = vadd.f32 %v582_v13, %v454_v11  ;;  %v972_v51 = vadd.f32 %v844_v18, %v716_v17 }
 0x169   : > { %v837_v28 = vld [vmem:[#allocation3 + $0x28a] sm:$0x1]  ;;  %v838_v32 = vld [vmem:[#allocation3 + $0x292] sm:$0x1]  ;;  %5800 = vst [vmem:[#allocation51_spill] sm:$0xff] %v4878_v30  ;;  %v4139_v37 = vld [vmem:[%s5748_s4 + $0x78] sm:$0xff]   ;;  %v973_v1 = vadd.f32 %v845_v19, %v717_v22  ;;  %v974_v4 = vadd.f32 %v846_v20, %v718_v23  ;;  %v964_v3 = vadd.f32 %v836_v25, %v708_v24 }
 0x16a   : > { %v1837_v26 = vld [vmem:[#allocation3 + $0x1ce] sm:$0x1]  ;;  %v1316_v33 = vld [vmem:[#allocation3 + $0x184] sm:$0x1]  ;;  %v1317_v29 = vld [vmem:[#allocation3 + $0x18c] sm:$0x1]  ;;  %3984 = vmatprep.subr.bf16.mxu0 %v4139_v37  ;;  %4041 = vmatprep.subr.bf16.mxu1 %v4139_v37  ;;  %v965_v9 = vadd.f32 %v837_v28, %v709_v34  ;;  %v966_v10 = vadd.f32 %v838_v32, %v710_v35 }
 0x16b   : > { %v1318_v42 = vld [vmem:[#allocation3 + $0x194] sm:$0x1]  ;;  %v1100_v43 = vld [vmem:[#allocation3 + $0x2c3] sm:$0x1]  ;;  %v4140_v48 = vld [vmem:[%s5748_s4 + $0x38] sm:$0xff]   ;;  %v1965_v17 = vadd.f32 %v1837_v26, %v1709_v38  ;;  %v1444_v37 = vadd.f32 %v1316_v33, %v1188_v40  ;;  %v1445_v30 = vadd.f32 %v1317_v29, %v1189_v41 }
 0x16c   : > { %v1101_v58 = vld [vmem:[#allocation3 + $0x2cb] sm:$0x1]  ;;  %v1102_v55 = vld [vmem:[#allocation3 + $0x2d3] sm:$0x1]  ;;  %v1092_v59 = vld [vmem:[#allocation3 + $0x283] sm:$0x1]  ;;  %3985 = vmatpush3.bf16.msra.mxu0 %v4140_v48  ;;  %4049 = vmatpush3.bf16.msra.mxu1 %v4140_v48  ;;  %v1446_v25 = vadd.f32 %v1318_v42, %v1190_v50  ;;  %v1228_v48 = vadd.f32 %v1100_v43, %v972_v51 }
 0x16d   : > { %v476_v60 = vld [vmem:[#allocation3 + $0x340] sm:$0x1]  ;;  %v477_v2 = vld [vmem:[#allocation3 + $0x348] sm:$0x1]  ;;  %v478_v6 = vld [vmem:[#allocation3 + $0x350] sm:$0x1]  ;;  %v1220_v33 = vadd.f32 %v1092_v59, %v964_v3 }
 0x16e   : > { %v2100_v61 = vld [vmem:[#allocation3 + $0x207] sm:$0x1]  ;;  %v1838_v62 = vld [vmem:[#allocation3 + $0x1d6] sm:$0x1]  ;;  %v604_v53 = vld [vmem:[#allocation3 + $0x341] sm:$0x1] }
 0x16f   : > { %v605_v5 = vld [vmem:[#allocation3 + $0x349] sm:$0x1]  ;;  %v606_v8 = vld [vmem:[#allocation3 + $0x351] sm:$0x1]  ;;  %v2092_v7 = vld [vmem:[#allocation3 + $0x1c7] sm:$0x1]  ;;  %v732_v11 = vadd.f32 %v604_v53, %v476_v60  ;;  %v1229_v60 = vadd.f32 %v1101_v58, %v973_v1  ;;  %v4889_v40 = vadd.f32 %v2100_v61, %v4880_v31  ;;  %v4891_v41 = vadd.f32 %v1838_v62, %v1710_v39 }
 0x170   : > { %v733_v12 = vadd.f32 %v605_v5, %v477_v2  ;;  %v860_v13 = vld [vmem:[#allocation3 + $0x342] sm:$0x1]  ;;  %v861_v15 = vld [vmem:[#allocation3 + $0x34a] sm:$0x1]  ;;  %v862_v16 = vld [vmem:[#allocation3 + $0x352] sm:$0x1]  ;;  %v734_v24 = vadd.f32 %v606_v8, %v478_v6  ;;  %v1230_v2 = vadd.f32 %v1102_v55, %v974_v4  ;;  %v4893_v5 = vadd.f32 %v2092_v7, %v1964_v49 }
 0x171   : > { %v2093_v18 = vld [vmem:[#allocation3 + $0x1cf] sm:$0x1]  ;;  %v1572_v19 = vld [vmem:[#allocation3 + $0x185] sm:$0x1]  ;;  %v1573_v20 = vld [vmem:[#allocation3 + $0x18d] sm:$0x1]  ;;  %v988_v14 = vadd.f32 %v860_v13, %v732_v11 }
 0x172   : > { %v1093_v22 = vld [vmem:[#allocation3 + $0x28b] sm:$0x1]  ;;  %v1094_v23 = vld [vmem:[#allocation3 + $0x293] sm:$0x1]  ;;  %v1574_v21 = vld [vmem:[#allocation3 + $0x195] sm:$0x1]  ;;  %v989_v28 = vadd.f32 %v861_v15, %v733_v12  ;;  %v990_v29 = vadd.f32 %v862_v16, %v734_v24  ;;  %v4895_v12 = vadd.f32 %v2093_v18, %v1965_v17  ;;  %v1700_v31 = vadd.f32 %v1572_v19, %v1444_v37 }
 0x173   : > { %v1116_v32 = vld [vmem:[#allocation3 + $0x343] sm:$0x1]  ;;  %v1117_v34 = vld [vmem:[#allocation3 + $0x34b] sm:$0x1]  ;;  %v1118_v35 = vld [vmem:[#allocation3 + $0x353] sm:$0x1]  ;;  %v1221_v42 = vadd.f32 %v1093_v22, %v965_v9  ;;  %v1222_v50 = vadd.f32 %v1094_v23, %v966_v10  ;;  %v4897_v39 = vadd.f32 %v1573_v20, %v1445_v30  ;;  %v1702_v15 = vadd.f32 %v1574_v21, %v1446_v25 }
 0x174   : > { %v1356_v53 = vld [vmem:[#allocation3 + $0x2c4] sm:$0x1]  ;;  %v1357_v26 = vld [vmem:[#allocation3 + $0x2cc] sm:$0x1]  ;;  %v1358_v38 = vld [vmem:[#allocation3 + $0x2d4] sm:$0x1]  ;;  %v1244_v55 = vadd.f32 %v1116_v32, %v988_v14  ;;  %v1245_v1 = vadd.f32 %v1117_v34, %v989_v28  ;;  %v1246_v4 = vadd.f32 %v1118_v35, %v990_v29 }
 0x175   : > { %5801 = vst [vmem:[#allocation52_spill] sm:$0xff] %v4889_v40  ;;  %v1348_v43 = vld [vmem:[#allocation3 + $0x284] sm:$0x1]  ;;  %v1349_v51 = vld [vmem:[#allocation3 + $0x28c] sm:$0x1]  ;;  %5802 = vst [vmem:[#allocation53_spill] sm:$0xff] %v4893_v5  ;;  %v1484_v61 = vadd.f32 %v1356_v53, %v1228_v48  ;;  %v1485_v16 = vadd.f32 %v1357_v26, %v1229_v60  ;;  %v1486_v14 = vadd.f32 %v1358_v38, %v1230_v2 }
 0x176   : > { %v1350_v6 = vld [vmem:[#allocation3 + $0x294] sm:$0x1]  ;;  %v1828_v8 = vld [vmem:[#allocation3 + $0x186] sm:$0x1]  ;;  %v1612_v58 = vld [vmem:[#allocation3 + $0x2c5] sm:$0x1]  ;;  %v1476_v22 = vadd.f32 %v1348_v43, %v1220_v33  ;;  %v1477_v18 = vadd.f32 %v1349_v51, %v1221_v42 }
 0x177   : > { %v1372_v11 = vld [vmem:[#allocation3 + $0x344] sm:$0x1]  ;;  %v1373_v59 = vld [vmem:[#allocation3 + $0x34c] sm:$0x1]  ;;  %v1374_v3 = vld [vmem:[#allocation3 + $0x354] sm:$0x1]  ;;  %v1478_v37 = vadd.f32 %v1350_v6, %v1222_v50  ;;  %v4899_v38 = vadd.f32 %v1828_v8, %v1700_v31  ;;  %v1740_v33 = vadd.f32 %v1612_v58, %v1484_v61 }
 0x178   : > { %5803 = vst [vmem:[#allocation54_spill] sm:$0xff] %v4895_v12  ;;  %v1613_v62 = vld [vmem:[#allocation3 + $0x2cd] sm:$0x1]  ;;  %v1614_v9 = vld [vmem:[#allocation3 + $0x2d5] sm:$0x1]  ;;  %v1500_v29 = vadd.f32 %v1372_v11, %v1244_v55  ;;  %v1501_v12 = vadd.f32 %v1373_v59, %v1245_v1  ;;  %v1502_v21 = vadd.f32 %v1374_v3, %v1246_v4 }
 0x179   : > { %v1604_v10 = vld [vmem:[#allocation3 + $0x285] sm:$0x1]  ;;  %v468_v13 = vld [vmem:[#allocation3 + $0x300] sm:$0x1]  ;;  %v469_v49 = vld [vmem:[#allocation3 + $0x308] sm:$0x1] }
 0x17a   : > { %v470_v7 = vld [vmem:[#allocation3 + $0x310] sm:$0x1]  ;;  %v1605_v23 = vld [vmem:[#allocation3 + $0x28d] sm:$0x1]  ;;  %v1606_v24 = vld [vmem:[#allocation3 + $0x295] sm:$0x1]  ;;  %v1732_v55 = vadd.f32 %v1604_v10, %v1476_v22 }
 0x17b   : > { %v596_v28 = vld [vmem:[#allocation3 + $0x301] sm:$0x1]  ;;  %v597_v32 = vld [vmem:[#allocation3 + $0x309] sm:$0x1]  ;;  %v598_v17 = vld [vmem:[#allocation3 + $0x311] sm:$0x1]  ;;  %v1733_v59 = vadd.f32 %v1605_v23, %v1477_v18  ;;  %v1734_v3 = vadd.f32 %v1606_v24, %v1478_v37 }
 0x17c   : > { %v724_v30 = vadd.f32 %v596_v28, %v468_v13  ;;  %v725_v19 = vadd.f32 %v597_v32, %v469_v49  ;;  %v852_v20 = vld [vmem:[#allocation3 + $0x302] sm:$0x1]  ;;  %v853_v48 = vld [vmem:[#allocation3 + $0x30a] sm:$0x1]  ;;  %v854_v34 = vld [vmem:[#allocation3 + $0x312] sm:$0x1]  ;;  %v726_v60 = vadd.f32 %v598_v17, %v470_v7  ;;  %v1741_v28 = vadd.f32 %v1613_v62, %v1485_v16 }
 0x17d   : > { %v1829_v35 = vld [vmem:[#allocation3 + $0x18e] sm:$0x1]  ;;  %v1830_v53 = vld [vmem:[#allocation3 + $0x196] sm:$0x1]  ;;  %v1628_v25 = vld [vmem:[#allocation3 + $0x345] sm:$0x1]  ;;  %v1742_v32 = vadd.f32 %v1614_v9, %v1486_v14 }
 0x17e   : > { %v1108_v2 = vld [vmem:[#allocation3 + $0x303] sm:$0x1]  ;;  %v1109_v26 = vld [vmem:[#allocation3 + $0x30b] sm:$0x1]  ;;  %v1868_v43 = vld [vmem:[#allocation3 + $0x2c6] sm:$0x1]  ;;  %v980_v6 = vadd.f32 %v852_v20, %v724_v30  ;;  %v981_v13 = vadd.f32 %v853_v48, %v725_v19  ;;  %v982_v1 = vadd.f32 %v854_v34, %v726_v60  ;;  %v1756_v19 = vadd.f32 %v1628_v25, %v1500_v29 }
 0x17f   : > { %v1869_v42 = vld [vmem:[#allocation3 + $0x2ce] sm:$0x1]  ;;  %v1629_v50 = vld [vmem:[#allocation3 + $0x34d] sm:$0x1]  ;;  %v1630_v51 = vld [vmem:[#allocation3 + $0x355] sm:$0x1]  ;;  %v1957_v22 = vadd.f32 %v1829_v35, %v4897_v39  ;;  %v1958_v23 = vadd.f32 %v1830_v53, %v1702_v15 }
 0x180   : > { %v1110_v49 = vld [vmem:[#allocation3 + $0x313] sm:$0x1]  ;;  %v1870_v5 = vld [vmem:[#allocation3 + $0x2d6] sm:$0x1]  ;;  %v1364_v4 = vld [vmem:[#allocation3 + $0x304] sm:$0x1]  ;;  %v1236_v58 = vadd.f32 %v1108_v2, %v980_v6  ;;  %v1237_v61 = vadd.f32 %v1109_v26, %v981_v13  ;;  %v1757_v20 = vadd.f32 %v1629_v50, %v1501_v12  ;;  %v1758_v62 = vadd.f32 %v1630_v51, %v1502_v21 }
 0x181   : > { %v1365_v11 = vld [vmem:[#allocation3 + $0x30c] sm:$0x1]  ;;  %v1860_v7 = vld [vmem:[#allocation3 + $0x286] sm:$0x1]  ;;  %v1861_v8 = vld [vmem:[#allocation3 + $0x28e] sm:$0x1]  ;;  %v1238_v16 = vadd.f32 %v1110_v49, %v982_v1  ;;  %v1996_v6 = vadd.f32 %v1868_v43, %v1740_v33  ;;  %v1997_v13 = vadd.f32 %v1869_v42, %v1741_v28  ;;  %v1998_v29 = vadd.f32 %v1870_v5, %v1742_v32 }
 0x182   : > { %v1862_v31 = vld [vmem:[#allocation3 + $0x296] sm:$0x1]  ;;  %v2094_v17 = vld [vmem:[#allocation3 + $0x1d7] sm:$0x1]  ;;  %v2084_v40 = vld [vmem:[#allocation3 + $0x187] sm:$0x1]  ;;  %v1492_v60 = vadd.f32 %v1364_v4, %v1236_v58  ;;  %v1493_v2 = vadd.f32 %v1365_v11, %v1237_v61  ;;  %v1988_v12 = vadd.f32 %v1860_v7, %v1732_v55  ;;  %v1989_v51 = vadd.f32 %v1861_v8, %v1733_v59 }
 0x183   : > { %v2085_v57 = vld [vmem:[#allocation3 + $0x18f] sm:$0x1]  ;;  %v2086_v30 = vld [vmem:[#allocation3 + $0x197] sm:$0x1]  ;;  %v1884_v9 = vld [vmem:[#allocation3 + $0x346] sm:$0x1]  ;;  %v1990_v49 = vadd.f32 %v1862_v31, %v1734_v3  ;;  %v4903_v32 = vadd.f32 %v2094_v17, %v4891_v41  ;;  %v4906_v55 = vadd.f32 %v2084_v40, %v4899_v38 }
 0x184   : > { %v1366_v10 = vld [vmem:[#allocation3 + $0x314] sm:$0x1]  ;;  %v1620_v14 = vld [vmem:[#allocation3 + $0x305] sm:$0x1]  ;;  %v2124_v24 = vld [vmem:[#allocation3 + $0x2c7] sm:$0x1]  ;;  %v2012_v4 = vadd.f32 %v1884_v9, %v1756_v19  ;;  %v4908_v59 = vadd.f32 %v2085_v57, %v1957_v22  ;;  %v4910_v3 = vadd.f32 %v2086_v30, %v1958_v23 }
 0x185   : > { %v2125_v18 = vld [vmem:[#allocation3 + $0x2cf] sm:$0x1]  ;;  %v2126_v37 = vld [vmem:[#allocation3 + $0x2d7] sm:$0x1]  ;;  %v1885_v48 = vld [vmem:[#allocation3 + $0x34e] sm:$0x1]  ;;  %v1494_v35 = vadd.f32 %v1366_v10, %v1238_v16  ;;  %v1748_v56 = vadd.f32 %v1620_v14, %v1492_v60 }
 0x186   : > { %v1886_v34 = vld [vmem:[#allocation3 + $0x356] sm:$0x1]  ;;  %v1621_v26 = vld [vmem:[#allocation3 + $0x30d] sm:$0x1]  ;;  %v2116_v21 = vld [vmem:[#allocation3 + $0x287] sm:$0x1]  ;;  %v2013_v11 = vadd.f32 %v1885_v48, %v1757_v20  ;;  %v4912_v20 = vadd.f32 %v2124_v24, %v1996_v6  ;;  %v4916_v9 = vadd.f32 %v2126_v37, %v1998_v29 }
 0x187   : > { %v2117_v25 = vld [vmem:[#allocation3 + $0x28f] sm:$0x1]  ;;  %v2118_v50 = vld [vmem:[#allocation3 + $0x297] sm:$0x1]  ;;  %v2140_v1 = vld [vmem:[#allocation3 + $0x347] sm:$0x1]  ;;  %v2014_v58 = vadd.f32 %v1886_v34, %v1758_v62  ;;  %v1749_v33 = vadd.f32 %v1621_v26, %v1493_v2  ;;  %v4914_v62 = vadd.f32 %v2125_v18, %v1997_v13  ;;  %v4918_v41 = vadd.f32 %v2116_v21, %v1988_v12 }
 0x188   : > { %v2141_v39 = vld [vmem:[#allocation3 + $0x34f] sm:$0x1]  ;;  %v2142_v15 = vld [vmem:[#allocation3 + $0x357] sm:$0x1]  ;;  %v1622_v53 = vld [vmem:[#allocation3 + $0x315] sm:$0x1]  ;;  %v4920_v14 = vadd.f32 %v2117_v25, %v1989_v51  ;;  %v4922_v22 = vadd.f32 %v2118_v50, %v1990_v49  ;;  %v4924_v6 = vadd.f32 %v2140_v1, %v2012_v4 }
 0x189   : > { %v1876_v47 = vld [vmem:[#allocation3 + $0x306] sm:$0x1]  ;;  %v1877_v46 = vld [vmem:[#allocation3 + $0x30e] sm:$0x1]  ;;  %v373_v43 = vld [vmem:[#allocation3 + $0x8] sm:$0x1]  ;;  %v1750_v23 = vadd.f32 %v1622_v53, %v1494_v35  ;;  %v4926_v13 = vadd.f32 %v2141_v39, %v2013_v11  ;;  %v4928_v29 = vadd.f32 %v2142_v15, %v2014_v58 }
 0x18a   : > { %v374_v5 = vld [vmem:[#allocation3 + $0x10] sm:$0x1]  ;;  %v375_v42 = vld [vmem:[#allocation3 + $0x18] sm:$0x1]  ;;  %v376_v28 = vld [vmem:[#allocation3 + $0x20] sm:$0x1]  ;;  %v2004_v24 = vadd.f32 %v1876_v47, %v1748_v56  ;;  %v2005_v12 = vadd.f32 %v1877_v46, %v1749_v33 }
 0x18b   : > { %v377_v7 = vld [vmem:[#allocation3 + $0x28] sm:$0x1]  ;;  %v378_v8 = vld [vmem:[#allocation3 + $0x30] sm:$0x1]  ;;  %v379_v31 = vld [vmem:[#allocation3 + $0x38] sm:$0x1] }
 0x18c   : > { %v381_v61 = vld [vmem:[#allocation3 + $0x48] sm:$0x1]  ;;  %v501_v19 = vld [vmem:[#allocation3 + $0x9] sm:$0x1]  ;;  %5804 = vst [vmem:[#allocation55_spill] sm:$0xff] %v4914_v62  ;;  %5805 = vst [vmem:[#allocation56_spill] sm:$0xff] %v4916_v9 }
 0x18d   : > { %5806 = vst [vmem:[#allocation57_spill] sm:$0xff] %v4918_v41  ;;  %v1878_v17 = vld [vmem:[#allocation3 + $0x316] sm:$0x1]  ;;  %v2132_v40 = vld [vmem:[#allocation3 + $0x307] sm:$0x1]  ;;  %5807 = vst [vmem:[#allocation58_spill] sm:$0xff] %v4920_v14  ;;  %v629_v56 = vadd.f32 %v501_v19, %v373_v43 }
 0x18e   : > { %v382_v38 = vld [vmem:[#allocation3 + $0x50] sm:$0x1]  ;;  %v383_v57 = vld [vmem:[#allocation3 + $0x58] sm:$0x1]  ;;  %v502_v16 = vld [vmem:[#allocation3 + $0x11] sm:$0x1]  ;;  %v2006_v46 = vadd.f32 %v1878_v17, %v1750_v23  ;;  %v4930_v33 = vadd.f32 %v2132_v40, %v2004_v24 }
 0x18f   : > { %v503_v30 = vld [vmem:[#allocation3 + $0x19] sm:$0x1]  ;;  %v504_v10 = vld [vmem:[#allocation3 + $0x21] sm:$0x1]  ;;  %5808 = vst [vmem:[#allocation59_spill] sm:$0xff] %v4922_v22  ;;  %5809 = vst [vmem:[#allocation60_spill] sm:$0xff] %v4924_v6  ;;  %v630_v35 = vadd.f32 %v502_v16, %v374_v5 }
 0x190   : > { %v384_v48 = vld [vmem:[#allocation3 + $0x60] sm:$0x1]  ;;  %v385_v18 = vld [vmem:[#allocation3 + $0x68] sm:$0x1]  ;;  %v386_v34 = vld [vmem:[#allocation3 + $0x70] sm:$0x1]  ;;  %v631_v53 = vadd.f32 %v503_v30, %v375_v42  ;;  %v632_v22 = vadd.f32 %v504_v10, %v376_v28 }
 0x191   : > { %v387_v37 = vld [vmem:[#allocation3 + $0x78] sm:$0x1]  ;;  %v505_v60 = vld [vmem:[#allocation3 + $0x29] sm:$0x1]  ;;  %v506_v2 = vld [vmem:[#allocation3 + $0x31] sm:$0x1] }
 0x192   : > { %v507_v26 = vld [vmem:[#allocation3 + $0x39] sm:$0x1]  ;;  %5810 = vst [vmem:[#allocation61_spill] sm:$0xff] %v4926_v13  ;;  %5811 = vst [vmem:[#allocation62_spill] sm:$0xff] %v4928_v29  ;;  %v509_v21 = vld [vmem:[#allocation3 + $0x49] sm:$0x1]  ;;  %v633_v1 = vadd.f32 %v505_v60, %v377_v7  ;;  %v634_v4 = vadd.f32 %v506_v2, %v378_v8 }
 0x193   : > { %v510_v25 = vld [vmem:[#allocation3 + $0x51] sm:$0x1]  ;;  %v511_v50 = vld [vmem:[#allocation3 + $0x59] sm:$0x1]  ;;  %v512_v51 = vld [vmem:[#allocation3 + $0x61] sm:$0x1]  ;;  %v635_v39 = vadd.f32 %v507_v26, %v379_v31  ;;  %v637_v11 = vadd.f32 %v509_v21, %v381_v61 }
 0x194   : > { %v513_v49 = vld [vmem:[#allocation3 + $0x69] sm:$0x1]  ;;  %v514_v47 = vld [vmem:[#allocation3 + $0x71] sm:$0x1]  ;;  %v2133_v14 = vld [vmem:[#allocation3 + $0x30f] sm:$0x1]  ;;  %v638_v29 = vadd.f32 %v510_v25, %v382_v38  ;;  %v639_v13 = vadd.f32 %v511_v50, %v383_v57  ;;  %v640_v5 = vadd.f32 %v512_v51, %v384_v48 }
 0x195   : > { %v2134_v41 = vld [vmem:[#allocation3 + $0x317] sm:$0x1]  ;;  %v515_v9 = vld [vmem:[#allocation3 + $0x79] sm:$0x1]  ;;  %v757_v15 = vld [vmem:[#allocation3 + $0xa] sm:$0x1]  ;;  %v641_v42 = vadd.f32 %v513_v49, %v385_v18  ;;  %v642_v28 = vadd.f32 %v514_v47, %v386_v34  ;;  %v4932_v18 = vadd.f32 %v2133_v14, %v2005_v12 }
 0x196   : > { %v758_v58 = vld [vmem:[#allocation3 + $0x12] sm:$0x1]  ;;  %v759_v6 = vld [vmem:[#allocation3 + $0x1a] sm:$0x1]  ;;  %v760_v62 = vld [vmem:[#allocation3 + $0x22] sm:$0x1]  ;;  %v643_v19 = vadd.f32 %v515_v9, %v387_v37  ;;  %v885_v10 = vadd.f32 %v757_v15, %v629_v56  ;;  %v4934_v9 = vadd.f32 %v2134_v41, %v2006_v46 }
 0x197   : > { %v761_v43 = vld [vmem:[#allocation3 + $0x2a] sm:$0x1]  ;;  %v762_v16 = vld [vmem:[#allocation3 + $0x32] sm:$0x1]  ;;  %v763_v30 = vld [vmem:[#allocation3 + $0x3a] sm:$0x1]  ;;  %v886_v60 = vadd.f32 %v758_v58, %v630_v35  ;;  %v887_v17 = vadd.f32 %v759_v6, %v631_v53  ;;  %v888_v40 = vadd.f32 %v760_v62, %v632_v22 }
 0x198   : > { %v765_v7 = vld [vmem:[#allocation3 + $0x4a] sm:$0x1]  ;;  %v766_v8 = vld [vmem:[#allocation3 + $0x52] sm:$0x1]  ;;  %v767_v31 = vld [vmem:[#allocation3 + $0x5a] sm:$0x1]  ;;  %v889_v24 = vadd.f32 %v761_v43, %v633_v1  ;;  %v890_v2 = vadd.f32 %v762_v16, %v634_v4  ;;  %v891_v26 = vadd.f32 %v763_v30, %v635_v39 }
 0x199   : > { %v768_v61 = vld [vmem:[#allocation3 + $0x62] sm:$0x1]  ;;  %v769_v23 = vld [vmem:[#allocation3 + $0x6a] sm:$0x1]  ;;  %v770_v38 = vld [vmem:[#allocation3 + $0x72] sm:$0x1]  ;;  %v893_v48 = vadd.f32 %v765_v7, %v637_v11  ;;  %v894_v34 = vadd.f32 %v766_v8, %v638_v29  ;;  %v895_v37 = vadd.f32 %v767_v31, %v639_v13 }
 0x19a   : > { %v771_v57 = vld [vmem:[#allocation3 + $0x7a] sm:$0x1]  ;;  %v1013_v21 = vld [vmem:[#allocation3 + $0xb] sm:$0x1]  ;;  %v1014_v25 = vld [vmem:[#allocation3 + $0x13] sm:$0x1]  ;;  %v896_v51 = vadd.f32 %v768_v61, %v640_v5  ;;  %v897_v49 = vadd.f32 %v769_v23, %v641_v42  ;;  %v898_v6 = vadd.f32 %v770_v38, %v642_v28 }
 0x19b   : > { %v1015_v50 = vld [vmem:[#allocation3 + $0x1b] sm:$0x1]  ;;  %v899_v62 = vadd.f32 %v771_v57, %v643_v19  ;;  %v1016_v22 = vld [vmem:[#allocation3 + $0x23] sm:$0x1]  ;;  %v1017_v47 = vld [vmem:[#allocation3 + $0x2b] sm:$0x1]  ;;  %v1141_v4 = vadd.f32 %v1013_v21, %v885_v10  ;;  %v1142_v14 = vadd.f32 %v1014_v25, %v886_v60 }
 0x19c   : > { %v1018_v56 = vld [vmem:[#allocation3 + $0x33] sm:$0x1]  ;;  %v1019_v35 = vld [vmem:[#allocation3 + $0x3b] sm:$0x1]  ;;  %v1021_v53 = vld [vmem:[#allocation3 + $0x4b] sm:$0x1]  ;;  %v1143_v12 = vadd.f32 %v1015_v50, %v887_v17  ;;  %v1144_v41 = vadd.f32 %v1016_v22, %v888_v40  ;;  %v4940_v58 = vadd.f32 %v1017_v47, %v889_v24 }
 0x19d   : > { %v1022_v1 = vld [vmem:[#allocation3 + $0x53] sm:$0x1]  ;;  %v1023_v29 = vld [vmem:[#allocation3 + $0x5b] sm:$0x1]  ;;  %v1024_v11 = vld [vmem:[#allocation3 + $0x63] sm:$0x1]  ;;  %v4942_v46 = vadd.f32 %v1018_v56, %v890_v2  ;;  %v4944_v43 = vadd.f32 %v1019_v35, %v891_v26  ;;  %v4946_v5 = vadd.f32 %v1021_v53, %v893_v48 }
 0x19e   : > { %v1025_v15 = vld [vmem:[#allocation3 + $0x6b] sm:$0x1]  ;;  %v1026_v30 = vld [vmem:[#allocation3 + $0x73] sm:$0x1]  ;;  %v1027_v61 = vld [vmem:[#allocation3 + $0x7b] sm:$0x1]  ;;  %v4959_v10 = vadd.f32 %v1022_v1, %v894_v34  ;;  %v4971_v24 = vadd.f32 %v1024_v11, %v896_v51 }
 0x19f   : > { %v1269_v60 = vld [vmem:[#allocation3 + $0xc] sm:$0x1]  ;;  %v4975_v2 = vadd.f32 %v1026_v30, %v898_v6  ;;  %v4977_v26 = vadd.f32 %v1027_v61, %v899_v62  ;;  %v1270_v34 = vld [vmem:[#allocation3 + $0x14] sm:$0x1]  ;;  %v1272_v6 = vld [vmem:[#allocation3 + $0x24] sm:$0x1] }
 0x1a0   : > { %v4981_v21 = vadd.f32 %v1269_v60, %v1141_v4  ;;  %v5004_v4 = vadd.f32 %v1270_v34, %v1142_v14  ;;  %v5815_v61 = vld [vmem:[#allocation46_spill] sm:$0xff]  ;;  %v5819_v34 = vld [vmem:[#allocation49_spill] sm:$0xff] }
 0x1a1   : > { %v1277_v50 = vld [vmem:[#allocation3 + $0x4c] sm:$0x1] }
 0x1a5   : > { %v4936_v39 = vpop.permute.xlu1 %2318  ;;  %v4938_v13 = vpop.permute.xlu0 %2310 }
 0x1a6   : > { %v2386_v42 = vrot.slane %v4936_v39, 1  ;;  %v2387_v28 = vrot.slane %v4936_v39, 2  ;;  %v2628_v16 = vmul.f32 %v4936_v39, %v4841_v27  ;;  %v4957_v31 = vmul.f32 %v4938_v13, %v4856_v54 }
 0x1a7   : > { %v4965_v27 = vadd.f32 %v1023_v29, %v895_v37  ;;  %v4973_v54 = vadd.f32 %v1025_v15, %v897_v49  ;;  %v1271_v37 = vld [vmem:[#allocation3 + $0x1c] sm:$0x1]  ;;  %v5010_v15 = vadd.f32 %v1272_v6, %v1144_v41 }
 0x1a8   : > { %v2629_v17 = vmul.f32 %v2386_v42, %v4843_v44  ;;  %v4963_v40 = vmul.f32 %v2387_v28, %v4845_v52  ;;  %v2788_v23 = vpack.c.bf16 %v2628_v16, %v2628_v16  ;;  %v5006_v29 = vadd.f32 %v1271_v37, %v1143_v12  ;;  %v5814_v28 = vld [vmem:[#allocation45_spill] sm:$0xff]  ;;  %v5825_v42 = vld [vmem:[#allocation51_spill] sm:$0xff] }
 0x1a9   : > { %v4967_v38 = vpop.permute.xlu1 %2322  ;;  %v4969_v57 = vpop.permute.xlu0 %2314 }
 0x1aa   : > { %v2789_v48 = vpack.c.bf16 %v2629_v17, %v2629_v17  ;;  %v2393_v44 = vrot.slane %v4967_v38, 1  ;;  %v2394_v52 = vrot.slane %v4967_v38, 2  ;;  %v4983_v25 = vunpack.c.l.b16 %v2788_v23  ;;  %v5816_v17 = vld [vmem:[#allocation47_spill] sm:$0xff] }
 0x1ab   : > { %v2636_v51 = vmul.f32 %v4967_v38, %v4858_v63  ;;  %v4998_v53 = vmul.f32 %v4969_v57, %v4864_v45 }
 0x1ac   : > { %v4989_v62 = vunpack.c.l.b16 %v2789_v48  ;;  %v2637_v22 = vmul.f32 %v2393_v44, %v4860_v0  ;;  %v4993_v47 = vmul.f32 %v2394_v52, %v4862_v36  ;;  %v5818_v44 = vld [vmem:[#allocation48_spill] sm:$0xff] }
 0x1ad   : > { %v2796_v35 = vpack.c.bf16 %v2636_v51, %v2636_v51  ;;  %v5000_v1 = vpop.permute.xlu1 %2330  ;;  %v5002_v63 = vpop.permute.xlu0 %2326 }
 0x1ae   : > { %5812 = vst [vmem:[#allocation63_spill] sm:$0xff] %v5000_v1  ;;  %5813 = vst [vmem:[#allocation64_spill] sm:$0xff] %v5002_v63  ;;  %v2797_v11 = vpack.c.bf16 %v2637_v22, %v2637_v22  ;;  %v2407_v0 = vrot.slane %v5000_v1, 1  ;;  %v2408_v36 = vrot.slane %v5000_v1, 2  ;;  %v2652_v45 = vmul.f32 %v5000_v1, %v5814_v28  ;;  %v1273_v28 = vld [vmem:[#allocation3 + $0x2c] sm:$0x1] }
 0x1af   : > { %v2400_v16 = vrot.slane %v5002_v63, 1  ;;  %v2401_v30 = vrot.slane %v5002_v63, 2  ;;  %v5017_v14 = vunpack.c.l.b16 %v2796_v35  ;;  %v2644_v52 = vmul.f32 %v5002_v63, %v5818_v44  ;;  %v5822_v35 = vld [vmem:[#allocation50_spill] sm:$0xff]  ;;  %v1782_v1 = vld [vmem:[#allocation3 + $0x16] sm:$0x1] }
 0x1b0   : > { %v5019_v12 = vunpack.c.l.b16 %v2797_v11  ;;  %v2653_v60 = vmul.f32 %v2407_v0, %v5815_v61  ;;  %v5023_v23 = vmul.f32 %v2408_v36, %v5816_v17  ;;  %v2812_v41 = vpack.c.bf16 %v2652_v45, %v2652_v45  ;;  %v1274_v45 = vld [vmem:[#allocation3 + $0x34] sm:$0x1] }
 0x1b1   : > { %v2645_v37 = vmul.f32 %v2400_v16, %v5819_v34  ;;  %v5029_v51 = vpop.permute.xlu1 %2346  ;;  %v5031_v6 = vpop.permute.xlu0 %2342  ;;  %v5034_v11 = vmul.f32 %v2401_v30, %v5822_v35  ;;  %v2804_v17 = vpack.c.bf16 %v2644_v52, %v2644_v52  ;;  %v1275_v34 = vld [vmem:[#allocation3 + $0x3c] sm:$0x1] }
 0x1b2   : > { %5817 = vst [vmem:[#allocation45_spill] sm:$0xff] %v5023_v23  ;;  %5820 = vst [vmem:[#allocation46_spill] sm:$0xff] %v5029_v51  ;;  %v2813_v22 = vpack.c.bf16 %v2653_v60, %v2653_v60  ;;  %v5038_v61 = vunpack.c.l.b16 %v2812_v41  ;;  %v5042_v16 = vmul.f32 %v5029_v51, %v5825_v42  ;;  %v5828_v35 = vld [vmem:[#allocation52_spill] sm:$0xff]  ;;  %v5061_v42 = vadd.f32 %v1273_v28, %v4940_v58  ;;  %v1278_v28 = vld [vmem:[#allocation3 + $0x54] sm:$0x1] }
 0x1b3   : > { %5821 = vst [vmem:[#allocation47_spill] sm:$0xff] %v5031_v6  ;;  %5823 = vst [vmem:[#allocation48_spill] sm:$0xff] %v5034_v11  ;;  %v2805_v44 = vpack.c.bf16 %v2645_v37, %v2645_v37  ;;  %v5050_v36 = vmul.f32 %v5031_v6, %v5828_v35  ;;  %v5052_v0 = vunpack.c.l.b16 %v2804_v17  ;;  %v5834_v35 = vld [vmem:[#allocation53_spill] sm:$0xff]  ;;  %v2041_v51 = vld [vmem:[#allocation3 + $0x2f] sm:$0x1] }
 0x1b4   : > { %5824 = vst [vmem:[#allocation49_spill] sm:$0xff] %v5038_v61  ;;  %5826 = vst [vmem:[#allocation50_spill] sm:$0xff] %v5042_v16  ;;  %v5044_v48 = vunpack.c.l.b16 %v2813_v22  ;;  %v5064_v22 = vadd.f32 %v1274_v45, %v4942_v46  ;;  %v5835_v45 = vld [vmem:[#allocation54_spill] sm:$0xff]  ;;  %v2042_v6 = vld [vmem:[#allocation3 + $0x37] sm:$0x1] }
 0x1b5   : > { %5829 = vst [vmem:[#allocation52_spill] sm:$0xff] %v5050_v36  ;;  %5830 = vst [vmem:[#allocation65_spill] sm:$0xff] %v5052_v0  ;;  %v5054_v41 = vunpack.c.l.b16 %v2805_v44  ;;  %v5056_v52 = vpop.permute.xlu1 %2338  ;;  %v5058_v37 = vpop.permute.xlu0 %2334  ;;  %v5071_v44 = vadd.f32 %v1275_v34, %v4944_v43 }
 0x1b6   : > { %5827 = vst [vmem:[#allocation51_spill] sm:$0xff] %v5044_v48  ;;  %5832 = vst [vmem:[#allocation67_spill] sm:$0xff] %v5056_v52  ;;  %v2421_v60 = vrot.slane %v5056_v52, 1  ;;  %v2422_v30 = vrot.slane %v5056_v52, 2  ;;  %v2668_v17 = vmul.f32 %v5056_v52, %v5834_v35  ;;  %v2414_v56 = vrot.slane %v5058_v37, 1 }
 0x1b7   : > { %5831 = vst [vmem:[#allocation66_spill] sm:$0xff] %v5054_v41  ;;  %5833 = vst [vmem:[#allocation68_spill] sm:$0xff] %v5058_v37  ;;  %v2415_v58 = vrot.slane %v5058_v37, 2  ;;  %v2660_v46 = vmul.f32 %v5058_v37, %v4906_v55  ;;  %v5092_v55 = vadd.f32 %v1277_v50, %v4946_v5  ;;  %v5843_v50 = vld [vmem:[#allocation55_spill] sm:$0xff]  ;;  %v1281_v37 = vld [vmem:[#allocation3 + $0x6c] sm:$0x1] }
 0x1b8   : > { %v2669_v49 = vmul.f32 %v2421_v60, %v5835_v45  ;;  %v5080_v8 = vmul.f32 %v2422_v30, %v4903_v32  ;;  %v2828_v35 = vpack.c.bf16 %v2668_v17, %v2668_v17  ;;  %v2661_v43 = vmul.f32 %v2414_v56, %v4908_v59 }
 0x1b9   : > { %v5085_v34 = vmul.f32 %v2415_v58, %v4910_v3  ;;  %v2820_v19 = vpack.c.bf16 %v2660_v46, %v2660_v46  ;;  %v5087_v52 = vpop.permute.xlu1 %2354  ;;  %v5089_v61 = vpop.permute.xlu0 %2350  ;;  %v5097_v17 = vadd.f32 %v1278_v28, %v4959_v10  ;;  %v5845_v10 = vld [vmem:[#allocation56_spill] sm:$0xff] }
 0x1ba   : > { %5836 = vst [vmem:[#allocation53_spill] sm:$0xff] %v5080_v8  ;;  %5838 = vst [vmem:[#allocation69_spill] sm:$0xff] %v5087_v52  ;;  %v2829_v60 = vpack.c.bf16 %v2669_v49, %v2669_v49  ;;  %v2449_v32 = vrot.slane %v5087_v52, 1  ;;  %v2450_v30 = vrot.slane %v5087_v52, 2  ;;  %v5099_v59 = vunpack.c.l.b16 %v2828_v35 }
 0x1bb   : > { %5837 = vst [vmem:[#allocation54_spill] sm:$0xff] %v5085_v34  ;;  %5839 = vst [vmem:[#allocation70_spill] sm:$0xff] %v5089_v61  ;;  %v2821_v3 = vpack.c.bf16 %v2661_v43, %v2661_v43  ;;  %v5101_v56 = vunpack.c.l.b16 %v2820_v19  ;;  %v2700_v58 = vmul.f32 %v5087_v52, %v4912_v20  ;;  %v2442_v45 = vrot.slane %v5089_v61, 1  ;;  %v5848_v20 = vld [vmem:[#allocation57_spill] sm:$0xff]  ;;  %v1525_v52 = vld [vmem:[#allocation3 + $0xd] sm:$0x1] }
 0x1bc   : > { %5840 = vst [vmem:[#allocation71_spill] sm:$0xff] %v5099_v59  ;;  %v5105_v46 = vunpack.c.l.b16 %v2829_v60  ;;  %v2701_v49 = vmul.f32 %v2449_v32, %v5843_v50  ;;  %v5113_v28 = vmul.f32 %v2450_v30, %v5845_v10  ;;  %v2443_v19 = vrot.slane %v5089_v61, 2  ;;  %v5852_v10 = vld [vmem:[#allocation59_spill] sm:$0xff] }
 0x1bd   : > { %5841 = vst [vmem:[#allocation72_spill] sm:$0xff] %v5101_v56  ;;  %v5110_v7 = vunpack.c.l.b16 %v2821_v3  ;;  %v2860_v35 = vpack.c.bf16 %v2700_v58, %v2700_v58  ;;  %v5116_v43 = vpop.permute.xlu1 %2362  ;;  %v2692_v60 = vmul.f32 %v5089_v61, %v5848_v20  ;;  %v5122_v50 = vpop.permute.xlu0 %2358  ;;  %v1526_v61 = vld [vmem:[#allocation3 + $0x15] sm:$0x1]  ;;  %v5859_v20 = vld [vmem:[#allocation62_spill] sm:$0xff] }
 0x1be   : > { %5842 = vst [vmem:[#allocation73_spill] sm:$0xff] %v5105_v46  ;;  %5846 = vst [vmem:[#allocation56_spill] sm:$0xff] %v5113_v28  ;;  %v2861_v59 = vpack.c.bf16 %v2701_v49, %v2701_v49  ;;  %v5849_v46 = vld [vmem:[#allocation58_spill] sm:$0xff]  ;;  %v2463_v32 = vrot.slane %v5116_v43, 1  ;;  %v5128_v58 = vmul.f32 %v2443_v19, %v5852_v10  ;;  %v2464_v56 = vrot.slane %v5116_v43, 2 }
 0x1bf   : > { %5844 = vst [vmem:[#allocation55_spill] sm:$0xff] %v5110_v7  ;;  %5847 = vst [vmem:[#allocation74_spill] sm:$0xff] %v5116_v43  ;;  %v2693_v5 = vmul.f32 %v2442_v45, %v5849_v46  ;;  %v5124_v3 = vunpack.c.l.b16 %v2860_v35  ;;  %v1279_v7 = vld [vmem:[#allocation3 + $0x5c] sm:$0x1]  ;;  %v1280_v49 = vld [vmem:[#allocation3 + $0x64] sm:$0x1]  ;;  %v2852_v8 = vpack.c.bf16 %v2692_v60, %v2692_v60 }
 0x1c0   : > { %5850 = vst [vmem:[#allocation57_spill] sm:$0xff] %v5122_v50  ;;  %5853 = vst [vmem:[#allocation59_spill] sm:$0xff] %v5128_v58  ;;  %v5854_v46 = vld [vmem:[#allocation60_spill] sm:$0xff]  ;;  %v1282_v28 = vld [vmem:[#allocation3 + $0x74] sm:$0x1]  ;;  %v5134_v35 = vunpack.c.l.b16 %v2861_v59  ;;  %v2456_v19 = vrot.slane %v5122_v50, 1  ;;  %v5144_v48 = vmul.f32 %v2464_v56, %v5859_v20  ;;  %v1407_v20 = vadd.f32 %v1279_v7, %v4965_v27 }
 0x1c1   : > { %5851 = vst [vmem:[#allocation58_spill] sm:$0xff] %v5124_v3  ;;  %v2853_v34 = vpack.c.bf16 %v2693_v5, %v2693_v5  ;;  %v2716_v45 = vmul.f32 %v5116_v43, %v5854_v46  ;;  %v5856_v3 = vld [vmem:[#allocation61_spill] sm:$0xff]  ;;  %v2457_v10 = vrot.slane %v5122_v50, 2  ;;  %v1283_v58 = vld [vmem:[#allocation3 + $0x7c] sm:$0x1]  ;;  %v5139_v60 = vunpack.c.l.b16 %v2852_v8 }
 0x1c2   : > { %5855 = vst [vmem:[#allocation60_spill] sm:$0xff] %v5134_v35  ;;  %v2717_v30 = vmul.f32 %v2463_v32, %v5856_v3  ;;  %5860 = vst [vmem:[#allocation62_spill] sm:$0xff] %v5144_v48  ;;  %v1527_v43 = vld [vmem:[#allocation3 + $0x1d] sm:$0x1]  ;;  %v1528_v59 = vld [vmem:[#allocation3 + $0x25] sm:$0x1]  ;;  %v2708_v3 = vmul.f32 %v5122_v50, %v4930_v33  ;;  %v5150_v41 = vmul.f32 %v2456_v19, %v4932_v18 }
 0x1c3   : > { %5857 = vst [vmem:[#allocation61_spill] sm:$0xff] %v5139_v60  ;;  %v5141_v5 = vunpack.c.l.b16 %v2853_v34  ;;  %v2876_v46 = vpack.c.bf16 %v2716_v45, %v2716_v45  ;;  %v1529_v35 = vld [vmem:[#allocation3 + $0x2d] sm:$0x1]  ;;  %v1530_v8 = vld [vmem:[#allocation3 + $0x35] sm:$0x1]  ;;  %v5155_v56 = vmul.f32 %v2457_v10, %v4934_v9  ;;  %v1409_v19 = vadd.f32 %v1281_v37, %v4973_v54 }
 0x1c4   : > { %v2877_v0 = vpack.c.bf16 %v2717_v30, %v2717_v30  ;;  %v1531_v60 = vld [vmem:[#allocation3 + $0x3d] sm:$0x1]  ;;  %v1533_v34 = vld [vmem:[#allocation3 + $0x4d] sm:$0x1]  ;;  %v1408_v30 = vadd.f32 %v1280_v49, %v4971_v24  ;;  %v1536_v32 = vld [vmem:[#allocation3 + $0x65] sm:$0x1]  ;;  %v2868_v18 = vpack.c.bf16 %v2708_v3, %v2708_v3  ;;  %v1410_v11 = vadd.f32 %v1282_v28, %v4975_v2 }
 0x1c5   : > { %5858 = vst [vmem:[#allocation75_spill] sm:$0xff] %v5141_v5  ;;  %v1534_v5 = vld [vmem:[#allocation3 + $0x55] sm:$0x1]  ;;  %v5152_v23 = vunpack.c.l.b16 %v2876_v46  ;;  %5862 = vst [vmem:[#allocation77_spill] sm:$0xff] %v5155_v56  ;;  %v1535_v45 = vld [vmem:[#allocation3 + $0x5d] sm:$0x1]  ;;  %v1411_v10 = vadd.f32 %v1283_v58, %v4977_v26  ;;  %v1653_v7 = vadd.f32 %v1525_v52, %v4981_v21  ;;  %v1654_v27 = vadd.f32 %v1526_v61, %v5004_v4 }
 0x1c6   : > { %v1537_v48 = vld [vmem:[#allocation3 + $0x6d] sm:$0x1]  ;;  %v1538_v33 = vld [vmem:[#allocation3 + $0x75] sm:$0x1]  ;;  %v5159_v50 = vunpack.c.l.b16 %v2877_v0  ;;  %v1539_v46 = vld [vmem:[#allocation3 + $0x7d] sm:$0x1]  ;;  %v1655_v24 = vadd.f32 %v1527_v43, %v5006_v29  ;;  %v5169_v37 = vunpack.c.l.b16 %v2868_v18  ;;  %v1656_v2 = vadd.f32 %v1528_v59, %v5010_v15 }
 0x1c7   : > { %5861 = vst [vmem:[#allocation76_spill] sm:$0xff] %v5152_v23  ;;  %v1781_v23 = vld [vmem:[#allocation3 + $0xe] sm:$0x1]  ;;  %v1783_v9 = vld [vmem:[#allocation3 + $0x1e] sm:$0x1]  ;;  %v1657_v28 = vadd.f32 %v1529_v35, %v5061_v42  ;;  %v1658_v21 = vadd.f32 %v1530_v8, %v5064_v22  ;;  %v1659_v4 = vadd.f32 %v1531_v60, %v5071_v44  ;;  %v1661_v29 = vadd.f32 %v1533_v34, %v5092_v55 }
 0x1c8   : > { %5863 = vst [vmem:[#allocation78_spill] sm:$0xff] %v5159_v50  ;;  %v1784_v49 = vld [vmem:[#allocation3 + $0x26] sm:$0x1]  ;;  %v1785_v0 = vld [vmem:[#allocation3 + $0x2e] sm:$0x1]  ;;  %5864 = vst [vmem:[#allocation79_spill] sm:$0xff] %v5169_v37  ;;  %v1662_v61 = vadd.f32 %v1534_v5, %v5097_v17  ;;  %v1663_v18 = vadd.f32 %v1535_v45, %v1407_v20  ;;  %v1664_v37 = vadd.f32 %v1536_v32, %v1408_v30 }
 0x1c9   : > { %v1786_v50 = vld [vmem:[#allocation3 + $0x36] sm:$0x1]  ;;  %v1787_v3 = vld [vmem:[#allocation3 + $0x3e] sm:$0x1]  ;;  %v1789_v26 = vld [vmem:[#allocation3 + $0x4e] sm:$0x1]  ;;  %v1665_v56 = vadd.f32 %v1537_v48, %v1409_v19  ;;  %v1666_v15 = vadd.f32 %v1538_v33, %v1410_v11  ;;  %v1667_v63 = vadd.f32 %v1539_v46, %v1411_v10  ;;  %v1909_v16 = vadd.f32 %v1781_v23, %v1653_v7 }
 0x1ca   : > { %v1790_v58 = vld [vmem:[#allocation3 + $0x56] sm:$0x1]  ;;  %v1791_v52 = vld [vmem:[#allocation3 + $0x5e] sm:$0x1]  ;;  %v1792_v43 = vld [vmem:[#allocation3 + $0x66] sm:$0x1]  ;;  %v1910_v36 = vadd.f32 %v1782_v1, %v1654_v27  ;;  %v1911_v22 = vadd.f32 %v1783_v9, %v1655_v24  ;;  %v1912_v55 = vadd.f32 %v1784_v49, %v1656_v2  ;;  %v1913_v34 = vadd.f32 %v1785_v0, %v1657_v28 }
 0x1cb   : > { %v1793_v54 = vld [vmem:[#allocation3 + $0x6e] sm:$0x1]  ;;  %v1794_v59 = vld [vmem:[#allocation3 + $0x76] sm:$0x1]  ;;  %v1795_v42 = vld [vmem:[#allocation3 + $0x7e] sm:$0x1]  ;;  %v1914_v17 = vadd.f32 %v1786_v50, %v1658_v21  ;;  %v1915_v5 = vadd.f32 %v1787_v3, %v1659_v4  ;;  %v1917_v32 = vadd.f32 %v1789_v26, %v1661_v29  ;;  %v1918_v48 = vadd.f32 %v1790_v58, %v1662_v61 }
 0x1cc   : > { %v2037_v35 = vld [vmem:[#allocation3 + $0xf] sm:$0x1]  ;;  %v2038_v8 = vld [vmem:[#allocation3 + $0x17] sm:$0x1]  ;;  %v2039_v44 = vld [vmem:[#allocation3 + $0x1f] sm:$0x1]  ;;  %v1919_v11 = vadd.f32 %v1791_v52, %v1663_v18  ;;  %v1920_v30 = vadd.f32 %v1792_v43, %v1664_v37  ;;  %v1921_v23 = vadd.f32 %v1793_v54, %v1665_v56  ;;  %v1922_v1 = vadd.f32 %v1794_v59, %v1666_v15 }
 0x1cd   : > { %v2040_v60 = vld [vmem:[#allocation3 + $0x27] sm:$0x1]  ;;  %v2043_v20 = vld [vmem:[#allocation3 + $0x3f] sm:$0x1]  ;;  %v2045_v45 = vld [vmem:[#allocation3 + $0x4f] sm:$0x1]  ;;  %v1923_v46 = vadd.f32 %v1795_v42, %v1667_v63  ;;  %v2165_v27 = vadd.f32 %v2037_v35, %v1909_v16  ;;  %v2166_v50 = vadd.f32 %v2038_v8, %v1910_v36  ;;  %v2167_v49 = vadd.f32 %v2039_v44, %v1911_v22 }
 0x1ce   : > { %v2046_v33 = vld [vmem:[#allocation3 + $0x57] sm:$0x1]  ;;  %v2047_v19 = vld [vmem:[#allocation3 + $0x5f] sm:$0x1]  ;;  %v2048_v9 = vld [vmem:[#allocation3 + $0x67] sm:$0x1]  ;;  %v2168_v0 = vadd.f32 %v2040_v60, %v1912_v55  ;;  %v2169_v2 = vadd.f32 %v2041_v51, %v1913_v34  ;;  %v2170_v28 = vadd.f32 %v2042_v6, %v1914_v17  ;;  %v2171_v3 = vadd.f32 %v2043_v20, %v1915_v5 }
 0x1cf   : > { %v2049_v10 = vld [vmem:[#allocation3 + $0x6f] sm:$0x1]  ;;  %v2050_v7 = vld [vmem:[#allocation3 + $0x77] sm:$0x1]  ;;  %v2051_v24 = vld [vmem:[#allocation3 + $0x7f] sm:$0x1]  ;;  %v2173_v26 = vadd.f32 %v2045_v45, %v1917_v32  ;;  %v2174_v58 = vadd.f32 %v2046_v33, %v1918_v48  ;;  %v2175_v37 = vadd.f32 %v2047_v19, %v1919_v11  ;;  %v2176_v21 = vadd.f32 %v2048_v9, %v1920_v30 }
 0x1d0   : > { %v2177_v4 = vadd.f32 %v2049_v10, %v1921_v23  ;;  %v2178_v29 = vadd.f32 %v2050_v7, %v1922_v1  ;;  %v2179_v56 = vadd.f32 %v2051_v24, %v1923_v46  ;;  %v2374_v63 = vrot.slane %v4938_v13, 3 }
 0x1d1   : > { %v2375_v54 = vrot.slane %v4938_v13, 4  ;;  %v2376_v16 = vrot.slane %v4938_v13, 5  ;;  %v2377_v36 = vrot.slane %v4938_v13, 6  ;;  %v2378_v61 = vrot.slane %v4938_v13, 7 }
 0x1d2   : > { %v2381_v51 = vrot.slane %v4969_v57, 3  ;;  %v2382_v6 = vrot.slane %v4969_v57, 4  ;;  %v2383_v52 = vrot.slane %v4969_v57, 5  ;;  %v2384_v43 = vrot.slane %v4969_v57, 6 }
 0x1d3   : > { %v2385_v18 = vrot.slane %v4969_v57, 7  ;;  %v5865_v15 = vrot.slane %v4938_v13, 1  ;;  %v5866_v42 = vrot.slane %v4938_v13, 2  ;;  %v2615_v22 = vmul.f32 %v2374_v63, %v2167_v49 }
 0x1d4   : > { %v2616_v8 = vmul.f32 %v2375_v54, %v2168_v0  ;;  %v2617_v44 = vmul.f32 %v2376_v16, %v2169_v2  ;;  %v2618_v60 = vmul.f32 %v2377_v36, %v2170_v28  ;;  %v2619_v55 = vmul.f32 %v2378_v61, %v2171_v3 }
 0x1d5   : > { %v2613_v59 = vmul.f32 %v5865_v15, %v2165_v27  ;;  %v2614_v35 = vmul.f32 %v5866_v42, %v2166_v50  ;;  %v5867_v34 = vrot.slane %v4969_v57, 1  ;;  %v5868_v5 = vrot.slane %v4969_v57, 2  ;;  %v391_v42 = vld [vmem:[#allocation3 + $0x98] sm:$0x1] }
 0x1d6   : > { %v2623_v32 = vmul.f32 %v2381_v51, %v2175_v37  ;;  %v2624_v48 = vmul.f32 %v2382_v6, %v2176_v21  ;;  %v2625_v11 = vmul.f32 %v2383_v52, %v2177_v4  ;;  %v2626_v30 = vmul.f32 %v2384_v43, %v2178_v29  ;;  %v5209_v43 = vld [vmem:[#allocation2] sm:$0xff] }
 0x1d7   : > { %v2621_v17 = vmul.f32 %v5867_v34, %v2173_v26  ;;  %v2622_v20 = vmul.f32 %v5868_v5, %v2174_v58  ;;  %v2627_v45 = vmul.f32 %v2385_v18, %v2179_v56  ;;  %v2772_v13 = vpack.c.bf16 %v4957_v31, %v4957_v31  ;;  %v5214_v34 = vld [vmem:[#allocation2 + $0x8] sm:$0xff]  ;;  %v394_v5 = vld [vmem:[#allocation3 + $0xb0] sm:$0x1] }
 0x1d8   : > { %v2773_v33 = vpack.c.bf16 %v2613_v59, %v2613_v59  ;;  %v2774_v19 = vpack.c.bf16 %v2614_v35, %v2614_v35  ;;  %v2775_v23 = vpack.c.bf16 %v2615_v22, %v2615_v22  ;;  %v2776_v1 = vpack.c.bf16 %v2616_v8, %v2616_v8  ;;  %v392_v35 = vld [vmem:[#allocation3 + $0xa0] sm:$0x1]  ;;  %v519_v22 = vld [vmem:[#allocation3 + $0x99] sm:$0x1]  ;;  %v520_v8 = vld [vmem:[#allocation3 + $0xa1] sm:$0x1] }
 0x1d9   : > { %v2777_v46 = vpack.c.bf16 %v2617_v44, %v2617_v44  ;;  %v2778_v9 = vpack.c.bf16 %v2618_v60, %v2618_v60  ;;  %v2779_v10 = vpack.c.bf16 %v2619_v55, %v2619_v55  ;;  %v2780_v57 = vpack.c.bf16 %v4998_v53, %v4998_v53 }
 0x1da   : > { %v2781_v7 = vpack.c.bf16 %v2621_v17, %v2621_v17  ;;  %v2782_v27 = vpack.c.bf16 %v2622_v20, %v2622_v20  ;;  %v2783_v24 = vpack.c.bf16 %v2623_v32, %v2623_v32  ;;  %v2784_v50 = vpack.c.bf16 %v2624_v48, %v2624_v48  ;;  %v393_v17 = vld [vmem:[#allocation3 + $0xa8] sm:$0x1]  ;;  %v521_v20 = vld [vmem:[#allocation3 + $0xa9] sm:$0x1]  ;;  %v522_v32 = vld [vmem:[#allocation3 + $0xb1] sm:$0x1] }
 0x1db   : > { %v2785_v49 = vpack.c.bf16 %v2625_v11, %v2625_v11  ;;  %v2786_v0 = vpack.c.bf16 %v2626_v30, %v2626_v30  ;;  %v2787_v31 = vpack.c.bf16 %v2627_v45, %v2627_v45  ;;  %v3028_v2 = vunpack.c.l.b16 %v2772_v13  ;;  %v395_v13 = vld [vmem:[#allocation3 + $0xb8] sm:$0x1] }
 0x1dc   : > { %v3029_v28 = vunpack.c.l.b16 %v2773_v33  ;;  %v3030_v3 = vunpack.c.l.b16 %v2774_v19  ;;  %v3031_v26 = vunpack.c.l.b16 %v2775_v23  ;;  %v3032_v58 = vunpack.c.l.b16 %v2776_v1  ;;  %v399_v33 = vld [vmem:[#allocation3 + $0xd8] sm:$0x1]  ;;  %v523_v19 = vld [vmem:[#allocation3 + $0xb9] sm:$0x1] }
 0x1dd   : > { %v3033_v37 = vunpack.c.l.b16 %v2777_v46  ;;  %v5199_v21 = vunpack.c.l.b16 %v2778_v9  ;;  %v5201_v4 = vunpack.c.l.b16 %v2779_v10  ;;  %v3036_v53 = vunpack.c.l.b16 %v2780_v57  ;;  %v527_v23 = vld [vmem:[#allocation3 + $0xd9] sm:$0x1]  ;;  %v400_v57 = vld [vmem:[#allocation3 + $0xe0] sm:$0x1] }
 0x1de   : > { %v3037_v29 = vunpack.c.l.b16 %v2781_v7  ;;  %v3038_v56 = vunpack.c.l.b16 %v2782_v27  ;;  %v3039_v63 = vunpack.c.l.b16 %v2783_v24  ;;  %v3040_v54 = vunpack.c.l.b16 %v2784_v50  ;;  %v401_v7 = vld [vmem:[#allocation3 + $0xe8] sm:$0x1]  ;;  %v402_v27 = vld [vmem:[#allocation3 + $0xf0] sm:$0x1]  ;;  %v528_v24 = vld [vmem:[#allocation3 + $0xe1] sm:$0x1] }
 0x1df   : > { %v5203_v16 = vunpack.c.l.b16 %v2785_v49  ;;  %v5205_v36 = vunpack.c.l.b16 %v2786_v0  ;;  %v5207_v61 = vunpack.c.l.b16 %v2787_v31  ;;  %v3156_v51 = vrot.slane %v3029_v28, 7  ;;  %v529_v50 = vld [vmem:[#allocation3 + $0xe9] sm:$0x1]  ;;  %v530_v49 = vld [vmem:[#allocation3 + $0xf1] sm:$0x1] }
 0x1e0   : > { %v3159_v6 = vrot.slane %v3030_v3, 6  ;;  %v3162_v52 = vrot.slane %v3031_v26, 5  ;;  %v3165_v18 = vrot.slane %v3032_v58, 4  ;;  %v3168_v15 = vrot.slane %v3033_v37, 3  ;;  %v403_v3 = vld [vmem:[#allocation3 + $0xf8] sm:$0x1] }
 0x1e1   : > { %v3171_v59 = vrot.slane %v5199_v21, 2  ;;  %v3158_v44 = vsel %vm3157_vm0, %v3156_v51, %v3028_v2  ;;  %v3174_v60 = vrot.slane %v5201_v4, 1  ;;  %v3177_v55 = vrot.slane %v3037_v29, 7  ;;  %v531_v26 = vld [vmem:[#allocation3 + $0xf9] sm:$0x1] }
 0x1e2   : > { %v3161_v48 = vsel %vm3160_vm1, %v3159_v6, %v3158_v44  ;;  %v3179_v11 = vrot.slane %v3038_v56, 6  ;;  %v3181_v30 = vrot.slane %v3039_v63, 5  ;;  %v3183_v45 = vrot.slane %v3040_v54, 4  ;;  %v775_v58 = vld [vmem:[#allocation3 + $0x9a] sm:$0x1] }
 0x1e3   : > { %v3164_v1 = vsel %vm3163_vm2, %v3162_v52, %v3161_v48  ;;  %v3178_v46 = vsel %vm3157_vm0, %v3177_v55, %v3036_v53  ;;  %v3185_v9 = vrot.slane %v5203_v16, 3  ;;  %v3187_v10 = vrot.slane %v5205_v36, 2  ;;  %v776_v37 = vld [vmem:[#allocation3 + $0xa2] sm:$0x1]  ;;  %v777_v56 = vld [vmem:[#allocation3 + $0xaa] sm:$0x1] }
 0x1e4   : > { %v3167_v0 = vsel %vm3166_vm3, %v3165_v18, %v3164_v1  ;;  %v3180_v31 = vsel %vm3160_vm1, %v3179_v11, %v3178_v46  ;;  %v3189_v2 = vrot.slane %v5207_v61, 1  ;;  %v2756_v28 = vpack.c.bf16 %v5214_v34, %v5209_v43  ;;  %v778_v63 = vld [vmem:[#allocation3 + $0xb2] sm:$0x1]  ;;  %v779_v54 = vld [vmem:[#allocation3 + $0xba] sm:$0x1] }
 0x1e5   : > { %v3170_v21 = vsel %vm3169_vm4, %v3168_v15, %v3167_v0  ;;  %v3182_v4 = vsel %vm3163_vm2, %v3181_v30, %v3180_v31  ;;  %v647_v53 = vadd.f32 %v519_v22, %v391_v42  ;;  %v648_v29 = vadd.f32 %v520_v8, %v392_v35  ;;  %v783_v6 = vld [vmem:[#allocation3 + $0xda] sm:$0x1]  ;;  %v784_v52 = vld [vmem:[#allocation3 + $0xe2] sm:$0x1]  ;;  %v785_v18 = vld [vmem:[#allocation3 + $0xea] sm:$0x1] }
 0x1e6   : > { %v3173_v16 = vsel %vm3172_vm5, %v3171_v59, %v3170_v21  ;;  %v3184_v36 = vsel %vm3166_vm3, %v3183_v45, %v3182_v4  ;;  %v649_v61 = vadd.f32 %v521_v20, %v393_v17  ;;  %v650_v51 = vadd.f32 %v522_v32, %v394_v5  ;;  %v786_v44 = vld [vmem:[#allocation3 + $0xf2] sm:$0x1]  ;;  %v787_v35 = vld [vmem:[#allocation3 + $0xfa] sm:$0x1]  ;;  %v1031_v22 = vld [vmem:[#allocation3 + $0x9b] sm:$0x1] }
 0x1e7   : > { %v3176_v55 = vsel %vm3175_vm6, %v3174_v60, %v3173_v16  ;;  %v3186_v15 = vsel %vm3169_vm4, %v3185_v9, %v3184_v36  ;;  %v651_v48 = vadd.f32 %v523_v19, %v395_v13  ;;  %v655_v42 = vadd.f32 %v527_v23, %v399_v33  ;;  %v1032_v8 = vld [vmem:[#allocation3 + $0xa3] sm:$0x1]  ;;  %v1033_v11 = vld [vmem:[#allocation3 + $0xab] sm:$0x1]  ;;  %v1034_v5 = vld [vmem:[#allocation3 + $0xb3] sm:$0x1] }
 0x1e8   : > { %v3188_v59 = vsel %vm3172_vm5, %v3187_v10, %v3186_v15  ;;  %v656_v30 = vadd.f32 %v528_v24, %v400_v57  ;;  %v657_v45 = vadd.f32 %v529_v50, %v401_v7  ;;  %v658_v17 = vadd.f32 %v530_v49, %v402_v27  ;;  %v1035_v20 = vld [vmem:[#allocation3 + $0xbb] sm:$0x1]  ;;  %v1040_v1 = vld [vmem:[#allocation3 + $0xe3] sm:$0x1]  ;;  %v1041_v13 = vld [vmem:[#allocation3 + $0xeb] sm:$0x1] }
 0x1e9   : > { %v1039_v32 = vld [vmem:[#allocation3 + $0xdb] sm:$0x1]  ;;  %v3190_v46 = vsel %vm3175_vm6, %v3189_v2, %v3188_v59  ;;  %v659_v60 = vadd.f32 %v531_v26, %v403_v3  ;;  %v903_v0 = vadd.f32 %v775_v58, %v647_v53  ;;  %v904_v9 = vadd.f32 %v776_v37, %v648_v29  ;;  %v1042_v33 = vld [vmem:[#allocation3 + $0xf3] sm:$0x1]  ;;  %v1287_v23 = vld [vmem:[#allocation3 + $0x9c] sm:$0x1] }
 0x1ea   : > { %v1043_v19 = vld [vmem:[#allocation3 + $0xfb] sm:$0x1]  ;;  %v3387_v31 = vpack.c.b16 %v3190_v46, %v3176_v55  ;;  %v905_v21 = vadd.f32 %v777_v56, %v649_v61  ;;  %v906_v4 = vadd.f32 %v778_v63, %v650_v51  ;;  %v907_v10 = vadd.f32 %v779_v54, %v651_v48  ;;  %v1288_v57 = vld [vmem:[#allocation3 + $0xa4] sm:$0x1]  ;;  %v1289_v7 = vld [vmem:[#allocation3 + $0xac] sm:$0x1] }
 0x1eb   : > { %v1290_v27 = vld [vmem:[#allocation3 + $0xb4] sm:$0x1]  ;;  %v1291_v24 = vld [vmem:[#allocation3 + $0xbc] sm:$0x1]  ;;  %v911_v50 = vadd.f32 %v783_v6, %v655_v42  ;;  %v912_v49 = vadd.f32 %v784_v52, %v656_v30  ;;  %v913_v16 = vadd.f32 %v785_v18, %v657_v45  ;;  %v914_v36 = vadd.f32 %v786_v44, %v658_v17  ;;  %v1296_v3 = vld [vmem:[#allocation3 + $0xe4] sm:$0x1] }
 0x1ec   : > { %v1295_v2 = vld [vmem:[#allocation3 + $0xdc] sm:$0x1]  ;;  %v1297_v26 = vld [vmem:[#allocation3 + $0xec] sm:$0x1]  ;;  %v1298_v58 = vld [vmem:[#allocation3 + $0xf4] sm:$0x1]  ;;  %3587 = vmatprep.mubr.bf16.mxu0 %v3387_v31  ;;  %v915_v37 = vadd.f32 %v787_v35, %v659_v60  ;;  %v1159_v53 = vadd.f32 %v1031_v22, %v903_v0  ;;  %v1160_v29 = vadd.f32 %v1032_v8, %v904_v9  ;;  %v1161_v55 = vadd.f32 %v1033_v11, %v905_v21 }
 0x1ed   : > { %v1299_v56 = vld [vmem:[#allocation3 + $0xfc] sm:$0x1]  ;;  %v1543_v63 = vld [vmem:[#allocation3 + $0x9d] sm:$0x1]  ;;  %v1544_v54 = vld [vmem:[#allocation3 + $0xa5] sm:$0x1]  ;;  %3588 = vmatmul.mubr.bf16.vlgmr.msra.gmra.mrb[0].mxu0 %v2756_v28  ;;  %v1162_v51 = vadd.f32 %v1034_v5, %v906_v4  ;;  %v1163_v6 = vadd.f32 %v1035_v20, %v907_v10  ;;  %v1167_v52 = vadd.f32 %v1039_v32, %v911_v50  ;;  %v1168_v18 = vadd.f32 %v1040_v1, %v912_v49 }
 0x1ee   : > { %v1545_v61 = vld [vmem:[#allocation3 + $0xad] sm:$0x1]  ;;  %v1546_v44 = vld [vmem:[#allocation3 + $0xb5] sm:$0x1]  ;;  %v1547_v15 = vld [vmem:[#allocation3 + $0xbd] sm:$0x1]  ;;  %v1169_v42 = vadd.f32 %v1041_v13, %v913_v16  ;;  %v1170_v35 = vadd.f32 %v1042_v33, %v914_v36  ;;  %v1171_v22 = vadd.f32 %v1043_v19, %v915_v37  ;;  %v1415_v8 = vadd.f32 %v1287_v23, %v1159_v53 }
 0x1ef   : > { %v1551_v48 = vld [vmem:[#allocation3 + $0xdd] sm:$0x1]  ;;  %v1552_v11 = vld [vmem:[#allocation3 + $0xe5] sm:$0x1]  ;;  %v1553_v59 = vld [vmem:[#allocation3 + $0xed] sm:$0x1]  ;;  %v1416_v45 = vadd.f32 %v1288_v57, %v1160_v29  ;;  %v1417_v17 = vadd.f32 %v1289_v7, %v1161_v55  ;;  %v1418_v46 = vadd.f32 %v1290_v27, %v1162_v51  ;;  %v1419_v60 = vadd.f32 %v1291_v24, %v1163_v6 }
 0x1f0   : > { %v1554_v30 = vld [vmem:[#allocation3 + $0xf5] sm:$0x1]  ;;  %v1555_v43 = vld [vmem:[#allocation3 + $0xfd] sm:$0x1]  ;;  %v1799_v34 = vld [vmem:[#allocation3 + $0x9e] sm:$0x1]  ;;  %v1423_v5 = vadd.f32 %v1295_v2, %v1167_v52  ;;  %v1424_v20 = vadd.f32 %v1296_v3, %v1168_v18  ;;  %v1425_v32 = vadd.f32 %v1297_v26, %v1169_v42  ;;  %v1426_v1 = vadd.f32 %v1298_v58, %v1170_v35 }
 0x1f1   : > { %v1800_v28 = vld [vmem:[#allocation3 + $0xa6] sm:$0x1]  ;;  %v1801_v0 = vld [vmem:[#allocation3 + $0xae] sm:$0x1]  ;;  %v1802_v9 = vld [vmem:[#allocation3 + $0xb6] sm:$0x1]  ;;  %v1427_v33 = vadd.f32 %v1299_v56, %v1171_v22  ;;  %v1671_v19 = vadd.f32 %v1543_v63, %v1415_v8  ;;  %v1672_v23 = vadd.f32 %v1544_v54, %v1416_v45  ;;  %v1673_v31 = vadd.f32 %v1545_v61, %v1417_v17 }
 0x1f2   : > { %v1803_v13 = vld [vmem:[#allocation3 + $0xbe] sm:$0x1]  ;;  %v1808_v4 = vld [vmem:[#allocation3 + $0xe6] sm:$0x1]  ;;  %v1809_v10 = vld [vmem:[#allocation3 + $0xee] sm:$0x1]  ;;  %v1674_v57 = vadd.f32 %v1546_v44, %v1418_v46  ;;  %v1675_v7 = vadd.f32 %v1547_v15, %v1419_v60  ;;  %v1679_v27 = vadd.f32 %v1551_v48, %v1423_v5  ;;  %v1680_v24 = vadd.f32 %v1552_v11, %v1424_v20 }
 0x1f3   : > { %v1807_v21 = vld [vmem:[#allocation3 + $0xde] sm:$0x1]  ;;  %v1810_v50 = vld [vmem:[#allocation3 + $0xf6] sm:$0x1]  ;;  %v2055_v16 = vld [vmem:[#allocation3 + $0x9f] sm:$0x1]  ;;  %v1681_v36 = vadd.f32 %v1553_v59, %v1425_v32  ;;  %v1682_v2 = vadd.f32 %v1554_v30, %v1426_v1  ;;  %v1683_v3 = vadd.f32 %v1555_v43, %v1427_v33  ;;  %v1927_v26 = vadd.f32 %v1799_v34, %v1671_v19 }
 0x1f4   : > { %v1811_v49 = vld [vmem:[#allocation3 + $0xfe] sm:$0x1]  ;;  %v2056_v58 = vld [vmem:[#allocation3 + $0xa7] sm:$0x1]  ;;  %v2057_v37 = vld [vmem:[#allocation3 + $0xaf] sm:$0x1]  ;;  %v1928_v29 = vadd.f32 %v1800_v28, %v1672_v23  ;;  %v1929_v55 = vadd.f32 %v1801_v0, %v1673_v31  ;;  %v1930_v56 = vadd.f32 %v1802_v9, %v1674_v57  ;;  %v1931_v63 = vadd.f32 %v1803_v13, %v1675_v7 }
 0x1f5   : > { %v2058_v53 = vld [vmem:[#allocation3 + $0xb7] sm:$0x1]  ;;  %v2059_v54 = vld [vmem:[#allocation3 + $0xbf] sm:$0x1]  ;;  %v2064_v51 = vld [vmem:[#allocation3 + $0xe7] sm:$0x1]  ;;  %v1935_v6 = vadd.f32 %v1807_v21, %v1679_v27  ;;  %v1936_v52 = vadd.f32 %v1808_v4, %v1680_v24  ;;  %v1937_v18 = vadd.f32 %v1809_v10, %v1681_v36  ;;  %v1938_v44 = vadd.f32 %v1810_v50, %v1682_v2 }
 0x1f6   : > { %v2063_v61 = vld [vmem:[#allocation3 + $0xdf] sm:$0x1]  ;;  %v2065_v15 = vld [vmem:[#allocation3 + $0xef] sm:$0x1]  ;;  %v2066_v48 = vld [vmem:[#allocation3 + $0xf7] sm:$0x1]  ;;  %v1939_v35 = vadd.f32 %v1811_v49, %v1683_v3  ;;  %v2183_v22 = vadd.f32 %v2055_v16, %v1927_v26  ;;  %v2184_v8 = vadd.f32 %v2056_v58, %v1928_v29  ;;  %v2185_v11 = vadd.f32 %v2057_v37, %v1929_v55 }
 0x1f7   : > { %v2067_v42 = vld [vmem:[#allocation3 + $0xff] sm:$0x1]  ;;  %v2186_v59 = vadd.f32 %v2058_v53, %v1930_v56  ;;  %v2187_v30 = vadd.f32 %v2059_v54, %v1931_v63  ;;  %v2191_v45 = vadd.f32 %v2063_v61, %v1935_v6  ;;  %v2192_v17 = vadd.f32 %v2064_v51, %v1936_v52 }
 0x1f8   : > { %v2193_v46 = vadd.f32 %v2065_v15, %v1937_v18  ;;  %v2194_v60 = vadd.f32 %v2066_v48, %v1938_v44  ;;  %v2195_v43 = vadd.f32 %v2067_v42, %v1939_v35  ;;  %v2389_v34 = vrot.slane %v4936_v39, 4  ;;  %v492_v44 = vld [vmem:[#allocation3 + $0x3c0] sm:$0x1]  ;;  %v620_v15 = vld [vmem:[#allocation3 + $0x3c1] sm:$0x1] }
 0x1f9   : > { %v2390_v28 = vrot.slane %v4936_v39, 5  ;;  %v2391_v5 = vrot.slane %v4936_v39, 6  ;;  %v2392_v20 = vrot.slane %v4936_v39, 7  ;;  %v2396_v32 = vrot.slane %v4967_v38, 4 }
 0x1fa   : > { %v2397_v1 = vrot.slane %v4967_v38, 5  ;;  %v2398_v0 = vrot.slane %v4967_v38, 6  ;;  %v2399_v9 = vrot.slane %v4967_v38, 7  ;;  %v5869_v13 = vrot.slane %v4936_v39, 3 }
 0x1fb   : > { %v2632_v19 = vmul.f32 %v2389_v34, %v2184_v8  ;;  %v2633_v23 = vmul.f32 %v2390_v28, %v2185_v11  ;;  %v2634_v31 = vmul.f32 %v2391_v5, %v2186_v59  ;;  %v2635_v21 = vmul.f32 %v2392_v20, %v2187_v30  ;;  %v493_v8 = vld [vmem:[#allocation3 + $0x3c8] sm:$0x1]  ;;  %v494_v11 = vld [vmem:[#allocation3 + $0x3d0] sm:$0x1]  ;;  %v622_v59 = vld [vmem:[#allocation3 + $0x3d1] sm:$0x1] }
 0x1fc   : > { %v2631_v33 = vmul.f32 %v5869_v13, %v2183_v22  ;;  %v5870_v4 = vrot.slane %v4967_v38, 3  ;;  %v2640_v57 = vmul.f32 %v2396_v32, %v2192_v17  ;;  %v2641_v7 = vmul.f32 %v2397_v1, %v2193_v46  ;;  %v623_v34 = vld [vmem:[#allocation3 + $0x3d9] sm:$0x1]  ;;  %v624_v28 = vld [vmem:[#allocation3 + $0x3e1] sm:$0x1] }
 0x1fd   : > { %v2642_v27 = vmul.f32 %v2398_v0, %v2194_v60  ;;  %v2643_v24 = vmul.f32 %v2399_v9, %v2195_v43  ;;  %v2790_v50 = vpack.c.bf16 %v4963_v40, %v4963_v40  ;;  %v2792_v16 = vpack.c.bf16 %v2632_v19, %v2632_v19  ;;  %v495_v60 = vld [vmem:[#allocation3 + $0x3d8] sm:$0x1]  ;;  %v496_v43 = vld [vmem:[#allocation3 + $0x3e0] sm:$0x1]  ;;  %v876_v1 = vld [vmem:[#allocation3 + $0x3c2] sm:$0x1] }
 0x1fe   : > { %v2639_v10 = vmul.f32 %v5870_v4, %v2191_v45  ;;  %v2791_v49 = vpack.c.bf16 %v2631_v33, %v2631_v33  ;;  %v2793_v36 = vpack.c.bf16 %v2633_v23, %v2633_v23  ;;  %v2794_v2 = vpack.c.bf16 %v2634_v31, %v2634_v31  ;;  %v877_v0 = vld [vmem:[#allocation3 + $0x3ca] sm:$0x1]  ;;  %v878_v23 = vld [vmem:[#allocation3 + $0x3d2] sm:$0x1] }
 0x1ff   : > { %v2795_v39 = vpack.c.bf16 %v2635_v21, %v2635_v21  ;;  %v2798_v3 = vpack.c.bf16 %v4993_v47, %v4993_v47  ;;  %v2800_v58 = vpack.c.bf16 %v2640_v57, %v2640_v57  ;;  %v2801_v37 = vpack.c.bf16 %v2641_v7, %v2641_v7 }
 0x200   : > { %v2799_v26 = vpack.c.bf16 %v2639_v10, %v2639_v10  ;;  %v2802_v38 = vpack.c.bf16 %v2642_v27, %v2642_v27  ;;  %v2803_v53 = vpack.c.bf16 %v2643_v24, %v2643_v24  ;;  %v3046_v29 = vunpack.c.l.b16 %v2790_v50  ;;  %v879_v10 = vld [vmem:[#allocation3 + $0x3da] sm:$0x1]  ;;  %v1132_v50 = vld [vmem:[#allocation3 + $0x3c3] sm:$0x1] }
 0x201   : > { %v3047_v55 = vunpack.c.l.b16 %v2791_v49  ;;  %v3048_v56 = vunpack.c.l.b16 %v2792_v16  ;;  %v5871_v63 = vpack.c.bf16 %v5150_v41, %v5150_v41  ;;  %v3049_v54 = vunpack.c.l.b16 %v2793_v36  ;;  %v621_v41 = vld [vmem:[#allocation3 + $0x3c9] sm:$0x1]  ;;  %v1133_v49 = vld [vmem:[#allocation3 + $0x3cb] sm:$0x1]  ;;  %v1134_v16 = vld [vmem:[#allocation3 + $0x3d3] sm:$0x1] }
 0x202   : > { %v3050_v61 = vunpack.c.l.b16 %v2794_v2  ;;  %v3054_v51 = vunpack.c.l.b16 %v2798_v3  ;;  %v5258_v6 = vunpack.c.l.b16 %v2795_v39  ;;  %v3055_v52 = vunpack.c.l.b16 %v2799_v26  ;;  %v1136_v26 = vld [vmem:[#allocation3 + $0x3e3] sm:$0x1] }
 0x203   : > { %v5256_v40 = vunpack.c.l.b16 %v5871_v63  ;;  %v3056_v47 = vunpack.c.l.b16 %v2800_v58  ;;  %v3057_v18 = vunpack.c.l.b16 %v2801_v37  ;;  %v3058_v48 = vunpack.c.l.b16 %v2802_v38  ;;  %v1388_v58 = vld [vmem:[#allocation3 + $0x3c4] sm:$0x1]  ;;  %v1391_v63 = vld [vmem:[#allocation3 + $0x3dc] sm:$0x1] }
 0x204   : > { %v3191_v42 = vrot.slane %v4989_v62, 7  ;;  %v3193_v35 = vrot.slane %v3046_v29, 6  ;;  %v3195_v22 = vrot.slane %v3047_v55, 5  ;;  %v5261_v30 = vunpack.c.l.b16 %v2803_v53  ;;  %v1389_v55 = vld [vmem:[#allocation3 + $0x3cc] sm:$0x1] }
 0x205   : > { %v3197_v45 = vrot.slane %v3048_v56, 4  ;;  %v3199_v17 = vrot.slane %v3049_v54, 3  ;;  %v3201_v46 = vrot.slane %v3050_v61, 2  ;;  %v3205_v62 = vrot.slane %v5019_v12, 7  ;;  %v880_v12 = vld [vmem:[#allocation3 + $0x3e2] sm:$0x1] }
 0x206   : > { %v3192_v5 = vsel %vm3157_vm0, %v3191_v42, %v4983_v25  ;;  %v3207_v20 = vrot.slane %v3054_v51, 6  ;;  %v3209_v32 = vrot.slane %v3055_v52, 5  ;;  %v3203_v13 = vrot.slane %v5258_v6, 1  ;;  %v1390_v56 = vld [vmem:[#allocation3 + $0x3d4] sm:$0x1] }
 0x207   : > { %v3194_v9 = vsel %vm3160_vm1, %v3193_v35, %v3192_v5  ;;  %v3211_v33 = vrot.slane %v3056_v47, 4  ;;  %v3213_v19 = vrot.slane %v3057_v18, 3  ;;  %v3206_v21 = vsel %vm3157_vm0, %v3205_v62, %v5017_v14  ;;  %v1135_v14 = vld [vmem:[#allocation3 + $0x3db] sm:$0x1]  ;;  %v1392_v52 = vld [vmem:[#allocation3 + $0x3e4] sm:$0x1] }
 0x208   : > { %v3196_v31 = vsel %vm3163_vm2, %v3195_v22, %v3194_v9  ;;  %v3215_v4 = vrot.slane %v3058_v48, 2  ;;  %v748_v25 = vadd.f32 %v620_v15, %v492_v44  ;;  %v3208_v7 = vsel %vm3160_vm1, %v3207_v20, %v3206_v21  ;;  %v1644_v47 = vld [vmem:[#allocation3 + $0x3c5] sm:$0x1]  ;;  %v5280_v44 = vpop.permute.xlu1 %2370  ;;  %v1645_v35 = vld [vmem:[#allocation3 + $0x3cd] sm:$0x1] }
 0x209   : > { %v3198_v57 = vsel %vm3166_vm3, %v3197_v45, %v3196_v31  ;;  %v749_v27 = vadd.f32 %v621_v41, %v493_v8  ;;  %v750_v24 = vadd.f32 %v622_v59, %v494_v11  ;;  %v3210_v2 = vsel %vm3163_vm2, %v3209_v32, %v3208_v7  ;;  %v1646_v22 = vld [vmem:[#allocation3 + $0x3d5] sm:$0x1]  ;;  %v1647_v8 = vld [vmem:[#allocation3 + $0x3dd] sm:$0x1]  ;;  %v1648_v45 = vld [vmem:[#allocation3 + $0x3e5] sm:$0x1] }
 0x20a   : > { %v3200_v36 = vsel %vm3169_vm4, %v3199_v17, %v3198_v57  ;;  %v751_v39 = vadd.f32 %v623_v34, %v495_v60  ;;  %v752_v3 = vadd.f32 %v624_v28, %v496_v43  ;;  %v3212_v38 = vsel %vm3166_vm3, %v3211_v33, %v3210_v2  ;;  %v1900_v17 = vld [vmem:[#allocation3 + $0x3c6] sm:$0x1]  ;;  %v484_v60 = vld [vmem:[#allocation3 + $0x380] sm:$0x1]  ;;  %v1902_v62 = vld [vmem:[#allocation3 + $0x3d6] sm:$0x1] }
 0x20b   : > { %v3202_v37 = vsel %vm3172_vm5, %v3201_v46, %v3200_v36  ;;  %v1004_v53 = vadd.f32 %v876_v1, %v748_v25  ;;  %v1005_v29 = vadd.f32 %v877_v0, %v749_v27  ;;  %v3214_v54 = vsel %vm3169_vm4, %v3213_v19, %v3212_v38  ;;  %v1901_v46 = vld [vmem:[#allocation3 + $0x3ce] sm:$0x1]  ;;  %v1903_v20 = vld [vmem:[#allocation3 + $0x3de] sm:$0x1]  ;;  %v485_v32 = vld [vmem:[#allocation3 + $0x388] sm:$0x1] }
 0x20c   : > { %v3217_v61 = vrot.slane %v5261_v30, 1  ;;  %v1006_v51 = vadd.f32 %v878_v23, %v750_v24  ;;  %v1007_v6 = vadd.f32 %v879_v10, %v751_v39  ;;  %v3216_v18 = vsel %vm3172_vm5, %v3215_v4, %v3214_v54  ;;  %v486_v1 = vld [vmem:[#allocation3 + $0x390] sm:$0x1]  ;;  %v612_v0 = vld [vmem:[#allocation3 + $0x381] sm:$0x1] }
 0x20d   : > { %v1008_v15 = vadd.f32 %v880_v12, %v752_v3  ;;  %v1260_v48 = vadd.f32 %v1132_v50, %v1004_v53  ;;  %v1261_v42 = vadd.f32 %v1133_v49, %v1005_v29  ;;  %v3204_v11 = vsel %vm3175_vm6, %v3203_v13, %v3202_v37  ;;  %v1904_v13 = vld [vmem:[#allocation3 + $0x3e6] sm:$0x1]  ;;  %v2156_v19 = vld [vmem:[#allocation3 + $0x3c7] sm:$0x1]  ;;  %v2157_v23 = vld [vmem:[#allocation3 + $0x3cf] sm:$0x1] }
 0x20e   : > { %v3218_v41 = vsel %vm3175_vm6, %v3217_v61, %v3216_v18  ;;  %v1262_v59 = vadd.f32 %v1134_v16, %v1006_v51  ;;  %v1263_v30 = vadd.f32 %v1135_v14, %v1007_v6  ;;  %v2477_v31 = vrot.slane %v5280_v44, 1  ;;  %v487_v4 = vld [vmem:[#allocation3 + $0x398] sm:$0x1]  ;;  %v613_v25 = vld [vmem:[#allocation3 + $0x389] sm:$0x1] }
 0x20f   : > { %v3388_v43 = vpack.c.b16 %v3218_v41, %v3204_v11  ;;  %v1264_v34 = vadd.f32 %v1136_v26, %v1008_v15  ;;  %v1516_v28 = vadd.f32 %v1388_v58, %v1260_v48  ;;  %v1517_v5 = vadd.f32 %v1389_v55, %v1261_v42  ;;  %v2158_v7 = vld [vmem:[#allocation3 + $0x3d7] sm:$0x1]  ;;  %v614_v24 = vld [vmem:[#allocation3 + $0x391] sm:$0x1]  ;;  %v615_v50 = vld [vmem:[#allocation3 + $0x399] sm:$0x1] }
 0x210   : > { %v1518_v9 = vadd.f32 %v1390_v56, %v1262_v59  ;;  %v1519_v33 = vadd.f32 %v1391_v63, %v1263_v30  ;;  %v2478_v21 = vrot.slane %v5280_v44, 2  ;;  %v2479_v27 = vrot.slane %v5280_v44, 3  ;;  %v488_v2 = vld [vmem:[#allocation3 + $0x3a0] sm:$0x1]  ;;  %v616_v39 = vld [vmem:[#allocation3 + $0x3a1] sm:$0x1] }
 0x211   : > { %3595 = vmatprep.mubr.bf16.mxu0 %v3388_v43  ;;  %v1520_v10 = vadd.f32 %v1392_v52, %v1264_v34  ;;  %v1772_v12 = vadd.f32 %v1644_v47, %v1516_v28  ;;  %v1773_v57 = vadd.f32 %v1645_v35, %v1517_v5  ;;  %v2480_v36 = vrot.slane %v5280_v44, 4  ;;  %v2159_v37 = vld [vmem:[#allocation3 + $0x3df] sm:$0x1]  ;;  %v868_v53 = vld [vmem:[#allocation3 + $0x382] sm:$0x1] }
 0x212   : > { %v1774_v49 = vadd.f32 %v1646_v22, %v1518_v9  ;;  %v1775_v16 = vadd.f32 %v1647_v8, %v1519_v33  ;;  %v740_v3 = vadd.f32 %v612_v0, %v484_v60  ;;  %v741_v38 = vadd.f32 %v613_v25, %v485_v32  ;;  %v869_v29 = vld [vmem:[#allocation3 + $0x38a] sm:$0x1]  ;;  %v2160_v63 = vld [vmem:[#allocation3 + $0x3e7] sm:$0x1]  ;;  %v870_v51 = vld [vmem:[#allocation3 + $0x392] sm:$0x1] }
 0x213   : > { %v1776_v14 = vadd.f32 %v1648_v45, %v1520_v10  ;;  %v2028_v26 = vadd.f32 %v1900_v17, %v1772_v12  ;;  %v2029_v58 = vadd.f32 %v1901_v46, %v1773_v57  ;;  %v742_v54 = vadd.f32 %v614_v24, %v486_v1  ;;  %v871_v15 = vld [vmem:[#allocation3 + $0x39a] sm:$0x1]  ;;  %v872_v48 = vld [vmem:[#allocation3 + $0x3a2] sm:$0x1]  ;;  %v1124_v11 = vld [vmem:[#allocation3 + $0x383] sm:$0x1] }
 0x214   : > { %v2030_v55 = vadd.f32 %v1902_v62, %v1774_v49  ;;  %v2031_v56 = vadd.f32 %v1903_v20, %v1775_v16  ;;  %v743_v61 = vadd.f32 %v615_v50, %v487_v4  ;;  %v744_v18 = vadd.f32 %v616_v39, %v488_v2  ;;  %v1125_v41 = vld [vmem:[#allocation3 + $0x38b] sm:$0x1]  ;;  %v1126_v46 = vld [vmem:[#allocation3 + $0x393] sm:$0x1]  ;;  %v1127_v60 = vld [vmem:[#allocation3 + $0x39b] sm:$0x1] }
 0x215   : > { %v2032_v6 = vadd.f32 %v1904_v13, %v1776_v14  ;;  %v2284_v52 = vadd.f32 %v2156_v19, %v2028_v26  ;;  %v2285_v47 = vadd.f32 %v2157_v23, %v2029_v58  ;;  %v996_v22 = vadd.f32 %v868_v53, %v740_v3  ;;  %v1128_v43 = vld [vmem:[#allocation3 + $0x3a3] sm:$0x1]  ;;  %v1380_v20 = vld [vmem:[#allocation3 + $0x384] sm:$0x1]  ;;  %v1381_v32 = vld [vmem:[#allocation3 + $0x38c] sm:$0x1]  ;;  %v5298_v14 = vpop.permute.xlu0 %2366 }
 0x216   : > { %v2286_v42 = vadd.f32 %v2158_v7, %v2030_v55  ;;  %v2287_v35 = vadd.f32 %v2159_v37, %v2031_v56  ;;  %v997_v8 = vadd.f32 %v869_v29, %v741_v38  ;;  %v998_v17 = vadd.f32 %v870_v51, %v742_v54  ;;  %v1382_v1 = vld [vmem:[#allocation3 + $0x394] sm:$0x1]  ;;  %v1383_v19 = vld [vmem:[#allocation3 + $0x39c] sm:$0x1]  ;;  %v1384_v23 = vld [vmem:[#allocation3 + $0x3a4] sm:$0x1] }
 0x217   : > { %v2288_v59 = vadd.f32 %v2160_v63, %v2032_v6  ;;  %v2732_v30 = vmul.f32 %v5280_v44, %v2284_v52  ;;  %v2733_v45 = vmul.f32 %v2477_v31, %v2285_v47  ;;  %v999_v5 = vadd.f32 %v871_v15, %v743_v61  ;;  %v1636_v12 = vld [vmem:[#allocation3 + $0x385] sm:$0x1]  ;;  %v1637_v57 = vld [vmem:[#allocation3 + $0x38d] sm:$0x1]  ;;  %v1639_v49 = vld [vmem:[#allocation3 + $0x39d] sm:$0x1] }
 0x218   : > { %v2734_v34 = vmul.f32 %v2478_v21, %v2286_v42  ;;  %v2735_v28 = vmul.f32 %v2479_v27, %v2287_v35  ;;  %v1000_v62 = vadd.f32 %v872_v48, %v744_v18  ;;  %v1252_v13 = vadd.f32 %v1124_v11, %v996_v22  ;;  %v1638_v21 = vld [vmem:[#allocation3 + $0x395] sm:$0x1]  ;;  %v1640_v16 = vld [vmem:[#allocation3 + $0x3a5] sm:$0x1]  ;;  %v1892_v2 = vld [vmem:[#allocation3 + $0x386] sm:$0x1] }
 0x219   : > { %v2892_v9 = vpack.c.bf16 %v2732_v30, %v2732_v30  ;;  %v2893_v33 = vpack.c.bf16 %v2733_v45, %v2733_v45  ;;  %v1253_v25 = vadd.f32 %v1125_v41, %v997_v8  ;;  %v1254_v10 = vadd.f32 %v1126_v46, %v998_v17  ;;  %v1893_v37 = vld [vmem:[#allocation3 + $0x38e] sm:$0x1]  ;;  %v1894_v38 = vld [vmem:[#allocation3 + $0x396] sm:$0x1]  ;;  %v1895_v53 = vld [vmem:[#allocation3 + $0x39e] sm:$0x1] }
 0x21a   : > { %v2894_v4 = vpack.c.bf16 %v2734_v34, %v2734_v34  ;;  %v2895_v31 = vpack.c.bf16 %v2735_v28, %v2735_v28  ;;  %v5290_v7 = vmul.f32 %v2480_v36, %v2288_v59  ;;  %v1255_v24 = vadd.f32 %v1127_v60, %v999_v5  ;;  %v1896_v63 = vld [vmem:[#allocation3 + $0x3a6] sm:$0x1]  ;;  %v2148_v54 = vld [vmem:[#allocation3 + $0x387] sm:$0x1]  ;;  %v2149_v61 = vld [vmem:[#allocation3 + $0x38f] sm:$0x1] }
 0x21b   : > { %v5292_v27 = vunpack.c.l.b16 %v2893_v33  ;;  %v1256_v50 = vadd.f32 %v1128_v43, %v1000_v62  ;;  %v5294_v39 = vunpack.c.l.b16 %v2892_v9  ;;  %v1508_v26 = vadd.f32 %v1380_v20, %v1252_v13  ;;  %v2150_v18 = vld [vmem:[#allocation3 + $0x397] sm:$0x1]  ;;  %v2151_v15 = vld [vmem:[#allocation3 + $0x39f] sm:$0x1]  ;;  %v2152_v48 = vld [vmem:[#allocation3 + $0x3a7] sm:$0x1] }
 0x21c   : > { %v5296_v3 = vunpack.c.l.b16 %v2894_v4  ;;  %v1509_v58 = vadd.f32 %v1381_v32, %v1253_v25  ;;  %v5300_v36 = vunpack.c.l.b16 %v2895_v31  ;;  %v1510_v29 = vadd.f32 %v1382_v1, %v1254_v10  ;;  %v437_v42 = vld [vmem:[#allocation3 + $0x208] sm:$0x1]  ;;  %v438_v35 = vld [vmem:[#allocation3 + $0x210] sm:$0x1]  ;;  %v439_v59 = vld [vmem:[#allocation3 + $0x218] sm:$0x1] }
 0x21d   : > { %5872 = vst [vmem:[#allocation80_spill] sm:$0xff] %v5292_v27  ;;  %v1511_v55 = vadd.f32 %v1383_v19, %v1255_v24  ;;  %v1512_v56 = vadd.f32 %v1384_v23, %v1256_v50  ;;  %v1764_v52 = vadd.f32 %v1636_v12, %v1508_v26  ;;  %v2470_v41 = vrot.slane %v5298_v14, 1  ;;  %v440_v30 = vld [vmem:[#allocation3 + $0x220] sm:$0x1]  ;;  %v565_v45 = vld [vmem:[#allocation3 + $0x209] sm:$0x1] }
 0x21e   : > { %5873 = vst [vmem:[#allocation81_spill] sm:$0xff] %v5296_v3  ;;  %5874 = vst [vmem:[#allocation82_spill] sm:$0xff] %v5300_v36  ;;  %v1765_v47 = vadd.f32 %v1637_v57, %v1509_v58  ;;  %v1766_v22 = vadd.f32 %v1638_v21, %v1510_v29  ;;  %v566_v17 = vld [vmem:[#allocation3 + $0x211] sm:$0x1]  ;;  %v2471_v43 = vrot.slane %v5298_v14, 2  ;;  %v2472_v34 = vrot.slane %v5298_v14, 3 }
 0x21f   : > { %v1767_v8 = vadd.f32 %v1639_v49, %v1511_v55  ;;  %v1768_v11 = vadd.f32 %v1640_v16, %v1512_v56  ;;  %v2020_v46 = vadd.f32 %v1892_v2, %v1764_v52  ;;  %v441_v28 = vld [vmem:[#allocation3 + $0x228] sm:$0x1]  ;;  %v567_v5 = vld [vmem:[#allocation3 + $0x219] sm:$0x1]  ;;  %v568_v62 = vld [vmem:[#allocation3 + $0x221] sm:$0x1]  ;;  %v693_v24 = vadd.f32 %v565_v45, %v437_v42 }
 0x220   : > { %v2021_v60 = vadd.f32 %v1893_v37, %v1765_v47  ;;  %v2022_v20 = vadd.f32 %v1894_v38, %v1766_v22  ;;  %v2473_v9 = vrot.slane %v5298_v14, 4  ;;  %v442_v33 = vld [vmem:[#allocation3 + $0x230] sm:$0x1]  ;;  %v443_v13 = vld [vmem:[#allocation3 + $0x238] sm:$0x1]  ;;  %v695_v22 = vadd.f32 %v567_v5, %v439_v59 }
 0x221   : > { %v2023_v32 = vadd.f32 %v1895_v53, %v1767_v8  ;;  %v2024_v1 = vadd.f32 %v1896_v63, %v1768_v11  ;;  %v569_v19 = vld [vmem:[#allocation3 + $0x229] sm:$0x1]  ;;  %v570_v23 = vld [vmem:[#allocation3 + $0x231] sm:$0x1]  ;;  %v2276_v4 = vadd.f32 %v2148_v54, %v2020_v46  ;;  %v445_v10 = vld [vmem:[#allocation3 + $0x248] sm:$0x1]  ;;  %v694_v53 = vadd.f32 %v566_v17, %v438_v35 }
 0x222   : > { %v2277_v31 = vadd.f32 %v2149_v61, %v2021_v60  ;;  %v446_v12 = vld [vmem:[#allocation3 + $0x250] sm:$0x1]  ;;  %v571_v57 = vld [vmem:[#allocation3 + $0x239] sm:$0x1]  ;;  %v573_v21 = vld [vmem:[#allocation3 + $0x249] sm:$0x1]  ;;  %v2278_v50 = vadd.f32 %v2150_v18, %v2022_v20  ;;  %v696_v42 = vadd.f32 %v568_v62, %v440_v30  ;;  %v697_v8 = vadd.f32 %v569_v19, %v441_v28 }
 0x223   : > { %v2279_v49 = vadd.f32 %v2151_v15, %v2023_v32  ;;  %v2280_v16 = vadd.f32 %v2152_v48, %v2024_v1  ;;  %v447_v2 = vld [vmem:[#allocation3 + $0x258] sm:$0x1]  ;;  %v448_v26 = vld [vmem:[#allocation3 + $0x260] sm:$0x1]  ;;  %v574_v58 = vld [vmem:[#allocation3 + $0x251] sm:$0x1]  ;;  %v2724_v29 = vmul.f32 %v5298_v14, %v2276_v4  ;;  %v699_v60 = vadd.f32 %v571_v57, %v443_v13 }
 0x224   : > { %v575_v37 = vld [vmem:[#allocation3 + $0x259] sm:$0x1]  ;;  %v576_v38 = vld [vmem:[#allocation3 + $0x261] sm:$0x1]  ;;  %v2725_v55 = vmul.f32 %v2470_v41, %v2277_v31  ;;  %v449_v56 = vld [vmem:[#allocation3 + $0x268] sm:$0x1]  ;;  %v2726_v18 = vmul.f32 %v2471_v43, %v2278_v50  ;;  %v698_v41 = vadd.f32 %v570_v23, %v442_v33  ;;  %v701_v30 = vadd.f32 %v573_v21, %v445_v10 }
 0x225   : > { %v450_v63 = vld [vmem:[#allocation3 + $0x270] sm:$0x1]  ;;  %v451_v54 = vld [vmem:[#allocation3 + $0x278] sm:$0x1]  ;;  %v577_v61 = vld [vmem:[#allocation3 + $0x269] sm:$0x1]  ;;  %v5310_v15 = vmul.f32 %v2472_v34, %v2279_v49  ;;  %v5312_v48 = vmul.f32 %v2473_v9, %v2280_v16  ;;  %v2884_v17 = vpack.c.bf16 %v2724_v29, %v2724_v29  ;;  %v702_v43 = vadd.f32 %v574_v58, %v446_v12 }
 0x226   : > { %v578_v52 = vld [vmem:[#allocation3 + $0x271] sm:$0x1]  ;;  %v579_v47 = vld [vmem:[#allocation3 + $0x279] sm:$0x1]  ;;  %v821_v11 = vld [vmem:[#allocation3 + $0x20a] sm:$0x1]  ;;  %v2885_v46 = vpack.c.bf16 %v2725_v55, %v2725_v55  ;;  %v2886_v4 = vpack.c.bf16 %v2726_v18, %v2726_v18  ;;  %v703_v31 = vadd.f32 %v575_v37, %v447_v2  ;;  %v704_v33 = vadd.f32 %v576_v38, %v448_v26 }
 0x227   : > { %v822_v45 = vld [vmem:[#allocation3 + $0x212] sm:$0x1]  ;;  %v823_v35 = vld [vmem:[#allocation3 + $0x21a] sm:$0x1]  ;;  %v824_v20 = vld [vmem:[#allocation3 + $0x222] sm:$0x1]  ;;  %v5316_v9 = vunpack.c.l.b16 %v2884_v17  ;;  %v705_v16 = vadd.f32 %v577_v61, %v449_v56  ;;  %v706_v29 = vadd.f32 %v578_v52, %v450_v63  ;;  %v707_v10 = vadd.f32 %v579_v47, %v451_v54 }
 0x228   : > { %v825_v32 = vld [vmem:[#allocation3 + $0x22a] sm:$0x1]  ;;  %v826_v1 = vld [vmem:[#allocation3 + $0x232] sm:$0x1]  ;;  %v827_v34 = vld [vmem:[#allocation3 + $0x23a] sm:$0x1]  ;;  %v5318_v19 = vunpack.c.l.b16 %v2885_v46  ;;  %v5320_v49 = vunpack.c.l.b16 %v2886_v4  ;;  %v949_v17 = vadd.f32 %v821_v11, %v693_v24  ;;  %v950_v46 = vadd.f32 %v822_v45, %v694_v53 }
 0x229   : > { %v829_v5 = vld [vmem:[#allocation3 + $0x24a] sm:$0x1]  ;;  %v830_v62 = vld [vmem:[#allocation3 + $0x252] sm:$0x1]  ;;  %v831_v28 = vld [vmem:[#allocation3 + $0x25a] sm:$0x1]  ;;  %v951_v6 = vadd.f32 %v823_v35, %v695_v22  ;;  %v952_v4 = vadd.f32 %v824_v20, %v696_v42  ;;  %v953_v0 = vadd.f32 %v825_v32, %v697_v8  ;;  %v954_v56 = vadd.f32 %v826_v1, %v698_v41 }
 0x22a   : > { %v832_v13 = vld [vmem:[#allocation3 + $0x262] sm:$0x1]  ;;  %v833_v23 = vld [vmem:[#allocation3 + $0x26a] sm:$0x1]  ;;  %v834_v57 = vld [vmem:[#allocation3 + $0x272] sm:$0x1]  ;;  %v955_v47 = vadd.f32 %v827_v34, %v699_v60  ;;  %v957_v25 = vadd.f32 %v829_v5, %v701_v30  ;;  %v958_v59 = vadd.f32 %v830_v62, %v702_v43  ;;  %v959_v18 = vadd.f32 %v831_v28, %v703_v31 }
 0x22b   : > { %v835_v50 = vld [vmem:[#allocation3 + $0x27a] sm:$0x1]  ;;  %v1077_v12 = vld [vmem:[#allocation3 + $0x20b] sm:$0x1]  ;;  %v1078_v21 = vld [vmem:[#allocation3 + $0x213] sm:$0x1]  ;;  %v960_v45 = vadd.f32 %v832_v13, %v704_v33  ;;  %v961_v35 = vadd.f32 %v833_v23, %v705_v16  ;;  %v962_v36 = vadd.f32 %v834_v57, %v706_v29 }
 0x22c   : > { %v1079_v58 = vld [vmem:[#allocation3 + $0x21b] sm:$0x1]  ;;  %v1080_v55 = vld [vmem:[#allocation3 + $0x223] sm:$0x1]  ;;  %v1081_v2 = vld [vmem:[#allocation3 + $0x22b] sm:$0x1]  ;;  %v963_v3 = vadd.f32 %v835_v50, %v707_v10  ;;  %v1205_v20 = vadd.f32 %v1077_v12, %v949_v17  ;;  %v1206_v32 = vadd.f32 %v1078_v21, %v950_v46 }
 0x22d   : > { %v1082_v26 = vld [vmem:[#allocation3 + $0x233] sm:$0x1]  ;;  %v1083_v37 = vld [vmem:[#allocation3 + $0x23b] sm:$0x1]  ;;  %v1085_v38 = vld [vmem:[#allocation3 + $0x24b] sm:$0x1]  ;;  %v1207_v1 = vadd.f32 %v1079_v58, %v951_v6  ;;  %v1208_v27 = vadd.f32 %v1080_v55, %v952_v4  ;;  %v1209_v5 = vadd.f32 %v1081_v2, %v953_v0 }
 0x22e   : > { %v1086_v63 = vld [vmem:[#allocation3 + $0x253] sm:$0x1]  ;;  %v1087_v54 = vld [vmem:[#allocation3 + $0x25b] sm:$0x1]  ;;  %v1088_v61 = vld [vmem:[#allocation3 + $0x263] sm:$0x1]  ;;  %v1210_v62 = vadd.f32 %v1082_v26, %v954_v56  ;;  %v1211_v28 = vadd.f32 %v1083_v37, %v955_v47  ;;  %v1213_v31 = vadd.f32 %v1085_v38, %v957_v25 }
 0x22f   : > { %v1089_v52 = vld [vmem:[#allocation3 + $0x26b] sm:$0x1]  ;;  %v1090_v24 = vld [vmem:[#allocation3 + $0x273] sm:$0x1]  ;;  %v1091_v53 = vld [vmem:[#allocation3 + $0x27b] sm:$0x1]  ;;  %v1214_v50 = vadd.f32 %v1086_v63, %v958_v59  ;;  %v1215_v16 = vadd.f32 %v1087_v54, %v959_v18  ;;  %v1216_v29 = vadd.f32 %v1088_v61, %v960_v45 }
 0x230   : > { %v1333_v22 = vld [vmem:[#allocation3 + $0x20c] sm:$0x1]  ;;  %v1334_v11 = vld [vmem:[#allocation3 + $0x214] sm:$0x1]  ;;  %v1335_v51 = vld [vmem:[#allocation3 + $0x21c] sm:$0x1]  ;;  %v1217_v10 = vadd.f32 %v1089_v52, %v961_v35  ;;  %v1218_v55 = vadd.f32 %v1090_v24, %v962_v36  ;;  %v1219_v17 = vadd.f32 %v1091_v53, %v963_v3 }
 0x231   : > { %v1336_v42 = vld [vmem:[#allocation3 + $0x224] sm:$0x1]  ;;  %v1337_v8 = vld [vmem:[#allocation3 + $0x22c] sm:$0x1]  ;;  %v1338_v41 = vld [vmem:[#allocation3 + $0x234] sm:$0x1]  ;;  %v1461_v46 = vadd.f32 %v1333_v22, %v1205_v20  ;;  %v1462_v4 = vadd.f32 %v1334_v11, %v1206_v32  ;;  %v1463_v37 = vadd.f32 %v1335_v51, %v1207_v1 }
 0x232   : > { %v1339_v60 = vld [vmem:[#allocation3 + $0x23c] sm:$0x1]  ;;  %v1341_v30 = vld [vmem:[#allocation3 + $0x24c] sm:$0x1]  ;;  %v1342_v43 = vld [vmem:[#allocation3 + $0x254] sm:$0x1]  ;;  %v1464_v38 = vadd.f32 %v1336_v42, %v1208_v27  ;;  %v1465_v56 = vadd.f32 %v1337_v8, %v1209_v5  ;;  %v1466_v47 = vadd.f32 %v1338_v41, %v1210_v62 }
 0x233   : > { %v1343_v34 = vld [vmem:[#allocation3 + $0x25c] sm:$0x1]  ;;  %v1344_v33 = vld [vmem:[#allocation3 + $0x264] sm:$0x1]  ;;  %v1345_v13 = vld [vmem:[#allocation3 + $0x26c] sm:$0x1]  ;;  %v1467_v61 = vadd.f32 %v1339_v60, %v1211_v28  ;;  %v1469_v52 = vadd.f32 %v1341_v30, %v1213_v31  ;;  %v1470_v45 = vadd.f32 %v1342_v43, %v1214_v50 }
 0x234   : > { %v1346_v23 = vld [vmem:[#allocation3 + $0x274] sm:$0x1]  ;;  %v1347_v57 = vld [vmem:[#allocation3 + $0x27c] sm:$0x1]  ;;  %v1589_v12 = vld [vmem:[#allocation3 + $0x20d] sm:$0x1]  ;;  %v1471_v35 = vadd.f32 %v1343_v34, %v1215_v16  ;;  %v1472_v22 = vadd.f32 %v1344_v33, %v1216_v29  ;;  %v1473_v11 = vadd.f32 %v1345_v13, %v1217_v10 }
 0x235   : > { %v1590_v21 = vld [vmem:[#allocation3 + $0x215] sm:$0x1]  ;;  %v1591_v6 = vld [vmem:[#allocation3 + $0x21d] sm:$0x1]  ;;  %v1592_v58 = vld [vmem:[#allocation3 + $0x225] sm:$0x1]  ;;  %v1474_v20 = vadd.f32 %v1346_v23, %v1218_v55  ;;  %v1475_v32 = vadd.f32 %v1347_v57, %v1219_v17  ;;  %v1717_v8 = vadd.f32 %v1589_v12, %v1461_v46 }
 0x236   : > { %v1593_v0 = vld [vmem:[#allocation3 + $0x22d] sm:$0x1]  ;;  %v1594_v2 = vld [vmem:[#allocation3 + $0x235] sm:$0x1]  ;;  %v1595_v26 = vld [vmem:[#allocation3 + $0x23d] sm:$0x1]  ;;  %v1718_v41 = vadd.f32 %v1590_v21, %v1462_v4  ;;  %v1719_v1 = vadd.f32 %v1591_v6, %v1463_v37  ;;  %v1720_v5 = vadd.f32 %v1592_v58, %v1464_v38 }
 0x237   : > { %v1597_v25 = vld [vmem:[#allocation3 + $0x24d] sm:$0x1]  ;;  %v1598_v59 = vld [vmem:[#allocation3 + $0x255] sm:$0x1]  ;;  %v1599_v18 = vld [vmem:[#allocation3 + $0x25d] sm:$0x1]  ;;  %v1721_v43 = vadd.f32 %v1593_v0, %v1465_v56  ;;  %v1722_v34 = vadd.f32 %v1594_v2, %v1466_v47  ;;  %v1723_v28 = vadd.f32 %v1595_v26, %v1467_v61 }
 0x238   : > { %v1600_v63 = vld [vmem:[#allocation3 + $0x265] sm:$0x1]  ;;  %v1601_v54 = vld [vmem:[#allocation3 + $0x26d] sm:$0x1]  ;;  %v1602_v36 = vld [vmem:[#allocation3 + $0x275] sm:$0x1]  ;;  %v1725_v31 = vadd.f32 %v1597_v25, %v1469_v52  ;;  %v1726_v13 = vadd.f32 %v1598_v59, %v1470_v45  ;;  %v1727_v23 = vadd.f32 %v1599_v18, %v1471_v35 }
 0x239   : > { %v1603_v3 = vld [vmem:[#allocation3 + $0x27d] sm:$0x1]  ;;  %v1845_v24 = vld [vmem:[#allocation3 + $0x20e] sm:$0x1]  ;;  %v1846_v53 = vld [vmem:[#allocation3 + $0x216] sm:$0x1]  ;;  %v1728_v57 = vadd.f32 %v1600_v63, %v1472_v22  ;;  %v1729_v29 = vadd.f32 %v1601_v54, %v1473_v11  ;;  %v1730_v21 = vadd.f32 %v1602_v36, %v1474_v20 }
 0x23a   : > { %v1847_v51 = vld [vmem:[#allocation3 + $0x21e] sm:$0x1]  ;;  %v1848_v27 = vld [vmem:[#allocation3 + $0x226] sm:$0x1]  ;;  %v1849_v42 = vld [vmem:[#allocation3 + $0x22e] sm:$0x1]  ;;  %v1731_v6 = vadd.f32 %v1603_v3, %v1475_v32  ;;  %v1973_v58 = vadd.f32 %v1845_v24, %v1717_v8  ;;  %v1974_v17 = vadd.f32 %v1846_v53, %v1718_v41 }
 0x23b   : > { %v1850_v62 = vld [vmem:[#allocation3 + $0x236] sm:$0x1]  ;;  %v1851_v60 = vld [vmem:[#allocation3 + $0x23e] sm:$0x1]  ;;  %v1853_v30 = vld [vmem:[#allocation3 + $0x24e] sm:$0x1]  ;;  %v1975_v2 = vadd.f32 %v1847_v51, %v1719_v1  ;;  %v1976_v26 = vadd.f32 %v1848_v27, %v1720_v5  ;;  %v1977_v25 = vadd.f32 %v1849_v42, %v1721_v43 }
 0x23c   : > { %v1854_v50 = vld [vmem:[#allocation3 + $0x256] sm:$0x1]  ;;  %v1855_v16 = vld [vmem:[#allocation3 + $0x25e] sm:$0x1]  ;;  %v1856_v33 = vld [vmem:[#allocation3 + $0x266] sm:$0x1]  ;;  %v1978_v37 = vadd.f32 %v1850_v62, %v1722_v34  ;;  %v1979_v59 = vadd.f32 %v1851_v60, %v1723_v28  ;;  %v1981_v18 = vadd.f32 %v1853_v30, %v1725_v31 }
 0x23d   : > { %v1857_v10 = vld [vmem:[#allocation3 + $0x26e] sm:$0x1]  ;;  %v1858_v55 = vld [vmem:[#allocation3 + $0x276] sm:$0x1]  ;;  %v1859_v12 = vld [vmem:[#allocation3 + $0x27e] sm:$0x1]  ;;  %v1982_v63 = vadd.f32 %v1854_v50, %v1726_v13  ;;  %v1983_v54 = vadd.f32 %v1855_v16, %v1727_v23  ;;  %v1984_v35 = vadd.f32 %v1856_v33, %v1728_v57 }
 0x23e   : > { %v2101_v46 = vld [vmem:[#allocation3 + $0x20f] sm:$0x1]  ;;  %v2102_v4 = vld [vmem:[#allocation3 + $0x217] sm:$0x1]  ;;  %v2103_v0 = vld [vmem:[#allocation3 + $0x21f] sm:$0x1]  ;;  %v1985_v36 = vadd.f32 %v1857_v10, %v1729_v29  ;;  %v1986_v3 = vadd.f32 %v1858_v55, %v1730_v21  ;;  %v1987_v24 = vadd.f32 %v1859_v12, %v1731_v6 }
 0x23f   : > { %v2104_v38 = vld [vmem:[#allocation3 + $0x227] sm:$0x1]  ;;  %v2105_v56 = vld [vmem:[#allocation3 + $0x22f] sm:$0x1]  ;;  %v2106_v47 = vld [vmem:[#allocation3 + $0x237] sm:$0x1]  ;;  %v2229_v51 = vadd.f32 %v2101_v46, %v1973_v58  ;;  %v2230_v27 = vadd.f32 %v2102_v4, %v1974_v17  ;;  %v2231_v42 = vadd.f32 %v2103_v0, %v1975_v2 }
 0x240   : > { %v2107_v61 = vld [vmem:[#allocation3 + $0x23f] sm:$0x1]  ;;  %v2109_v52 = vld [vmem:[#allocation3 + $0x24f] sm:$0x1]  ;;  %v2110_v45 = vld [vmem:[#allocation3 + $0x257] sm:$0x1]  ;;  %v2232_v8 = vadd.f32 %v2104_v38, %v1976_v26  ;;  %v2233_v41 = vadd.f32 %v2105_v56, %v1977_v25  ;;  %v2234_v1 = vadd.f32 %v2106_v47, %v1978_v37 }
 0x241   : > { %v2111_v53 = vld [vmem:[#allocation3 + $0x25f] sm:$0x1]  ;;  %v2112_v22 = vld [vmem:[#allocation3 + $0x267] sm:$0x1]  ;;  %v2113_v11 = vld [vmem:[#allocation3 + $0x26f] sm:$0x1]  ;;  %v2235_v5 = vadd.f32 %v2107_v61, %v1979_v59  ;;  %v2237_v62 = vadd.f32 %v2109_v52, %v1981_v18  ;;  %v2238_v60 = vadd.f32 %v2110_v45, %v1982_v63 }
 0x242   : > { %v2114_v20 = vld [vmem:[#allocation3 + $0x277] sm:$0x1]  ;;  %v2115_v32 = vld [vmem:[#allocation3 + $0x27f] sm:$0x1]  ;;  %v2239_v30 = vadd.f32 %v2111_v53, %v1983_v54  ;;  %v2240_v43 = vadd.f32 %v2112_v22, %v1984_v35  ;;  %v2241_v34 = vadd.f32 %v2113_v11, %v1985_v36  ;;  %v5876_v29 = vld [vmem:[#allocation46_spill] sm:$0xff] }
 0x243   : > { %v2242_v28 = vadd.f32 %v2114_v20, %v1986_v3  ;;  %v2243_v31 = vadd.f32 %v2115_v32, %v1987_v24  ;;  %v5875_v50 = vld [vmem:[#allocation47_spill] sm:$0xff]  ;;  %v2437_v10 = vrot.slane %v5876_v29, 3  ;;  %v2438_v55 = vrot.slane %v5876_v29, 4  ;;  %v5881_v45 = vld [vmem:[#allocation52_spill] sm:$0xff]  ;;  %v5882_v32 = vld [vmem:[#allocation50_spill] sm:$0xff] }
 0x244   : > { %v2430_v16 = vrot.slane %v5875_v50, 3  ;;  %v2431_v33 = vrot.slane %v5875_v50, 4  ;;  %v2432_v13 = vrot.slane %v5875_v50, 5  ;;  %v2433_v23 = vrot.slane %v5875_v50, 6 }
 0x245   : > { %v2434_v57 = vrot.slane %v5875_v50, 7  ;;  %v2439_v12 = vrot.slane %v5876_v29, 5  ;;  %v2440_v21 = vrot.slane %v5876_v29, 6  ;;  %v2441_v6 = vrot.slane %v5876_v29, 7 }
 0x246   : > { %v5877_v58 = vrot.slane %v5875_v50, 1  ;;  %v5878_v46 = vrot.slane %v5875_v50, 2  ;;  %v2679_v0 = vmul.f32 %v2430_v16, %v2231_v42  ;;  %v2680_v2 = vmul.f32 %v2431_v33, %v2232_v8 }
 0x247   : > { %v2681_v26 = vmul.f32 %v2432_v13, %v2233_v41  ;;  %v2682_v25 = vmul.f32 %v2433_v23, %v2234_v1  ;;  %v2683_v37 = vmul.f32 %v2434_v57, %v2235_v5  ;;  %v5879_v38 = vrot.slane %v5876_v29, 1 }
 0x248   : > { %v2677_v17 = vmul.f32 %v5877_v58, %v2229_v51  ;;  %v2678_v4 = vmul.f32 %v5878_v46, %v2230_v27  ;;  %v5880_v47 = vrot.slane %v5876_v29, 2  ;;  %v2687_v18 = vmul.f32 %v2437_v10, %v2239_v30  ;;  %v2742_v58 = vld [vmem:[#allocation2 + $0x10] sm:$0xff]  ;;  %v5356_v46 = vld [vmem:[#allocation2 + $0x40] sm:$0xff] }
 0x249   : > { %v2685_v56 = vmul.f32 %v5879_v38, %v2237_v62  ;;  %v2688_v63 = vmul.f32 %v2438_v55, %v2240_v43  ;;  %v2689_v54 = vmul.f32 %v2439_v12, %v2241_v34  ;;  %v2690_v61 = vmul.f32 %v2440_v21, %v2242_v28  ;;  %v535_v38 = vld [vmem:[#allocation3 + $0x119] sm:$0x1] }
 0x24a   : > { %v2686_v59 = vmul.f32 %v5880_v47, %v2238_v60  ;;  %v2691_v52 = vmul.f32 %v2441_v6, %v2243_v31  ;;  %v2836_v35 = vpack.c.bf16 %v5881_v45, %v5881_v45  ;;  %v2837_v36 = vpack.c.bf16 %v2677_v17, %v2677_v17  ;;  %v2743_v17 = vld [vmem:[#allocation2 + $0x18] sm:$0xff]  ;;  %v537_v45 = vld [vmem:[#allocation3 + $0x129] sm:$0x1] }
 0x24b   : > { %v2838_v3 = vpack.c.bf16 %v2678_v4, %v2678_v4  ;;  %v2839_v24 = vpack.c.bf16 %v2679_v0, %v2679_v0  ;;  %v2840_v53 = vpack.c.bf16 %v2680_v2, %v2680_v2  ;;  %v2841_v22 = vpack.c.bf16 %v2681_v26, %v2681_v26 }
 0x24c   : > { %v2842_v11 = vpack.c.bf16 %v2682_v25, %v2682_v25  ;;  %v2843_v20 = vpack.c.bf16 %v2683_v37, %v2683_v37  ;;  %v2844_v51 = vpack.c.bf16 %v5882_v32, %v5882_v32  ;;  %v2845_v27 = vpack.c.bf16 %v2685_v56, %v2685_v56  ;;  %v407_v25 = vld [vmem:[#allocation3 + $0x118] sm:$0x1]  ;;  %v408_v37 = vld [vmem:[#allocation3 + $0x120] sm:$0x1]  ;;  %v536_v56 = vld [vmem:[#allocation3 + $0x121] sm:$0x1] }
 0x24d   : > { %v2846_v42 = vpack.c.bf16 %v2686_v59, %v2686_v59  ;;  %v2847_v8 = vpack.c.bf16 %v2687_v18, %v2687_v18  ;;  %v2848_v41 = vpack.c.bf16 %v2688_v63, %v2688_v63  ;;  %v2849_v1 = vpack.c.bf16 %v2689_v54, %v2689_v54  ;;  %v5361_v54 = vld [vmem:[#allocation2 + $0x48] sm:$0xff]  ;;  %v543_v32 = vld [vmem:[#allocation3 + $0x159] sm:$0x1] }
 0x24e   : > { %v2850_v5 = vpack.c.bf16 %v2690_v61, %v2690_v61  ;;  %v2851_v62 = vpack.c.bf16 %v2691_v52, %v2691_v52  ;;  %v3092_v60 = vunpack.c.l.b16 %v2836_v35  ;;  %v3093_v30 = vunpack.c.l.b16 %v2837_v36  ;;  %v409_v61 = vld [vmem:[#allocation3 + $0x128] sm:$0x1]  ;;  %v410_v52 = vld [vmem:[#allocation3 + $0x130] sm:$0x1]  ;;  %v538_v35 = vld [vmem:[#allocation3 + $0x131] sm:$0x1] }
 0x24f   : > { %v3094_v43 = vunpack.c.l.b16 %v2838_v3  ;;  %v3095_v34 = vunpack.c.l.b16 %v2839_v24  ;;  %v3096_v28 = vunpack.c.l.b16 %v2840_v53  ;;  %v3097_v31 = vunpack.c.l.b16 %v2841_v22  ;;  %v411_v22 = vld [vmem:[#allocation3 + $0x138] sm:$0x1] }
 0x250   : > { %v5346_v50 = vunpack.c.l.b16 %v2842_v11  ;;  %v5348_v16 = vunpack.c.l.b16 %v2843_v20  ;;  %v3100_v33 = vunpack.c.l.b16 %v2844_v51  ;;  %v3101_v13 = vunpack.c.l.b16 %v2845_v27  ;;  %v415_v11 = vld [vmem:[#allocation3 + $0x158] sm:$0x1]  ;;  %v539_v20 = vld [vmem:[#allocation3 + $0x139] sm:$0x1] }
 0x251   : > { %v3102_v23 = vunpack.c.l.b16 %v2846_v42  ;;  %v3103_v57 = vunpack.c.l.b16 %v2847_v8  ;;  %v3104_v29 = vunpack.c.l.b16 %v2848_v41  ;;  %v5350_v10 = vunpack.c.l.b16 %v2849_v1  ;;  %v416_v41 = vld [vmem:[#allocation3 + $0x160] sm:$0x1]  ;;  %v417_v1 = vld [vmem:[#allocation3 + $0x168] sm:$0x1] }
 0x252   : > { %v5352_v55 = vunpack.c.l.b16 %v2850_v5  ;;  %v5354_v12 = vunpack.c.l.b16 %v2851_v62  ;;  %v3275_v21 = vrot.slane %v3093_v30, 7  ;;  %v3277_v6 = vrot.slane %v3094_v43, 6  ;;  %v418_v5 = vld [vmem:[#allocation3 + $0x170] sm:$0x1]  ;;  %v544_v62 = vld [vmem:[#allocation3 + $0x161] sm:$0x1] }
 0x253   : > { %v3279_v4 = vrot.slane %v3095_v34, 5  ;;  %v3281_v0 = vrot.slane %v3096_v28, 4  ;;  %v3283_v2 = vrot.slane %v3097_v31, 3  ;;  %v3285_v26 = vrot.slane %v5346_v50, 2  ;;  %v546_v30 = vld [vmem:[#allocation3 + $0x171] sm:$0x1] }
 0x254   : > { %v3276_v47 = vsel %vm3157_vm0, %v3275_v21, %v3092_v60  ;;  %v3287_v59 = vrot.slane %v5348_v16, 1  ;;  %v3289_v18 = vrot.slane %v3101_v13, 7  ;;  %v3291_v63 = vrot.slane %v3102_v23, 6  ;;  %v545_v60 = vld [vmem:[#allocation3 + $0x169] sm:$0x1] }
 0x255   : > { %v3278_v36 = vsel %vm3160_vm1, %v3277_v6, %v3276_v47  ;;  %v3293_v3 = vrot.slane %v3103_v57, 5  ;;  %v3295_v24 = vrot.slane %v3104_v29, 4  ;;  %v3297_v53 = vrot.slane %v5350_v10, 3  ;;  %v419_v50 = vld [vmem:[#allocation3 + $0x178] sm:$0x1] }
 0x256   : > { %v3280_v51 = vsel %vm3163_vm2, %v3279_v4, %v3278_v36  ;;  %v3290_v27 = vsel %vm3157_vm0, %v3289_v18, %v3100_v33  ;;  %v3299_v42 = vrot.slane %v5352_v55, 2  ;;  %v3301_v8 = vrot.slane %v5354_v12, 1  ;;  %v547_v16 = vld [vmem:[#allocation3 + $0x179] sm:$0x1]  ;;  %v791_v33 = vld [vmem:[#allocation3 + $0x11a] sm:$0x1] }
 0x257   : > { %v3282_v43 = vsel %vm3166_vm3, %v3281_v0, %v3280_v51  ;;  %v3292_v34 = vsel %vm3160_vm1, %v3291_v63, %v3290_v27  ;;  %v2757_v28 = vpack.c.bf16 %v2743_v17, %v2742_v58  ;;  %v2760_v31 = vpack.c.bf16 %v5361_v54, %v5356_v46  ;;  %v792_v13 = vld [vmem:[#allocation3 + $0x122] sm:$0x1]  ;;  %v793_v55 = vld [vmem:[#allocation3 + $0x12a] sm:$0x1]  ;;  %v794_v12 = vld [vmem:[#allocation3 + $0x132] sm:$0x1] }
 0x258   : > { %v3284_v23 = vsel %vm3169_vm4, %v3283_v2, %v3282_v43  ;;  %v3294_v57 = vsel %vm3163_vm2, %v3293_v3, %v3292_v34  ;;  %v663_v29 = vadd.f32 %v535_v38, %v407_v25  ;;  %v664_v10 = vadd.f32 %v536_v56, %v408_v37  ;;  %v795_v21 = vld [vmem:[#allocation3 + $0x13a] sm:$0x1]  ;;  %v800_v47 = vld [vmem:[#allocation3 + $0x162] sm:$0x1]  ;;  %v801_v18 = vld [vmem:[#allocation3 + $0x16a] sm:$0x1] }
 0x259   : > { %v3286_v6 = vsel %vm3172_vm5, %v3285_v26, %v3284_v23  ;;  %v3296_v58 = vsel %vm3166_vm3, %v3295_v24, %v3294_v57  ;;  %3596 = vmatmul.mubr.bf16.gmra.mrb[4].mxu0 %v2757_v28  ;;  %v665_v17 = vadd.f32 %v537_v45, %v409_v61  ;;  %v666_v4 = vadd.f32 %v538_v35, %v410_v52  ;;  %v799_v0 = vld [vmem:[#allocation3 + $0x15a] sm:$0x1]  ;;  %v802_v63 = vld [vmem:[#allocation3 + $0x172] sm:$0x1]  ;;  %v1047_v56 = vld [vmem:[#allocation3 + $0x11b] sm:$0x1] }
 0x25a   : > { %v3288_v2 = vsel %vm3175_vm6, %v3287_v59, %v3286_v6  ;;  %v3298_v36 = vsel %vm3169_vm4, %v3297_v53, %v3296_v58  ;;  %v667_v25 = vadd.f32 %v539_v20, %v411_v22  ;;  %v671_v37 = vadd.f32 %v543_v32, %v415_v11  ;;  %v803_v38 = vld [vmem:[#allocation3 + $0x17a] sm:$0x1]  ;;  %v1048_v3 = vld [vmem:[#allocation3 + $0x123] sm:$0x1]  ;;  %v1049_v51 = vld [vmem:[#allocation3 + $0x12b] sm:$0x1] }
 0x25b   : > { %v3300_v26 = vsel %vm3172_vm5, %v3299_v42, %v3298_v36  ;;  %v672_v24 = vadd.f32 %v544_v62, %v416_v41  ;;  %v673_v27 = vadd.f32 %v545_v60, %v417_v1  ;;  %v674_v61 = vadd.f32 %v546_v30, %v418_v5  ;;  %v1050_v52 = vld [vmem:[#allocation3 + $0x133] sm:$0x1]  ;;  %v1051_v45 = vld [vmem:[#allocation3 + $0x13b] sm:$0x1]  ;;  %v1056_v43 = vld [vmem:[#allocation3 + $0x163] sm:$0x1] }
 0x25c   : > { %v1055_v35 = vld [vmem:[#allocation3 + $0x15b] sm:$0x1]  ;;  %v3302_v34 = vsel %vm3175_vm6, %v3301_v8, %v3300_v26  ;;  %v675_v59 = vadd.f32 %v547_v16, %v419_v50  ;;  %v919_v28 = vadd.f32 %v791_v33, %v663_v29  ;;  %v920_v53 = vadd.f32 %v792_v13, %v664_v10  ;;  %v1057_v22 = vld [vmem:[#allocation3 + $0x16b] sm:$0x1]  ;;  %v1058_v11 = vld [vmem:[#allocation3 + $0x173] sm:$0x1] }
 0x25d   : > { %v1059_v20 = vld [vmem:[#allocation3 + $0x17b] sm:$0x1]  ;;  %v1303_v32 = vld [vmem:[#allocation3 + $0x11c] sm:$0x1]  ;;  %v3391_v23 = vpack.c.b16 %v3302_v34, %v3288_v2  ;;  %v921_v57 = vadd.f32 %v793_v55, %v665_v17  ;;  %v922_v6 = vadd.f32 %v794_v12, %v666_v4  ;;  %v923_v42 = vadd.f32 %v795_v21, %v667_v25  ;;  %v1304_v41 = vld [vmem:[#allocation3 + $0x124] sm:$0x1] }
 0x25e   : > { %v1305_v1 = vld [vmem:[#allocation3 + $0x12c] sm:$0x1]  ;;  %v1306_v5 = vld [vmem:[#allocation3 + $0x134] sm:$0x1]  ;;  %v1307_v62 = vld [vmem:[#allocation3 + $0x13c] sm:$0x1]  ;;  %v927_v60 = vadd.f32 %v799_v0, %v671_v37  ;;  %v928_v30 = vadd.f32 %v800_v47, %v672_v24  ;;  %v929_v58 = vadd.f32 %v801_v18, %v673_v27  ;;  %v930_v36 = vadd.f32 %v802_v63, %v674_v61 }
 0x25f   : > { %v1311_v8 = vld [vmem:[#allocation3 + $0x15c] sm:$0x1]  ;;  %v1312_v50 = vld [vmem:[#allocation3 + $0x164] sm:$0x1]  ;;  %v1313_v16 = vld [vmem:[#allocation3 + $0x16c] sm:$0x1]  ;;  %3619 = vmatprep.mubr.bf16.mxu1 %v3391_v23  ;;  %v931_v13 = vadd.f32 %v803_v38, %v675_v59  ;;  %v1175_v29 = vadd.f32 %v1047_v56, %v919_v28  ;;  %v1176_v10 = vadd.f32 %v1048_v3, %v920_v53  ;;  %v1177_v2 = vadd.f32 %v1049_v51, %v921_v57 }
 0x260   : > { %v1314_v33 = vld [vmem:[#allocation3 + $0x174] sm:$0x1]  ;;  %v1315_v55 = vld [vmem:[#allocation3 + $0x17c] sm:$0x1]  ;;  %v1559_v12 = vld [vmem:[#allocation3 + $0x11d] sm:$0x1]  ;;  %3620 = vmatmul.mubr.bf16.vlgmr.msra.gmra.mrb[0].mxu1 %v2760_v31  ;;  %v1178_v4 = vadd.f32 %v1050_v52, %v922_v6  ;;  %v1179_v0 = vadd.f32 %v1051_v45, %v923_v42  ;;  %v1183_v47 = vadd.f32 %v1055_v35, %v927_v60  ;;  %v1184_v18 = vadd.f32 %v1056_v43, %v928_v30 }
 0x261   : > { %v1560_v21 = vld [vmem:[#allocation3 + $0x125] sm:$0x1]  ;;  %v1561_v17 = vld [vmem:[#allocation3 + $0x12d] sm:$0x1]  ;;  %v1562_v63 = vld [vmem:[#allocation3 + $0x135] sm:$0x1]  ;;  %v1185_v26 = vadd.f32 %v1057_v22, %v929_v58  ;;  %v1186_v38 = vadd.f32 %v1058_v11, %v930_v36  ;;  %v1187_v56 = vadd.f32 %v1059_v20, %v931_v13  ;;  %v1431_v3 = vadd.f32 %v1303_v32, %v1175_v29 }
 0x262   : > { %v1563_v25 = vld [vmem:[#allocation3 + $0x13d] sm:$0x1]  ;;  %v1568_v51 = vld [vmem:[#allocation3 + $0x165] sm:$0x1]  ;;  %v1569_v24 = vld [vmem:[#allocation3 + $0x16d] sm:$0x1]  ;;  %v1432_v61 = vadd.f32 %v1304_v41, %v1176_v10  ;;  %v1433_v34 = vadd.f32 %v1305_v1, %v1177_v2  ;;  %v1434_v59 = vadd.f32 %v1306_v5, %v1178_v4  ;;  %v1435_v28 = vadd.f32 %v1307_v62, %v1179_v0 }
 0x263   : > { %v1567_v37 = vld [vmem:[#allocation3 + $0x15d] sm:$0x1]  ;;  %v1570_v27 = vld [vmem:[#allocation3 + $0x175] sm:$0x1]  ;;  %v1815_v54 = vld [vmem:[#allocation3 + $0x11e] sm:$0x1]  ;;  %v1439_v52 = vadd.f32 %v1311_v8, %v1183_v47  ;;  %v1440_v45 = vadd.f32 %v1312_v50, %v1184_v18  ;;  %v1441_v35 = vadd.f32 %v1313_v16, %v1185_v26  ;;  %v1442_v43 = vadd.f32 %v1314_v33, %v1186_v38 }
 0x264   : > { %v1571_v46 = vld [vmem:[#allocation3 + $0x17d] sm:$0x1]  ;;  %v1816_v31 = vld [vmem:[#allocation3 + $0x126] sm:$0x1]  ;;  %v1817_v53 = vld [vmem:[#allocation3 + $0x12e] sm:$0x1]  ;;  %v1443_v11 = vadd.f32 %v1315_v55, %v1187_v56  ;;  %v1687_v20 = vadd.f32 %v1559_v12, %v1431_v3  ;;  %v1688_v32 = vadd.f32 %v1560_v21, %v1432_v61  ;;  %v1689_v57 = vadd.f32 %v1561_v17, %v1433_v34 }
 0x265   : > { %v1818_v23 = vld [vmem:[#allocation3 + $0x136] sm:$0x1]  ;;  %v1819_v22 = vld [vmem:[#allocation3 + $0x13e] sm:$0x1]  ;;  %v1824_v42 = vld [vmem:[#allocation3 + $0x166] sm:$0x1]  ;;  %v1690_v1 = vadd.f32 %v1562_v63, %v1434_v59  ;;  %v1691_v5 = vadd.f32 %v1563_v25, %v1435_v28  ;;  %v1695_v62 = vadd.f32 %v1567_v37, %v1439_v52  ;;  %v1696_v60 = vadd.f32 %v1568_v51, %v1440_v45 }
 0x266   : > { %v1823_v6 = vld [vmem:[#allocation3 + $0x15e] sm:$0x1]  ;;  %v1825_v41 = vld [vmem:[#allocation3 + $0x16e] sm:$0x1]  ;;  %v1826_v30 = vld [vmem:[#allocation3 + $0x176] sm:$0x1]  ;;  %v1697_v8 = vadd.f32 %v1569_v24, %v1441_v35  ;;  %v1698_v50 = vadd.f32 %v1570_v27, %v1442_v43  ;;  %v1699_v16 = vadd.f32 %v1571_v46, %v1443_v11  ;;  %v1943_v33 = vadd.f32 %v1815_v54, %v1687_v20 }
 0x267   : > { %v1827_v58 = vld [vmem:[#allocation3 + $0x17e] sm:$0x1]  ;;  %v2071_v36 = vld [vmem:[#allocation3 + $0x11f] sm:$0x1]  ;;  %v2072_v13 = vld [vmem:[#allocation3 + $0x127] sm:$0x1]  ;;  %v1944_v2 = vadd.f32 %v1816_v31, %v1688_v32  ;;  %v1945_v55 = vadd.f32 %v1817_v53, %v1689_v57  ;;  %v1946_v12 = vadd.f32 %v1818_v23, %v1690_v1  ;;  %v1947_v21 = vadd.f32 %v1819_v22, %v1691_v5 }
 0x268   : > { %v2073_v29 = vld [vmem:[#allocation3 + $0x12f] sm:$0x1]  ;;  %v2074_v10 = vld [vmem:[#allocation3 + $0x137] sm:$0x1]  ;;  %v2075_v17 = vld [vmem:[#allocation3 + $0x13f] sm:$0x1]  ;;  %v1951_v47 = vadd.f32 %v1823_v6, %v1695_v62  ;;  %v1952_v18 = vadd.f32 %v1824_v42, %v1696_v60  ;;  %v1953_v63 = vadd.f32 %v1825_v41, %v1697_v8  ;;  %v1954_v25 = vadd.f32 %v1826_v30, %v1698_v50 }
 0x269   : > { %v2079_v4 = vld [vmem:[#allocation3 + $0x15f] sm:$0x1]  ;;  %v2080_v0 = vld [vmem:[#allocation3 + $0x167] sm:$0x1]  ;;  %v2081_v37 = vld [vmem:[#allocation3 + $0x16f] sm:$0x1]  ;;  %v1955_v56 = vadd.f32 %v1827_v58, %v1699_v16  ;;  %v2199_v3 = vadd.f32 %v2071_v36, %v1943_v33  ;;  %v2200_v51 = vadd.f32 %v2072_v13, %v1944_v2  ;;  %v2201_v24 = vadd.f32 %v2073_v29, %v1945_v55 }
 0x26a   : > { %v2082_v26 = vld [vmem:[#allocation3 + $0x177] sm:$0x1]  ;;  %v2083_v38 = vld [vmem:[#allocation3 + $0x17f] sm:$0x1]  ;;  %v2202_v27 = vadd.f32 %v2074_v10, %v1946_v12  ;;  %v2203_v61 = vadd.f32 %v2075_v17, %v1947_v21  ;;  %v2207_v34 = vadd.f32 %v2079_v4, %v1951_v47  ;;  %v2208_v59 = vadd.f32 %v2080_v0, %v1952_v18  ;;  %v5888_v2 = vld [vmem:[#allocation45_spill] sm:$0xff] }
 0x26b   : > { %v2209_v28 = vadd.f32 %v2081_v37, %v1953_v63  ;;  %v2210_v46 = vadd.f32 %v2082_v26, %v1954_v25  ;;  %v2211_v54 = vadd.f32 %v2083_v38, %v1955_v56  ;;  %v5883_v31 = vld [vmem:[#allocation64_spill] sm:$0xff]  ;;  %v5884_v53 = vld [vmem:[#allocation63_spill] sm:$0xff]  ;;  %v2814_v55 = vpack.c.bf16 %v5888_v2, %v5888_v2  ;;  %v594_v2 = vld [vmem:[#allocation3 + $0x2f1] sm:$0x1] }
 0x26c   : > { %v2403_v52 = vrot.slane %v5883_v31, 4  ;;  %v2404_v45 = vrot.slane %v5883_v31, 5  ;;  %v2405_v35 = vrot.slane %v5883_v31, 6  ;;  %v2406_v43 = vrot.slane %v5883_v31, 7  ;;  %v5887_v8 = vld [vmem:[#allocation48_spill] sm:$0xff] }
 0x26d   : > { %v2410_v23 = vrot.slane %v5884_v53, 4  ;;  %v2411_v22 = vrot.slane %v5884_v53, 5  ;;  %v2412_v11 = vrot.slane %v5884_v53, 6  ;;  %v2413_v20 = vrot.slane %v5884_v53, 7 }
 0x26e   : > { %v5885_v32 = vrot.slane %v5883_v31, 3  ;;  %v2648_v6 = vmul.f32 %v2403_v52, %v2200_v51  ;;  %v2649_v42 = vmul.f32 %v2404_v45, %v2201_v24  ;;  %v2650_v41 = vmul.f32 %v2405_v35, %v2202_v27  ;;  %v455_v27 = vld [vmem:[#allocation3 + $0x298] sm:$0x1]  ;;  %v456_v31 = vld [vmem:[#allocation3 + $0x2a0] sm:$0x1] }
 0x26f   : > { %v2651_v1 = vmul.f32 %v2406_v43, %v2203_v61  ;;  %v5886_v5 = vrot.slane %v5884_v53, 3  ;;  %v2656_v60 = vmul.f32 %v2410_v23, %v2208_v59  ;;  %v2657_v30 = vmul.f32 %v2411_v22, %v2209_v28  ;;  %v583_v61 = vld [vmem:[#allocation3 + $0x299] sm:$0x1]  ;;  %v5889_v59 = vld [vmem:[#allocation66_spill] sm:$0xff]  ;;  %v457_v52 = vld [vmem:[#allocation3 + $0x2a8] sm:$0x1] }
 0x270   : > { %v2647_v57 = vmul.f32 %v5885_v32, %v2199_v3  ;;  %v2658_v58 = vmul.f32 %v2412_v11, %v2210_v46  ;;  %v2659_v36 = vmul.f32 %v2413_v20, %v2211_v54  ;;  %v2806_v50 = vpack.c.bf16 %v5887_v8, %v5887_v8  ;;  %v584_v45 = vld [vmem:[#allocation3 + $0x2a1] sm:$0x1]  ;;  %v585_v35 = vld [vmem:[#allocation3 + $0x2a9] sm:$0x1]  ;;  %v458_v11 = vld [vmem:[#allocation3 + $0x2b0] sm:$0x1] }
 0x271   : > { %v2655_v62 = vmul.f32 %v5886_v5, %v2207_v34  ;;  %v2808_v33 = vpack.c.bf16 %v2648_v6, %v2648_v6  ;;  %v2809_v13 = vpack.c.bf16 %v2649_v42, %v2649_v42  ;;  %v2810_v29 = vpack.c.bf16 %v2650_v41, %v2650_v41  ;;  %v459_v20 = vld [vmem:[#allocation3 + $0x2b8] sm:$0x1]  ;;  %v586_v32 = vld [vmem:[#allocation3 + $0x2b1] sm:$0x1]  ;;  %v5890_v6 = vld [vmem:[#allocation65_spill] sm:$0xff] }
 0x272   : > { %v2807_v16 = vpack.c.bf16 %v2647_v57, %v2647_v57  ;;  %v2811_v10 = vpack.c.bf16 %v2651_v1, %v2651_v1  ;;  %v2816_v21 = vpack.c.bf16 %v2656_v60, %v2656_v60  ;;  %v2817_v17 = vpack.c.bf16 %v2657_v30, %v2657_v30  ;;  %v587_v57 = vld [vmem:[#allocation3 + $0x2b9] sm:$0x1]  ;;  %v463_v60 = vld [vmem:[#allocation3 + $0x2d8] sm:$0x1]  ;;  %v464_v30 = vld [vmem:[#allocation3 + $0x2e0] sm:$0x1] }
 0x273   : > { %v2815_v12 = vpack.c.bf16 %v2655_v62, %v2655_v62  ;;  %v2818_v4 = vpack.c.bf16 %v2658_v58, %v2658_v58  ;;  %v2819_v0 = vpack.c.bf16 %v2659_v36, %v2659_v36  ;;  %v3062_v47 = vunpack.c.l.b16 %v2806_v50  ;;  %v5891_v41 = vld [vmem:[#allocation51_spill] sm:$0xff]  ;;  %v592_v36 = vld [vmem:[#allocation3 + $0x2e1] sm:$0x1] }
 0x274   : > { %v3063_v18 = vunpack.c.l.b16 %v2807_v16  ;;  %v3064_v63 = vunpack.c.l.b16 %v2808_v33  ;;  %v3065_v25 = vunpack.c.l.b16 %v2809_v13  ;;  %v5400_v37 = vunpack.c.l.b16 %v2810_v29  ;;  %v591_v58 = vld [vmem:[#allocation3 + $0x2d9] sm:$0x1]  ;;  %v465_v13 = vld [vmem:[#allocation3 + $0x2e8] sm:$0x1]  ;;  %v466_v29 = vld [vmem:[#allocation3 + $0x2f0] sm:$0x1] }
 0x275   : > { %v5402_v26 = vunpack.c.l.b16 %v2811_v10  ;;  %v3070_v38 = vunpack.c.l.b16 %v2814_v55  ;;  %v3071_v56 = vunpack.c.l.b16 %v2815_v12  ;;  %v3072_v3 = vunpack.c.l.b16 %v2816_v21  ;;  %v593_v10 = vld [vmem:[#allocation3 + $0x2e9] sm:$0x1] }
 0x276   : > { %v5404_v51 = vunpack.c.l.b16 %v2817_v17  ;;  %v5406_v24 = vunpack.c.l.b16 %v2818_v4  ;;  %v5408_v34 = vunpack.c.l.b16 %v2819_v0  ;;  %v3219_v28 = vrot.slane %v5889_v59, 7  ;;  %v5892_v12 = vld [vmem:[#allocation49_spill] sm:$0xff]  ;;  %v467_v4 = vld [vmem:[#allocation3 + $0x2f8] sm:$0x1]  ;;  %v595_v0 = vld [vmem:[#allocation3 + $0x2f9] sm:$0x1] }
 0x277   : > { %v3221_v46 = vrot.slane %v3062_v47, 6  ;;  %v3223_v54 = vrot.slane %v3063_v18, 5  ;;  %v3225_v43 = vrot.slane %v3064_v63, 4  ;;  %v3227_v53 = vrot.slane %v3065_v25, 3  ;;  %v839_v18 = vld [vmem:[#allocation3 + $0x29a] sm:$0x1] }
 0x278   : > { %v3229_v23 = vrot.slane %v5400_v37, 2  ;;  %v3231_v22 = vrot.slane %v5402_v26, 1  ;;  %v3220_v42 = vsel %vm3157_vm0, %v3219_v28, %v5890_v6  ;;  %v3233_v1 = vrot.slane %v5891_v41, 7  ;;  %v840_v63 = vld [vmem:[#allocation3 + $0x2a2] sm:$0x1] }
 0x279   : > { %v3235_v5 = vrot.slane %v3070_v38, 6  ;;  %v3237_v62 = vrot.slane %v3071_v56, 5  ;;  %v3222_v8 = vsel %vm3160_vm1, %v3221_v46, %v3220_v42  ;;  %v3239_v50 = vrot.slane %v3072_v3, 4  ;;  %v841_v56 = vld [vmem:[#allocation3 + $0x2aa] sm:$0x1] }
 0x27a   : > { %v3241_v16 = vrot.slane %v5404_v51, 3  ;;  %v3243_v33 = vrot.slane %v5406_v24, 2  ;;  %v3224_v55 = vsel %vm3163_vm2, %v3223_v54, %v3222_v8  ;;  %v3234_v21 = vsel %vm3157_vm0, %v3233_v1, %v5892_v12  ;;  %v842_v3 = vld [vmem:[#allocation3 + $0x2b2] sm:$0x1]  ;;  %v843_v51 = vld [vmem:[#allocation3 + $0x2ba] sm:$0x1] }
 0x27b   : > { %v3245_v17 = vrot.slane %v5408_v34, 1  ;;  %v711_v47 = vadd.f32 %v583_v61, %v455_v27  ;;  %v3226_v25 = vsel %vm3166_vm3, %v3225_v43, %v3224_v55  ;;  %v3236_v37 = vsel %vm3160_vm1, %v3235_v5, %v3234_v21  ;;  %v847_v46 = vld [vmem:[#allocation3 + $0x2da] sm:$0x1]  ;;  %v848_v54 = vld [vmem:[#allocation3 + $0x2e2] sm:$0x1] }
 0x27c   : > { %v712_v26 = vadd.f32 %v584_v45, %v456_v31  ;;  %v713_v38 = vadd.f32 %v585_v35, %v457_v52  ;;  %v3228_v24 = vsel %vm3169_vm4, %v3227_v53, %v3226_v25  ;;  %v3238_v59 = vsel %vm3163_vm2, %v3237_v62, %v3236_v37  ;;  %v849_v27 = vld [vmem:[#allocation3 + $0x2ea] sm:$0x1]  ;;  %v850_v31 = vld [vmem:[#allocation3 + $0x2f2] sm:$0x1]  ;;  %v851_v52 = vld [vmem:[#allocation3 + $0x2fa] sm:$0x1] }
 0x27d   : > { %v714_v28 = vadd.f32 %v586_v32, %v458_v11  ;;  %v715_v34 = vadd.f32 %v587_v57, %v459_v20  ;;  %v3230_v61 = vsel %vm3172_vm5, %v3229_v23, %v3228_v24  ;;  %v3240_v43 = vsel %vm3166_vm3, %v3239_v50, %v3238_v59  ;;  %v1095_v45 = vld [vmem:[#allocation3 + $0x29b] sm:$0x1]  ;;  %v1096_v35 = vld [vmem:[#allocation3 + $0x2a3] sm:$0x1]  ;;  %v1097_v20 = vld [vmem:[#allocation3 + $0x2ab] sm:$0x1] }
 0x27e   : > { %v719_v6 = vadd.f32 %v591_v58, %v463_v60  ;;  %v720_v42 = vadd.f32 %v592_v36, %v464_v30  ;;  %v3232_v41 = vsel %vm3175_vm6, %v3231_v22, %v3230_v61  ;;  %v3242_v53 = vsel %vm3169_vm4, %v3241_v16, %v3240_v43  ;;  %v1098_v32 = vld [vmem:[#allocation3 + $0x2b3] sm:$0x1]  ;;  %v1099_v57 = vld [vmem:[#allocation3 + $0x2bb] sm:$0x1]  ;;  %v1104_v30 = vld [vmem:[#allocation3 + $0x2e3] sm:$0x1] }
 0x27f   : > { %v721_v1 = vadd.f32 %v593_v10, %v465_v13  ;;  %v722_v11 = vadd.f32 %v594_v2, %v466_v29  ;;  %v1103_v5 = vld [vmem:[#allocation3 + $0x2db] sm:$0x1]  ;;  %v3244_v23 = vsel %vm3172_vm5, %v3243_v33, %v3242_v53  ;;  %v723_v62 = vadd.f32 %v595_v0, %v467_v4  ;;  %v1105_v58 = vld [vmem:[#allocation3 + $0x2eb] sm:$0x1]  ;;  %v1106_v36 = vld [vmem:[#allocation3 + $0x2f3] sm:$0x1] }
 0x280   : > { %v967_v8 = vadd.f32 %v839_v18, %v711_v47  ;;  %v968_v60 = vadd.f32 %v840_v63, %v712_v26  ;;  %v1107_v50 = vld [vmem:[#allocation3 + $0x2fb] sm:$0x1]  ;;  %v3246_v55 = vsel %vm3175_vm6, %v3245_v17, %v3244_v23  ;;  %v969_v22 = vadd.f32 %v841_v56, %v713_v38  ;;  %v1351_v13 = vld [vmem:[#allocation3 + $0x29c] sm:$0x1]  ;;  %v1352_v29 = vld [vmem:[#allocation3 + $0x2a4] sm:$0x1] }
 0x281   : > { %v970_v12 = vadd.f32 %v842_v3, %v714_v28  ;;  %v971_v16 = vadd.f32 %v843_v51, %v715_v34  ;;  %v1353_v10 = vld [vmem:[#allocation3 + $0x2ac] sm:$0x1]  ;;  %v1354_v2 = vld [vmem:[#allocation3 + $0x2b4] sm:$0x1]  ;;  %v3389_v21 = vpack.c.b16 %v3246_v55, %v3232_v41  ;;  %v975_v25 = vadd.f32 %v847_v46, %v719_v6  ;;  %v1355_v4 = vld [vmem:[#allocation3 + $0x2bc] sm:$0x1] }
 0x282   : > { %v976_v37 = vadd.f32 %v848_v54, %v720_v42  ;;  %v977_v33 = vadd.f32 %v849_v27, %v721_v1  ;;  %v1359_v0 = vld [vmem:[#allocation3 + $0x2dc] sm:$0x1]  ;;  %v1360_v47 = vld [vmem:[#allocation3 + $0x2e4] sm:$0x1]  ;;  %v1361_v18 = vld [vmem:[#allocation3 + $0x2ec] sm:$0x1]  ;;  %v978_v63 = vadd.f32 %v850_v31, %v722_v11  ;;  %v979_v26 = vadd.f32 %v851_v52, %v723_v62 }
 0x283   : > { %v1223_v24 = vadd.f32 %v1095_v45, %v967_v8  ;;  %v1224_v59 = vadd.f32 %v1096_v35, %v968_v60  ;;  %v1362_v17 = vld [vmem:[#allocation3 + $0x2f4] sm:$0x1]  ;;  %v1363_v38 = vld [vmem:[#allocation3 + $0x2fc] sm:$0x1]  ;;  %v1607_v56 = vld [vmem:[#allocation3 + $0x29d] sm:$0x1]  ;;  %3603 = vmatprep.mubr.bf16.mxu0 %v3389_v21  ;;  %v1225_v51 = vadd.f32 %v1097_v20, %v969_v22  ;;  %v1226_v28 = vadd.f32 %v1098_v32, %v970_v12 }
 0x284   : > { %v1608_v3 = vld [vmem:[#allocation3 + $0x2a5] sm:$0x1]  ;;  %v1227_v34 = vadd.f32 %v1099_v57, %v971_v16  ;;  %v1231_v61 = vadd.f32 %v1103_v5, %v975_v25  ;;  %v1609_v46 = vld [vmem:[#allocation3 + $0x2ad] sm:$0x1]  ;;  %v1610_v54 = vld [vmem:[#allocation3 + $0x2b5] sm:$0x1]  ;;  %v1232_v6 = vadd.f32 %v1104_v30, %v976_v37  ;;  %v1233_v42 = vadd.f32 %v1105_v58, %v977_v33 }
 0x285   : > { %v1611_v27 = vld [vmem:[#allocation3 + $0x2bd] sm:$0x1]  ;;  %v1234_v41 = vadd.f32 %v1106_v36, %v978_v63  ;;  %v1235_v31 = vadd.f32 %v1107_v50, %v979_v26  ;;  %v1616_v52 = vld [vmem:[#allocation3 + $0x2e5] sm:$0x1]  ;;  %v1617_v45 = vld [vmem:[#allocation3 + $0x2ed] sm:$0x1]  ;;  %v1479_v53 = vadd.f32 %v1351_v13, %v1223_v24  ;;  %v1480_v1 = vadd.f32 %v1352_v29, %v1224_v59 }
 0x286   : > { %v1615_v43 = vld [vmem:[#allocation3 + $0x2dd] sm:$0x1]  ;;  %v1618_v35 = vld [vmem:[#allocation3 + $0x2f5] sm:$0x1]  ;;  %v1481_v11 = vadd.f32 %v1353_v10, %v1225_v51  ;;  %v1482_v23 = vadd.f32 %v1354_v2, %v1226_v28  ;;  %v1863_v20 = vld [vmem:[#allocation3 + $0x29e] sm:$0x1]  ;;  %v1483_v57 = vadd.f32 %v1355_v4, %v1227_v34  ;;  %v1487_v5 = vadd.f32 %v1359_v0, %v1231_v61 }
 0x287   : > { %v1619_v62 = vld [vmem:[#allocation3 + $0x2fd] sm:$0x1]  ;;  %v1864_v32 = vld [vmem:[#allocation3 + $0x2a6] sm:$0x1]  ;;  %v1488_v8 = vadd.f32 %v1360_v47, %v1232_v6  ;;  %v1489_v60 = vadd.f32 %v1361_v18, %v1233_v42  ;;  %v1865_v55 = vld [vmem:[#allocation3 + $0x2ae] sm:$0x1]  ;;  %v1490_v58 = vadd.f32 %v1362_v17, %v1234_v41  ;;  %v1491_v36 = vadd.f32 %v1363_v38, %v1235_v31 }
 0x288   : > { %v1866_v22 = vld [vmem:[#allocation3 + $0x2b6] sm:$0x1]  ;;  %v1867_v30 = vld [vmem:[#allocation3 + $0x2be] sm:$0x1]  ;;  %v1735_v50 = vadd.f32 %v1607_v56, %v1479_v53  ;;  %v1736_v12 = vadd.f32 %v1608_v3, %v1480_v1  ;;  %v1872_v21 = vld [vmem:[#allocation3 + $0x2e6] sm:$0x1]  ;;  %v1737_v29 = vadd.f32 %v1609_v46, %v1481_v11  ;;  %v1738_v10 = vadd.f32 %v1610_v54, %v1482_v23 }
 0x289   : > { %v1871_v16 = vld [vmem:[#allocation3 + $0x2de] sm:$0x1]  ;;  %v1873_v13 = vld [vmem:[#allocation3 + $0x2ee] sm:$0x1]  ;;  %v1739_v2 = vadd.f32 %v1611_v27, %v1483_v57  ;;  %v1743_v25 = vadd.f32 %v1615_v43, %v1487_v5  ;;  %v1874_v37 = vld [vmem:[#allocation3 + $0x2f6] sm:$0x1]  ;;  %v1744_v0 = vadd.f32 %v1616_v52, %v1488_v8  ;;  %v1745_v47 = vadd.f32 %v1617_v45, %v1489_v60 }
 0x28a   : > { %v1875_v33 = vld [vmem:[#allocation3 + $0x2fe] sm:$0x1]  ;;  %v2119_v4 = vld [vmem:[#allocation3 + $0x29f] sm:$0x1]  ;;  %v1746_v18 = vadd.f32 %v1618_v35, %v1490_v58  ;;  %v1747_v63 = vadd.f32 %v1619_v62, %v1491_v36  ;;  %v2120_v26 = vld [vmem:[#allocation3 + $0x2a7] sm:$0x1]  ;;  %v1991_v17 = vadd.f32 %v1863_v20, %v1735_v50  ;;  %v1992_v38 = vadd.f32 %v1864_v32, %v1736_v12 }
 0x28b   : > { %v2121_v24 = vld [vmem:[#allocation3 + $0x2af] sm:$0x1]  ;;  %v2122_v59 = vld [vmem:[#allocation3 + $0x2b7] sm:$0x1]  ;;  %v1993_v56 = vadd.f32 %v1865_v55, %v1737_v29  ;;  %v1994_v3 = vadd.f32 %v1866_v22, %v1738_v10  ;;  %v2123_v51 = vld [vmem:[#allocation3 + $0x2bf] sm:$0x1]  ;;  %v1995_v61 = vadd.f32 %v1867_v30, %v1739_v2  ;;  %v1999_v46 = vadd.f32 %v1871_v16, %v1743_v25 }
 0x28c   : > { %v2127_v28 = vld [vmem:[#allocation3 + $0x2df] sm:$0x1]  ;;  %v2128_v34 = vld [vmem:[#allocation3 + $0x2e7] sm:$0x1]  ;;  %v2000_v54 = vadd.f32 %v1872_v21, %v1744_v0  ;;  %v2001_v27 = vadd.f32 %v1873_v13, %v1745_v47  ;;  %v2129_v43 = vld [vmem:[#allocation3 + $0x2ef] sm:$0x1]  ;;  %v2002_v41 = vadd.f32 %v1874_v37, %v1746_v18  ;;  %v2003_v31 = vadd.f32 %v1875_v33, %v1747_v63 }
 0x28d   : > { %v2130_v6 = vld [vmem:[#allocation3 + $0x2f7] sm:$0x1]  ;;  %v2131_v42 = vld [vmem:[#allocation3 + $0x2ff] sm:$0x1]  ;;  %v2247_v52 = vadd.f32 %v2119_v4, %v1991_v17  ;;  %v2248_v45 = vadd.f32 %v2120_v26, %v1992_v38  ;;  %v2249_v35 = vadd.f32 %v2121_v24, %v1993_v56  ;;  %v2250_v53 = vadd.f32 %v2122_v59, %v1994_v3  ;;  %v5893_v57 = vld [vmem:[#allocation70_spill] sm:$0xff] }
 0x28e   : > { %v2251_v1 = vadd.f32 %v2123_v51, %v1995_v61  ;;  %v2255_v11 = vadd.f32 %v2127_v28, %v1999_v46  ;;  %v2256_v23 = vadd.f32 %v2128_v34, %v2000_v54  ;;  %v2257_v62 = vadd.f32 %v2129_v43, %v2001_v27  ;;  %v5894_v22 = vld [vmem:[#allocation69_spill] sm:$0xff]  ;;  %v5897_v47 = vld [vmem:[#allocation59_spill] sm:$0xff]  ;;  %v5898_v38 = vld [vmem:[#allocation56_spill] sm:$0xff] }
 0x28f   : > { %v2258_v20 = vadd.f32 %v2130_v6, %v2002_v41  ;;  %v2259_v32 = vadd.f32 %v2131_v42, %v2003_v31  ;;  %v2445_v5 = vrot.slane %v5893_v57, 4  ;;  %v2446_v8 = vrot.slane %v5893_v57, 5 }
 0x290   : > { %v2447_v60 = vrot.slane %v5893_v57, 6  ;;  %v2448_v55 = vrot.slane %v5893_v57, 7  ;;  %v2452_v30 = vrot.slane %v5894_v22, 4  ;;  %v2453_v58 = vrot.slane %v5894_v22, 5 }
 0x291   : > { %v2454_v36 = vrot.slane %v5894_v22, 6  ;;  %v2455_v50 = vrot.slane %v5894_v22, 7  ;;  %v5895_v12 = vrot.slane %v5893_v57, 3  ;;  %v2696_v21 = vmul.f32 %v2445_v5, %v2248_v45 }
 0x292   : > { %v2697_v13 = vmul.f32 %v2446_v8, %v2249_v35  ;;  %v2698_v29 = vmul.f32 %v2447_v60, %v2250_v53  ;;  %v2699_v10 = vmul.f32 %v2448_v55, %v2251_v1  ;;  %v5896_v2 = vrot.slane %v5894_v22, 3  ;;  %v5899_v1 = vld [vmem:[#allocation75_spill] sm:$0xff]  ;;  %v424_v22 = vld [vmem:[#allocation3 + $0x1a0] sm:$0x1] }
 0x293   : > { %v2695_v16 = vmul.f32 %v5895_v12, %v2247_v52  ;;  %v2704_v37 = vmul.f32 %v2452_v30, %v2256_v23  ;;  %v2705_v33 = vmul.f32 %v2453_v58, %v2257_v62  ;;  %v2706_v4 = vmul.f32 %v2454_v36, %v2258_v20  ;;  %v2744_v62 = vld [vmem:[#allocation2 + $0x20] sm:$0xff]  ;;  %v2745_v20 = vld [vmem:[#allocation2 + $0x28] sm:$0xff]  ;;  %v423_v55 = vld [vmem:[#allocation3 + $0x198] sm:$0x1] }
 0x294   : > { %v2703_v25 = vmul.f32 %v5896_v2, %v2255_v11  ;;  %v2707_v0 = vmul.f32 %v2455_v50, %v2259_v32  ;;  %v2854_v18 = vpack.c.bf16 %v5897_v47, %v5897_v47  ;;  %v2856_v26 = vpack.c.bf16 %v2696_v21, %v2696_v21  ;;  %v5460_v32 = vld [vmem:[#allocation2 + $0x50] sm:$0xff]  ;;  %v551_v30 = vld [vmem:[#allocation3 + $0x199] sm:$0x1]  ;;  %v552_v58 = vld [vmem:[#allocation3 + $0x1a1] sm:$0x1] }
 0x295   : > { %v2855_v63 = vpack.c.bf16 %v2695_v16, %v2695_v16  ;;  %v2857_v24 = vpack.c.bf16 %v2697_v13, %v2697_v13  ;;  %v2858_v59 = vpack.c.bf16 %v2698_v29, %v2698_v29  ;;  %v2859_v17 = vpack.c.bf16 %v2699_v10, %v2699_v10  ;;  %v5900_v36 = vld [vmem:[#allocation61_spill] sm:$0xff]  ;;  %v5901_v16 = vld [vmem:[#allocation60_spill] sm:$0xff]  ;;  %v426_v2 = vld [vmem:[#allocation3 + $0x1b0] sm:$0x1] }
 0x296   : > { %v2862_v56 = vpack.c.bf16 %v5898_v38, %v5898_v38  ;;  %v2863_v3 = vpack.c.bf16 %v2703_v25, %v2703_v25  ;;  %v2864_v51 = vpack.c.bf16 %v2704_v37, %v2704_v37  ;;  %v2865_v28 = vpack.c.bf16 %v2705_v33, %v2705_v33  ;;  %v5467_v29 = vld [vmem:[#allocation2 + $0x58] sm:$0xff]  ;;  %v425_v10 = vld [vmem:[#allocation3 + $0x1a8] sm:$0x1]  ;;  %v553_v25 = vld [vmem:[#allocation3 + $0x1a9] sm:$0x1] }
 0x297   : > { %v2866_v34 = vpack.c.bf16 %v2706_v4, %v2706_v4  ;;  %v2867_v61 = vpack.c.bf16 %v2707_v0, %v2707_v0  ;;  %v3110_v46 = vunpack.c.l.b16 %v2854_v18  ;;  %v3111_v54 = vunpack.c.l.b16 %v2855_v63  ;;  %v554_v37 = vld [vmem:[#allocation3 + $0x1b1] sm:$0x1]  ;;  %v427_v18 = vld [vmem:[#allocation3 + $0x1b8] sm:$0x1] }
 0x298   : > { %v3112_v27 = vunpack.c.l.b16 %v2856_v26  ;;  %v3113_v43 = vunpack.c.l.b16 %v2857_v24  ;;  %v5449_v6 = vunpack.c.l.b16 %v2858_v59  ;;  %v5451_v42 = vunpack.c.l.b16 %v2859_v17  ;;  %v431_v63 = vld [vmem:[#allocation3 + $0x1d8] sm:$0x1]  ;;  %v555_v26 = vld [vmem:[#allocation3 + $0x1b9] sm:$0x1]  ;;  %v5902_v17 = vld [vmem:[#allocation58_spill] sm:$0xff] }
 0x299   : > { %v3118_v41 = vunpack.c.l.b16 %v2862_v56  ;;  %v3119_v31 = vunpack.c.l.b16 %v2863_v3  ;;  %v3120_v52 = vunpack.c.l.b16 %v2864_v51  ;;  %v5453_v45 = vunpack.c.l.b16 %v2865_v28  ;;  %v559_v24 = vld [vmem:[#allocation3 + $0x1d9] sm:$0x1]  ;;  %v432_v51 = vld [vmem:[#allocation3 + $0x1e0] sm:$0x1]  ;;  %v433_v28 = vld [vmem:[#allocation3 + $0x1e8] sm:$0x1] }
 0x29a   : > { %v5455_v35 = vunpack.c.l.b16 %v2866_v34  ;;  %v5457_v53 = vunpack.c.l.b16 %v2867_v61  ;;  %v3303_v11 = vrot.slane %v5899_v1, 7  ;;  %v3305_v23 = vrot.slane %v3110_v46, 6  ;;  %v434_v34 = vld [vmem:[#allocation3 + $0x1f0] sm:$0x1]  ;;  %v560_v61 = vld [vmem:[#allocation3 + $0x1e1] sm:$0x1] }
 0x29b   : > { %v3307_v57 = vrot.slane %v3111_v54, 5  ;;  %v3309_v5 = vrot.slane %v3112_v27, 4  ;;  %v3311_v8 = vrot.slane %v3113_v43, 3  ;;  %v3313_v60 = vrot.slane %v5449_v6, 2  ;;  %v561_v46 = vld [vmem:[#allocation3 + $0x1e9] sm:$0x1] }
 0x29c   : > { %v3304_v50 = vsel %vm3157_vm0, %v3303_v11, %v5900_v36  ;;  %v3315_v12 = vrot.slane %v5451_v42, 1  ;;  %v3317_v21 = vrot.slane %v5901_v16, 7  ;;  %v3319_v13 = vrot.slane %v3118_v41, 6  ;;  %v562_v54 = vld [vmem:[#allocation3 + $0x1f1] sm:$0x1] }
 0x29d   : > { %v3306_v33 = vsel %vm3160_vm1, %v3305_v23, %v3304_v50  ;;  %v3321_v4 = vrot.slane %v3119_v31, 5  ;;  %v3323_v0 = vrot.slane %v3120_v52, 4  ;;  %v3325_v47 = vrot.slane %v5453_v45, 3  ;;  %v435_v41 = vld [vmem:[#allocation3 + $0x1f8] sm:$0x1] }
 0x29e   : > { %v3308_v59 = vsel %vm3163_vm2, %v3307_v57, %v3306_v33  ;;  %v3318_v38 = vsel %vm3157_vm0, %v3317_v21, %v5902_v17  ;;  %v3327_v56 = vrot.slane %v5455_v35, 2  ;;  %v3329_v3 = vrot.slane %v5457_v53, 1  ;;  %v563_v31 = vld [vmem:[#allocation3 + $0x1f9] sm:$0x1]  ;;  %v807_v52 = vld [vmem:[#allocation3 + $0x19a] sm:$0x1] }
 0x29f   : > { %v3310_v27 = vsel %vm3166_vm3, %v3309_v5, %v3308_v59  ;;  %v3320_v43 = vsel %vm3160_vm1, %v3319_v13, %v3318_v38  ;;  %v2758_v6 = vpack.c.bf16 %v2745_v20, %v2744_v62  ;;  %v2761_v42 = vpack.c.bf16 %v5467_v29, %v5460_v32  ;;  %v808_v45 = vld [vmem:[#allocation3 + $0x1a2] sm:$0x1]  ;;  %v809_v23 = vld [vmem:[#allocation3 + $0x1aa] sm:$0x1]  ;;  %v810_v57 = vld [vmem:[#allocation3 + $0x1b2] sm:$0x1] }
 0x2a0   : > { %v3312_v35 = vsel %vm3169_vm4, %v3311_v8, %v3310_v27  ;;  %v3322_v53 = vsel %vm3163_vm2, %v3321_v4, %v3320_v43  ;;  %v679_v1 = vadd.f32 %v551_v30, %v423_v55  ;;  %v680_v11 = vadd.f32 %v552_v58, %v424_v22  ;;  %v811_v36 = vld [vmem:[#allocation3 + $0x1ba] sm:$0x1]  ;;  %v816_v21 = vld [vmem:[#allocation3 + $0x1e2] sm:$0x1]  ;;  %v817_v13 = vld [vmem:[#allocation3 + $0x1ea] sm:$0x1] }
 0x2a1   : > { %v3314_v5 = vsel %vm3172_vm5, %v3313_v60, %v3312_v35  ;;  %v3324_v62 = vsel %vm3166_vm3, %v3323_v0, %v3322_v53  ;;  %3604 = vmatmul.mubr.bf16.gmra.mrb[8].mxu0 %v2758_v6  ;;  %v681_v20 = vadd.f32 %v553_v25, %v425_v10  ;;  %v682_v50 = vadd.f32 %v554_v37, %v426_v2  ;;  %v815_v16 = vld [vmem:[#allocation3 + $0x1da] sm:$0x1]  ;;  %v818_v33 = vld [vmem:[#allocation3 + $0x1f2] sm:$0x1]  ;;  %v1063_v58 = vld [vmem:[#allocation3 + $0x19b] sm:$0x1] }
 0x2a2   : > { %v3316_v8 = vsel %vm3175_vm6, %v3315_v12, %v3314_v5  ;;  %v3326_v4 = vsel %vm3169_vm4, %v3325_v47, %v3324_v62  ;;  %v683_v55 = vadd.f32 %v555_v26, %v427_v18  ;;  %v687_v22 = vadd.f32 %v559_v24, %v431_v63  ;;  %v819_v30 = vld [vmem:[#allocation3 + $0x1fa] sm:$0x1]  ;;  %v1064_v59 = vld [vmem:[#allocation3 + $0x1a3] sm:$0x1]  ;;  %v1065_v17 = vld [vmem:[#allocation3 + $0x1ab] sm:$0x1] }
 0x2a3   : > { %v3328_v60 = vsel %vm3172_vm5, %v3327_v56, %v3326_v4  ;;  %v688_v0 = vadd.f32 %v560_v61, %v432_v51  ;;  %v689_v38 = vadd.f32 %v561_v46, %v433_v28  ;;  %v690_v10 = vadd.f32 %v562_v54, %v434_v34  ;;  %v1066_v2 = vld [vmem:[#allocation3 + $0x1b3] sm:$0x1]  ;;  %v1067_v25 = vld [vmem:[#allocation3 + $0x1bb] sm:$0x1]  ;;  %v1072_v27 = vld [vmem:[#allocation3 + $0x1e3] sm:$0x1] }
 0x2a4   : > { %v1071_v37 = vld [vmem:[#allocation3 + $0x1db] sm:$0x1]  ;;  %v3330_v43 = vsel %vm3175_vm6, %v3329_v3, %v3328_v60  ;;  %v691_v12 = vadd.f32 %v563_v31, %v435_v41  ;;  %v935_v6 = vadd.f32 %v807_v52, %v679_v1  ;;  %v936_v47 = vadd.f32 %v808_v45, %v680_v11  ;;  %v1073_v18 = vld [vmem:[#allocation3 + $0x1eb] sm:$0x1]  ;;  %v1074_v63 = vld [vmem:[#allocation3 + $0x1f3] sm:$0x1] }
 0x2a5   : > { %v1075_v26 = vld [vmem:[#allocation3 + $0x1fb] sm:$0x1]  ;;  %v1319_v24 = vld [vmem:[#allocation3 + $0x19c] sm:$0x1]  ;;  %v3392_v35 = vpack.c.b16 %v3330_v43, %v3316_v8  ;;  %v937_v53 = vadd.f32 %v809_v23, %v681_v20  ;;  %v938_v5 = vadd.f32 %v810_v57, %v682_v50  ;;  %v939_v56 = vadd.f32 %v811_v36, %v683_v55  ;;  %v1320_v51 = vld [vmem:[#allocation3 + $0x1a4] sm:$0x1] }
 0x2a6   : > { %v1321_v28 = vld [vmem:[#allocation3 + $0x1ac] sm:$0x1]  ;;  %v1322_v34 = vld [vmem:[#allocation3 + $0x1b4] sm:$0x1]  ;;  %v1323_v61 = vld [vmem:[#allocation3 + $0x1bc] sm:$0x1]  ;;  %v943_v46 = vadd.f32 %v815_v16, %v687_v22  ;;  %v944_v54 = vadd.f32 %v816_v21, %v688_v0  ;;  %v945_v62 = vadd.f32 %v817_v13, %v689_v38  ;;  %v946_v4 = vadd.f32 %v818_v33, %v690_v10 }
 0x2a7   : > { %v1327_v3 = vld [vmem:[#allocation3 + $0x1dc] sm:$0x1]  ;;  %v1328_v41 = vld [vmem:[#allocation3 + $0x1e4] sm:$0x1]  ;;  %v1329_v31 = vld [vmem:[#allocation3 + $0x1ec] sm:$0x1]  ;;  %3627 = vmatprep.mubr.bf16.mxu1 %v3392_v35  ;;  %v947_v45 = vadd.f32 %v819_v30, %v691_v12  ;;  %v1191_v1 = vadd.f32 %v1063_v58, %v935_v6  ;;  %v1192_v11 = vadd.f32 %v1064_v59, %v936_v47  ;;  %v1193_v8 = vadd.f32 %v1065_v17, %v937_v53 }
 0x2a8   : > { %v1330_v52 = vld [vmem:[#allocation3 + $0x1f4] sm:$0x1]  ;;  %v1331_v23 = vld [vmem:[#allocation3 + $0x1fc] sm:$0x1]  ;;  %v1575_v57 = vld [vmem:[#allocation3 + $0x19d] sm:$0x1]  ;;  %3628 = vmatmul.mubr.bf16.gmra.mrb[4].mxu1 %v2761_v42  ;;  %v1194_v50 = vadd.f32 %v1066_v2, %v938_v5  ;;  %v1195_v16 = vadd.f32 %v1067_v25, %v939_v56  ;;  %v1199_v21 = vadd.f32 %v1071_v37, %v943_v46  ;;  %v1200_v13 = vadd.f32 %v1072_v27, %v944_v54 }
 0x2a9   : > { %v1576_v36 = vld [vmem:[#allocation3 + $0x1a5] sm:$0x1]  ;;  %v1577_v20 = vld [vmem:[#allocation3 + $0x1ad] sm:$0x1]  ;;  %v1578_v33 = vld [vmem:[#allocation3 + $0x1b5] sm:$0x1]  ;;  %v1201_v60 = vadd.f32 %v1073_v18, %v945_v62  ;;  %v1202_v30 = vadd.f32 %v1074_v63, %v946_v4  ;;  %v1203_v58 = vadd.f32 %v1075_v26, %v947_v45  ;;  %v1447_v59 = vadd.f32 %v1319_v24, %v1191_v1 }
 0x2aa   : > { %v1579_v55 = vld [vmem:[#allocation3 + $0x1bd] sm:$0x1]  ;;  %v1584_v17 = vld [vmem:[#allocation3 + $0x1e5] sm:$0x1]  ;;  %v1585_v0 = vld [vmem:[#allocation3 + $0x1ed] sm:$0x1]  ;;  %v1448_v10 = vadd.f32 %v1320_v51, %v1192_v11  ;;  %v1449_v43 = vadd.f32 %v1321_v28, %v1193_v8  ;;  %v1450_v12 = vadd.f32 %v1322_v34, %v1194_v50  ;;  %v1451_v6 = vadd.f32 %v1323_v61, %v1195_v16 }
 0x2ab   : > { %v1583_v22 = vld [vmem:[#allocation3 + $0x1dd] sm:$0x1]  ;;  %v1586_v38 = vld [vmem:[#allocation3 + $0x1f5] sm:$0x1]  ;;  %v1831_v29 = vld [vmem:[#allocation3 + $0x19e] sm:$0x1]  ;;  %v1455_v2 = vadd.f32 %v1327_v3, %v1199_v21  ;;  %v1456_v25 = vadd.f32 %v1328_v41, %v1200_v13  ;;  %v1457_v37 = vadd.f32 %v1329_v31, %v1201_v60  ;;  %v1458_v27 = vadd.f32 %v1330_v52, %v1202_v30 }
 0x2ac   : > { %v1587_v32 = vld [vmem:[#allocation3 + $0x1fd] sm:$0x1]  ;;  %v1832_v42 = vld [vmem:[#allocation3 + $0x1a6] sm:$0x1]  ;;  %v1833_v47 = vld [vmem:[#allocation3 + $0x1ae] sm:$0x1]  ;;  %v1459_v63 = vadd.f32 %v1331_v23, %v1203_v58  ;;  %v1703_v26 = vadd.f32 %v1575_v57, %v1447_v59  ;;  %v1704_v24 = vadd.f32 %v1576_v36, %v1448_v10  ;;  %v1705_v53 = vadd.f32 %v1577_v20, %v1449_v43 }
 0x2ad   : > { %v1834_v35 = vld [vmem:[#allocation3 + $0x1b6] sm:$0x1]  ;;  %v1835_v18 = vld [vmem:[#allocation3 + $0x1be] sm:$0x1]  ;;  %v1840_v56 = vld [vmem:[#allocation3 + $0x1e6] sm:$0x1]  ;;  %v1706_v28 = vadd.f32 %v1578_v33, %v1450_v12  ;;  %v1707_v34 = vadd.f32 %v1579_v55, %v1451_v6  ;;  %v1711_v61 = vadd.f32 %v1583_v22, %v1455_v2  ;;  %v1712_v46 = vadd.f32 %v1584_v17, %v1456_v25 }
 0x2ae   : > { %v1839_v5 = vld [vmem:[#allocation3 + $0x1de] sm:$0x1]  ;;  %v1841_v51 = vld [vmem:[#allocation3 + $0x1ee] sm:$0x1]  ;;  %v1842_v54 = vld [vmem:[#allocation3 + $0x1f6] sm:$0x1]  ;;  %v1713_v3 = vadd.f32 %v1585_v0, %v1457_v37  ;;  %v1714_v41 = vadd.f32 %v1586_v38, %v1458_v27  ;;  %v1715_v31 = vadd.f32 %v1587_v32, %v1459_v63  ;;  %v1959_v52 = vadd.f32 %v1831_v29, %v1703_v26 }
 0x2af   : > { %v1843_v62 = vld [vmem:[#allocation3 + $0x1fe] sm:$0x1]  ;;  %v2087_v4 = vld [vmem:[#allocation3 + $0x19f] sm:$0x1]  ;;  %v2088_v45 = vld [vmem:[#allocation3 + $0x1a7] sm:$0x1]  ;;  %v1960_v8 = vadd.f32 %v1832_v42, %v1704_v24  ;;  %v1961_v23 = vadd.f32 %v1833_v47, %v1705_v53  ;;  %v1962_v57 = vadd.f32 %v1834_v35, %v1706_v28  ;;  %v1963_v36 = vadd.f32 %v1835_v18, %v1707_v34 }
 0x2b0   : > { %v2089_v1 = vld [vmem:[#allocation3 + $0x1af] sm:$0x1]  ;;  %v2090_v11 = vld [vmem:[#allocation3 + $0x1b7] sm:$0x1]  ;;  %v2091_v20 = vld [vmem:[#allocation3 + $0x1bf] sm:$0x1]  ;;  %v1967_v21 = vadd.f32 %v1839_v5, %v1711_v61  ;;  %v1968_v13 = vadd.f32 %v1840_v56, %v1712_v46  ;;  %v1969_v33 = vadd.f32 %v1841_v51, %v1713_v3  ;;  %v1970_v55 = vadd.f32 %v1842_v54, %v1714_v41 }
 0x2b1   : > { %v2095_v50 = vld [vmem:[#allocation3 + $0x1df] sm:$0x1]  ;;  %v2096_v16 = vld [vmem:[#allocation3 + $0x1e7] sm:$0x1]  ;;  %v2097_v22 = vld [vmem:[#allocation3 + $0x1ef] sm:$0x1]  ;;  %v1971_v58 = vadd.f32 %v1843_v62, %v1715_v31  ;;  %v2215_v59 = vadd.f32 %v2087_v4, %v1959_v52  ;;  %v2216_v17 = vadd.f32 %v2088_v45, %v1960_v8  ;;  %v2217_v0 = vadd.f32 %v2089_v1, %v1961_v23 }
 0x2b2   : > { %v2098_v60 = vld [vmem:[#allocation3 + $0x1f7] sm:$0x1]  ;;  %v2099_v30 = vld [vmem:[#allocation3 + $0x1ff] sm:$0x1]  ;;  %v2218_v38 = vadd.f32 %v2090_v11, %v1962_v57  ;;  %v2219_v10 = vadd.f32 %v2091_v20, %v1963_v36  ;;  %v2223_v43 = vadd.f32 %v2095_v50, %v1967_v21  ;;  %v2224_v12 = vadd.f32 %v2096_v16, %v1968_v13  ;;  %v5907_v3 = vld [vmem:[#allocation54_spill] sm:$0xff] }
 0x2b3   : > { %v2225_v6 = vadd.f32 %v2097_v22, %v1969_v33  ;;  %v2226_v32 = vadd.f32 %v2098_v60, %v1970_v55  ;;  %v2227_v29 = vadd.f32 %v2099_v30, %v1971_v58  ;;  %v5903_v42 = vld [vmem:[#allocation68_spill] sm:$0xff]  ;;  %v5904_v47 = vld [vmem:[#allocation67_spill] sm:$0xff]  ;;  %v2822_v41 = vpack.c.bf16 %v5907_v3, %v5907_v3  ;;  %v5908_v8 = vld [vmem:[#allocation53_spill] sm:$0xff] }
 0x2b4   : > { %v2417_v2 = vrot.slane %v5903_v42, 4  ;;  %v2418_v25 = vrot.slane %v5903_v42, 5  ;;  %v2419_v37 = vrot.slane %v5903_v42, 6  ;;  %v2420_v27 = vrot.slane %v5903_v42, 7 }
 0x2b5   : > { %v2424_v35 = vrot.slane %v5904_v47, 4  ;;  %v2425_v18 = vrot.slane %v5904_v47, 5  ;;  %v2426_v63 = vrot.slane %v5904_v47, 6  ;;  %v2427_v26 = vrot.slane %v5904_v47, 7 }
 0x2b6   : > { %v5905_v24 = vrot.slane %v5903_v42, 3  ;;  %v2664_v5 = vmul.f32 %v2417_v2, %v2216_v17  ;;  %v2665_v56 = vmul.f32 %v2418_v25, %v2217_v0  ;;  %v2666_v51 = vmul.f32 %v2419_v37, %v2218_v38  ;;  %v471_v38 = vld [vmem:[#allocation3 + $0x318] sm:$0x1]  ;;  %v472_v42 = vld [vmem:[#allocation3 + $0x320] sm:$0x1] }
 0x2b7   : > { %v2667_v28 = vmul.f32 %v2420_v27, %v2219_v10  ;;  %v5906_v34 = vrot.slane %v5904_v47, 3  ;;  %v2672_v46 = vmul.f32 %v2424_v35, %v2224_v12  ;;  %v2673_v54 = vmul.f32 %v2425_v18, %v2225_v6  ;;  %v599_v10 = vld [vmem:[#allocation3 + $0x319] sm:$0x1]  ;;  %v473_v2 = vld [vmem:[#allocation3 + $0x328] sm:$0x1] }
 0x2b8   : > { %v2663_v53 = vmul.f32 %v5905_v24, %v2215_v59  ;;  %v2674_v62 = vmul.f32 %v2426_v63, %v2226_v32  ;;  %v2675_v4 = vmul.f32 %v2427_v26, %v2227_v29  ;;  %v2824_v52 = vpack.c.bf16 %v2664_v5, %v2664_v5  ;;  %v5909_v12 = vld [vmem:[#allocation55_spill] sm:$0xff]  ;;  %v600_v25 = vld [vmem:[#allocation3 + $0x321] sm:$0x1]  ;;  %v601_v37 = vld [vmem:[#allocation3 + $0x329] sm:$0x1] }
 0x2b9   : > { %v2671_v61 = vmul.f32 %v5906_v34, %v2223_v43  ;;  %v2825_v45 = vpack.c.bf16 %v2665_v56, %v2665_v56  ;;  %v2826_v1 = vpack.c.bf16 %v2666_v51, %v2666_v51  ;;  %v2827_v11 = vpack.c.bf16 %v2667_v28, %v2667_v28  ;;  %v474_v63 = vld [vmem:[#allocation3 + $0x330] sm:$0x1]  ;;  %v475_v26 = vld [vmem:[#allocation3 + $0x338] sm:$0x1]  ;;  %v602_v24 = vld [vmem:[#allocation3 + $0x331] sm:$0x1] }
 0x2ba   : > { %v2823_v31 = vpack.c.bf16 %v2663_v53, %v2663_v53  ;;  %v2830_v23 = vpack.c.bf16 %v5908_v8, %v5908_v8  ;;  %v2832_v36 = vpack.c.bf16 %v2672_v46, %v2672_v46  ;;  %v2833_v20 = vpack.c.bf16 %v2673_v54, %v2673_v54  ;;  %v603_v53 = vld [vmem:[#allocation3 + $0x339] sm:$0x1]  ;;  %v5910_v5 = vld [vmem:[#allocation72_spill] sm:$0xff]  ;;  %v5911_v51 = vld [vmem:[#allocation73_spill] sm:$0xff] }
 0x2bb   : > { %v2831_v57 = vpack.c.bf16 %v2671_v61, %v2671_v61  ;;  %v2834_v50 = vpack.c.bf16 %v2674_v62, %v2674_v62  ;;  %v2835_v16 = vpack.c.bf16 %v2675_v4, %v2675_v4  ;;  %v3078_v21 = vunpack.c.l.b16 %v2822_v41  ;;  %v479_v46 = vld [vmem:[#allocation3 + $0x358] sm:$0x1]  ;;  %v480_v54 = vld [vmem:[#allocation3 + $0x360] sm:$0x1]  ;;  %v607_v62 = vld [vmem:[#allocation3 + $0x359] sm:$0x1] }
 0x2bc   : > { %v3079_v13 = vunpack.c.l.b16 %v2823_v31  ;;  %v3080_v33 = vunpack.c.l.b16 %v2824_v52  ;;  %v3081_v55 = vunpack.c.l.b16 %v2825_v45  ;;  %v5507_v22 = vunpack.c.l.b16 %v2826_v1  ;;  %v608_v4 = vld [vmem:[#allocation3 + $0x361] sm:$0x1]  ;;  %v481_v45 = vld [vmem:[#allocation3 + $0x368] sm:$0x1]  ;;  %v482_v1 = vld [vmem:[#allocation3 + $0x370] sm:$0x1] }
 0x2bd   : > { %v5509_v60 = vunpack.c.l.b16 %v2827_v11  ;;  %v3086_v30 = vunpack.c.l.b16 %v2830_v23  ;;  %v3087_v58 = vunpack.c.l.b16 %v2831_v57  ;;  %v3088_v59 = vunpack.c.l.b16 %v2832_v36  ;;  %v609_v11 = vld [vmem:[#allocation3 + $0x369] sm:$0x1]  ;;  %v610_v8 = vld [vmem:[#allocation3 + $0x371] sm:$0x1]  ;;  %v5912_v57 = vld [vmem:[#allocation71_spill] sm:$0xff] }
 0x2be   : > { %v5511_v17 = vunpack.c.l.b16 %v2833_v20  ;;  %v5513_v0 = vunpack.c.l.b16 %v2834_v50  ;;  %v5515_v43 = vunpack.c.l.b16 %v2835_v16  ;;  %v3247_v6 = vrot.slane %v5909_v12, 7  ;;  %v483_v50 = vld [vmem:[#allocation3 + $0x378] sm:$0x1]  ;;  %v611_v16 = vld [vmem:[#allocation3 + $0x379] sm:$0x1] }
 0x2bf   : > { %v3249_v32 = vrot.slane %v3078_v21, 6  ;;  %v3251_v29 = vrot.slane %v3079_v13, 5  ;;  %v3253_v27 = vrot.slane %v3080_v33, 4  ;;  %v3255_v47 = vrot.slane %v3081_v55, 3  ;;  %v855_v13 = vld [vmem:[#allocation3 + $0x31a] sm:$0x1] }
 0x2c0   : > { %v3257_v35 = vrot.slane %v5507_v22, 2  ;;  %v3259_v18 = vrot.slane %v5509_v60, 1  ;;  %v3248_v56 = vsel %vm3157_vm0, %v3247_v6, %v5910_v5  ;;  %v3261_v28 = vrot.slane %v5911_v51, 7  ;;  %v856_v33 = vld [vmem:[#allocation3 + $0x322] sm:$0x1] }
 0x2c1   : > { %v3263_v34 = vrot.slane %v3086_v30, 6  ;;  %v3265_v61 = vrot.slane %v3087_v58, 5  ;;  %v3250_v3 = vsel %vm3160_vm1, %v3249_v32, %v3248_v56  ;;  %v3267_v41 = vrot.slane %v3088_v59, 4  ;;  %v857_v58 = vld [vmem:[#allocation3 + $0x32a] sm:$0x1] }
 0x2c2   : > { %v3269_v31 = vrot.slane %v5511_v17, 3  ;;  %v3271_v52 = vrot.slane %v5513_v0, 2  ;;  %v3252_v23 = vsel %vm3163_vm2, %v3251_v29, %v3250_v3  ;;  %v3262_v36 = vsel %vm3157_vm0, %v3261_v28, %v5912_v57  ;;  %v858_v59 = vld [vmem:[#allocation3 + $0x332] sm:$0x1]  ;;  %v859_v17 = vld [vmem:[#allocation3 + $0x33a] sm:$0x1] }
 0x2c3   : > { %v3273_v20 = vrot.slane %v5515_v43, 1  ;;  %v727_v21 = vadd.f32 %v599_v10, %v471_v38  ;;  %v3254_v55 = vsel %vm3166_vm3, %v3253_v27, %v3252_v23  ;;  %v3264_v22 = vsel %vm3160_vm1, %v3263_v34, %v3262_v36  ;;  %v863_v32 = vld [vmem:[#allocation3 + $0x35a] sm:$0x1]  ;;  %v864_v29 = vld [vmem:[#allocation3 + $0x362] sm:$0x1]  ;;  %v5539_v23 = vpop.f32.mrb[0].mxu0 }
 0x2c4   : > { %v728_v60 = vadd.f32 %v600_v25, %v472_v42  ;;  %v729_v30 = vadd.f32 %v601_v37, %v473_v2  ;;  %v3256_v0 = vsel %vm3169_vm4, %v3255_v47, %v3254_v55  ;;  %v3266_v12 = vsel %vm3163_vm2, %v3265_v61, %v3264_v22  ;;  %v865_v38 = vld [vmem:[#allocation3 + $0x36a] sm:$0x1]  ;;  %v866_v42 = vld [vmem:[#allocation3 + $0x372] sm:$0x1]  ;;  %v867_v2 = vld [vmem:[#allocation3 + $0x37a] sm:$0x1] }
 0x2c5   : > { %v730_v6 = vadd.f32 %v602_v24, %v474_v63  ;;  %v731_v43 = vadd.f32 %v603_v53, %v475_v26  ;;  %v3258_v10 = vsel %vm3172_vm5, %v3257_v35, %v3256_v0  ;;  %v3268_v27 = vsel %vm3166_vm3, %v3267_v41, %v3266_v12  ;;  %v1111_v25 = vld [vmem:[#allocation3 + $0x31b] sm:$0x1]  ;;  %v1112_v37 = vld [vmem:[#allocation3 + $0x323] sm:$0x1]  ;;  %v1113_v26 = vld [vmem:[#allocation3 + $0x32b] sm:$0x1] }
 0x2c6   : > { %v735_v5 = vadd.f32 %v607_v62, %v479_v46  ;;  %v736_v56 = vadd.f32 %v608_v4, %v480_v54  ;;  %v3260_v51 = vsel %vm3175_vm6, %v3259_v18, %v3258_v10  ;;  %v3270_v47 = vsel %vm3169_vm4, %v3269_v31, %v3268_v27  ;;  %v1114_v24 = vld [vmem:[#allocation3 + $0x333] sm:$0x1]  ;;  %v1115_v53 = vld [vmem:[#allocation3 + $0x33b] sm:$0x1]  ;;  %v1120_v54 = vld [vmem:[#allocation3 + $0x363] sm:$0x1] }
 0x2c7   : > { %v737_v28 = vadd.f32 %v609_v11, %v481_v45  ;;  %v738_v63 = vadd.f32 %v610_v8, %v482_v1  ;;  %v1119_v34 = vld [vmem:[#allocation3 + $0x35b] sm:$0x1]  ;;  %v3272_v35 = vsel %vm3172_vm5, %v3271_v52, %v3270_v47  ;;  %v739_v61 = vadd.f32 %v611_v16, %v483_v50  ;;  %v1121_v62 = vld [vmem:[#allocation3 + $0x36b] sm:$0x1]  ;;  %v1122_v4 = vld [vmem:[#allocation3 + $0x373] sm:$0x1] }
 0x2c8   : > { %v983_v3 = vadd.f32 %v855_v13, %v727_v21  ;;  %v984_v46 = vadd.f32 %v856_v33, %v728_v60  ;;  %v1123_v41 = vld [vmem:[#allocation3 + $0x37b] sm:$0x1]  ;;  %v3274_v18 = vsel %vm3175_vm6, %v3273_v20, %v3272_v35  ;;  %v985_v31 = vadd.f32 %v857_v58, %v729_v30  ;;  %v1367_v11 = vld [vmem:[#allocation3 + $0x31c] sm:$0x1]  ;;  %v1368_v8 = vld [vmem:[#allocation3 + $0x324] sm:$0x1] }
 0x2c9   : > { %v986_v45 = vadd.f32 %v858_v59, %v730_v6  ;;  %v987_v1 = vadd.f32 %v859_v17, %v731_v43  ;;  %v1369_v57 = vld [vmem:[#allocation3 + $0x32c] sm:$0x1]  ;;  %v1370_v36 = vld [vmem:[#allocation3 + $0x334] sm:$0x1]  ;;  %v5542_v55 = vpop.f32.mrb[1].mxu0  ;;  %v3390_v52 = vpack.c.b16 %v3274_v18, %v3260_v51  ;;  %v991_v50 = vadd.f32 %v863_v32, %v735_v5 }
 0x2ca   : > { %v992_v16 = vadd.f32 %v864_v29, %v736_v56  ;;  %v993_v21 = vadd.f32 %v865_v38, %v737_v28  ;;  %v1371_v13 = vld [vmem:[#allocation3 + $0x33c] sm:$0x1]  ;;  %v1376_v22 = vld [vmem:[#allocation3 + $0x364] sm:$0x1]  ;;  %v1377_v60 = vld [vmem:[#allocation3 + $0x36c] sm:$0x1]  ;;  %v994_v20 = vadd.f32 %v866_v42, %v738_v63  ;;  %v995_v30 = vadd.f32 %v867_v2, %v739_v61 }
 0x2cb   : > { %v1375_v33 = vld [vmem:[#allocation3 + $0x35c] sm:$0x1]  ;;  %v5544_v0 = vpop.f32.mrb[2].mxu0  ;;  %v1239_v58 = vadd.f32 %v1111_v25, %v983_v3  ;;  %v1240_v59 = vadd.f32 %v1112_v37, %v984_v46  ;;  %v1378_v17 = vld [vmem:[#allocation3 + $0x374] sm:$0x1]  ;;  %3611 = vmatprep.mubr.bf16.mxu0 %v3390_v52  ;;  %v1241_v32 = vadd.f32 %v1113_v26, %v985_v31  ;;  %v1242_v29 = vadd.f32 %v1114_v24, %v986_v45 }
 0x2cc   : > { %v1379_v12 = vld [vmem:[#allocation3 + $0x37c] sm:$0x1]  ;;  %v1623_v6 = vld [vmem:[#allocation3 + $0x31d] sm:$0x1]  ;;  %v1624_v43 = vld [vmem:[#allocation3 + $0x325] sm:$0x1]  ;;  %v1243_v38 = vadd.f32 %v1115_v53, %v987_v1  ;;  %v1247_v27 = vadd.f32 %v1119_v34, %v991_v50  ;;  %v1248_v28 = vadd.f32 %v1120_v54, %v992_v16  ;;  %v1249_v42 = vadd.f32 %v1121_v62, %v993_v21 }
 0x2cd   : > { %v5546_v10 = vpop.f32.mrb[3].mxu0  ;;  %v1625_v5 = vld [vmem:[#allocation3 + $0x32d] sm:$0x1]  ;;  %v1626_v56 = vld [vmem:[#allocation3 + $0x335] sm:$0x1]  ;;  %v1250_v2 = vadd.f32 %v1122_v4, %v994_v20  ;;  %v1251_v25 = vadd.f32 %v1123_v41, %v995_v30  ;;  %v1495_v61 = vadd.f32 %v1367_v11, %v1239_v58  ;;  %v1496_v3 = vadd.f32 %v1368_v8, %v1240_v59 }
 0x2ce   : > { %v1627_v51 = vld [vmem:[#allocation3 + $0x33d] sm:$0x1]  ;;  %v1632_v37 = vld [vmem:[#allocation3 + $0x365] sm:$0x1]  ;;  %v1633_v63 = vld [vmem:[#allocation3 + $0x36d] sm:$0x1]  ;;  %v1497_v46 = vadd.f32 %v1369_v57, %v1241_v32  ;;  %v1498_v18 = vadd.f32 %v1370_v36, %v1242_v29  ;;  %v1499_v53 = vadd.f32 %v1371_v13, %v1243_v38  ;;  %v1503_v34 = vadd.f32 %v1375_v33, %v1247_v27 }
 0x2cf   : > { %v1631_v47 = vld [vmem:[#allocation3 + $0x35d] sm:$0x1]  ;;  %v1634_v35 = vld [vmem:[#allocation3 + $0x375] sm:$0x1]  ;;  %v1879_v26 = vld [vmem:[#allocation3 + $0x31e] sm:$0x1]  ;;  %v1504_v31 = vadd.f32 %v1376_v22, %v1248_v28  ;;  %v1505_v45 = vadd.f32 %v1377_v60, %v1249_v42  ;;  %v1506_v62 = vadd.f32 %v1378_v17, %v1250_v2  ;;  %v1507_v4 = vadd.f32 %v1379_v12, %v1251_v25 }
 0x2d0   : > { %v1635_v52 = vld [vmem:[#allocation3 + $0x37d] sm:$0x1]  ;;  %v1880_v24 = vld [vmem:[#allocation3 + $0x326] sm:$0x1]  ;;  %v1881_v1 = vld [vmem:[#allocation3 + $0x32e] sm:$0x1]  ;;  %v1751_v41 = vadd.f32 %v1623_v6, %v1495_v61  ;;  %v1752_v16 = vadd.f32 %v1624_v43, %v1496_v3  ;;  %v1753_v8 = vadd.f32 %v1625_v5, %v1497_v46  ;;  %v1754_v57 = vadd.f32 %v1626_v56, %v1498_v18 }
 0x2d1   : > { %v1882_v50 = vld [vmem:[#allocation3 + $0x336] sm:$0x1]  ;;  %v1883_v54 = vld [vmem:[#allocation3 + $0x33e] sm:$0x1]  ;;  %v1888_v20 = vld [vmem:[#allocation3 + $0x366] sm:$0x1]  ;;  %v1755_v36 = vadd.f32 %v1627_v51, %v1499_v53  ;;  %v1759_v30 = vadd.f32 %v1631_v47, %v1503_v34  ;;  %v1760_v33 = vadd.f32 %v1632_v37, %v1504_v31  ;;  %v1761_v22 = vadd.f32 %v1633_v63, %v1505_v45 }
 0x2d2   : > { %v1887_v21 = vld [vmem:[#allocation3 + $0x35e] sm:$0x1]  ;;  %v1889_v11 = vld [vmem:[#allocation3 + $0x36e] sm:$0x1]  ;;  %v1890_v58 = vld [vmem:[#allocation3 + $0x376] sm:$0x1]  ;;  %v1762_v60 = vadd.f32 %v1634_v35, %v1506_v62  ;;  %v1763_v32 = vadd.f32 %v1635_v52, %v1507_v4  ;;  %v2007_v12 = vadd.f32 %v1879_v26, %v1751_v41  ;;  %v2008_v6 = vadd.f32 %v1880_v24, %v1752_v16 }
 0x2d3   : > { %v1891_v59 = vld [vmem:[#allocation3 + $0x37e] sm:$0x1]  ;;  %v2135_v13 = vld [vmem:[#allocation3 + $0x31f] sm:$0x1]  ;;  %v2136_v29 = vld [vmem:[#allocation3 + $0x327] sm:$0x1]  ;;  %v2009_v43 = vadd.f32 %v1881_v1, %v1753_v8  ;;  %v2010_v27 = vadd.f32 %v1882_v50, %v1754_v57  ;;  %v2011_v56 = vadd.f32 %v1883_v54, %v1755_v36  ;;  %v2015_v51 = vadd.f32 %v1887_v21, %v1759_v30 }
 0x2d4   : > { %v2137_v38 = vld [vmem:[#allocation3 + $0x32f] sm:$0x1]  ;;  %v2138_v17 = vld [vmem:[#allocation3 + $0x337] sm:$0x1]  ;;  %v2139_v28 = vld [vmem:[#allocation3 + $0x33f] sm:$0x1]  ;;  %v2016_v47 = vadd.f32 %v1888_v20, %v1760_v33  ;;  %v2017_v2 = vadd.f32 %v1889_v11, %v1761_v22  ;;  %v2018_v63 = vadd.f32 %v1890_v58, %v1762_v60  ;;  %v2019_v35 = vadd.f32 %v1891_v59, %v1763_v32 }
 0x2d5   : > { %v2143_v42 = vld [vmem:[#allocation3 + $0x35f] sm:$0x1]  ;;  %v2144_v5 = vld [vmem:[#allocation3 + $0x367] sm:$0x1]  ;;  %v2145_v25 = vld [vmem:[#allocation3 + $0x36f] sm:$0x1]  ;;  %v2263_v3 = vadd.f32 %v2135_v13, %v2007_v12  ;;  %v2264_v46 = vadd.f32 %v2136_v29, %v2008_v6  ;;  %v2265_v18 = vadd.f32 %v2137_v38, %v2009_v43  ;;  %v2266_v52 = vadd.f32 %v2138_v17, %v2010_v27 }
 0x2d6   : > { %v2146_v61 = vld [vmem:[#allocation3 + $0x377] sm:$0x1]  ;;  %v2147_v37 = vld [vmem:[#allocation3 + $0x37f] sm:$0x1]  ;;  %v2267_v26 = vadd.f32 %v2139_v28, %v2011_v56  ;;  %v2271_v24 = vadd.f32 %v2143_v42, %v2015_v51  ;;  %v2272_v53 = vadd.f32 %v2144_v5, %v2016_v47  ;;  %v2273_v34 = vadd.f32 %v2145_v25, %v2017_v2  ;;  %v5913_v1 = vld [vmem:[#allocation57_spill] sm:$0xff] }
 0x2d7   : > { %v2274_v31 = vadd.f32 %v2146_v61, %v2018_v63  ;;  %v2275_v45 = vadd.f32 %v2147_v37, %v2019_v35  ;;  %v2459_v50 = vrot.slane %v5913_v1, 4  ;;  %v2460_v54 = vrot.slane %v5913_v1, 5  ;;  %v5914_v41 = vld [vmem:[#allocation74_spill] sm:$0xff]  ;;  %v5917_v38 = vld [vmem:[#allocation77_spill] sm:$0xff] }
 0x2d8   : > { %v2461_v62 = vrot.slane %v5913_v1, 6  ;;  %v2462_v4 = vrot.slane %v5913_v1, 7  ;;  %v2466_v16 = vrot.slane %v5914_v41, 4  ;;  %v2467_v21 = vrot.slane %v5914_v41, 5  ;;  %v5918_v42 = vld [vmem:[#allocation62_spill] sm:$0xff] }
 0x2d9   : > { %v2468_v20 = vrot.slane %v5914_v41, 6  ;;  %v2469_v11 = vrot.slane %v5914_v41, 7  ;;  %v5915_v8 = vrot.slane %v5913_v1, 3  ;;  %v2712_v36 = vmul.f32 %v2459_v50, %v2264_v46  ;;  %v2746_v1 = vld [vmem:[#allocation2 + $0x30] sm:$0xff]  ;;  %v2747_v50 = vld [vmem:[#allocation2 + $0x38] sm:$0xff] }
 0x2da   : > { %v2713_v30 = vmul.f32 %v2460_v54, %v2265_v18  ;;  %v2714_v58 = vmul.f32 %v2461_v62, %v2266_v52  ;;  %v2715_v59 = vmul.f32 %v2462_v4, %v2267_v26  ;;  %v5916_v13 = vrot.slane %v5914_v41, 3  ;;  %v5573_v54 = vld [vmem:[#allocation2 + $0x60] sm:$0xff] }
 0x2db   : > { %v2711_v57 = vmul.f32 %v5915_v8, %v2263_v3  ;;  %v2720_v22 = vmul.f32 %v2466_v16, %v2272_v53  ;;  %v2721_v60 = vmul.f32 %v2467_v21, %v2273_v34  ;;  %v2722_v32 = vmul.f32 %v2468_v20, %v2274_v31  ;;  %v489_v21 = vld [vmem:[#allocation3 + $0x3a8] sm:$0x1]  ;;  %v490_v20 = vld [vmem:[#allocation3 + $0x3b0] sm:$0x1]  ;;  %v618_v8 = vld [vmem:[#allocation3 + $0x3b1] sm:$0x1] }
 0x2dc   : > { %v2719_v33 = vmul.f32 %v5916_v13, %v2271_v24  ;;  %v2723_v29 = vmul.f32 %v2469_v11, %v2275_v45  ;;  %v2870_v17 = vpack.c.bf16 %v5917_v38, %v5917_v38  ;;  %v2872_v6 = vpack.c.bf16 %v2712_v36, %v2712_v36  ;;  %v617_v11 = vld [vmem:[#allocation3 + $0x3a9] sm:$0x1] }
 0x2dd   : > { %v2871_v12 = vpack.c.bf16 %v2711_v57, %v2711_v57  ;;  %v2873_v43 = vpack.c.bf16 %v2713_v30, %v2713_v30  ;;  %v2874_v27 = vpack.c.bf16 %v2714_v58, %v2714_v58  ;;  %v2875_v28 = vpack.c.bf16 %v2715_v59, %v2715_v59  ;;  %v5919_v57 = vld [vmem:[#allocation79_spill] sm:$0xff]  ;;  %v5920_v58 = vld [vmem:[#allocation78_spill] sm:$0xff] }
 0x2de   : > { %v2878_v5 = vpack.c.bf16 %v5918_v42, %v5918_v42  ;;  %v2879_v56 = vpack.c.bf16 %v2719_v33, %v2719_v33  ;;  %v2880_v51 = vpack.c.bf16 %v2720_v22, %v2720_v22  ;;  %v2881_v47 = vpack.c.bf16 %v2721_v60, %v2721_v60  ;;  %v5579_v13 = vld [vmem:[#allocation2 + $0x68] sm:$0xff]  ;;  %v491_v33 = vld [vmem:[#allocation3 + $0x3b8] sm:$0x1]  ;;  %v619_v60 = vld [vmem:[#allocation3 + $0x3b9] sm:$0x1] }
 0x2df   : > { %v2882_v2 = vpack.c.bf16 %v2722_v32, %v2722_v32  ;;  %v2883_v25 = vpack.c.bf16 %v2723_v29, %v2723_v29  ;;  %v3126_v61 = vunpack.c.l.b16 %v2870_v17  ;;  %v3127_v37 = vunpack.c.l.b16 %v2871_v12  ;;  %v497_v22 = vld [vmem:[#allocation3 + $0x3e8] sm:$0x1]  ;;  %v625_v32 = vld [vmem:[#allocation3 + $0x3e9] sm:$0x1]  ;;  %v5921_v42 = vld [vmem:[#allocation76_spill] sm:$0xff] }
 0x2e0   : > { %v3128_v63 = vunpack.c.l.b16 %v2872_v6  ;;  %v3129_v35 = vunpack.c.l.b16 %v2873_v43  ;;  %v3130_v3 = vunpack.c.l.b16 %v2874_v27  ;;  %v5564_v46 = vunpack.c.l.b16 %v2875_v28  ;;  %v498_v6 = vld [vmem:[#allocation3 + $0x3f0] sm:$0x1]  ;;  %v499_v43 = vld [vmem:[#allocation3 + $0x3f8] sm:$0x1]  ;;  %v626_v27 = vld [vmem:[#allocation3 + $0x3f1] sm:$0x1] }
 0x2e1   : > { %v3134_v18 = vunpack.c.l.b16 %v2878_v5  ;;  %v3135_v52 = vunpack.c.l.b16 %v2879_v56  ;;  %v3136_v26 = vunpack.c.l.b16 %v2880_v51  ;;  %v5566_v24 = vunpack.c.l.b16 %v2881_v47  ;;  %v627_v47 = vld [vmem:[#allocation3 + $0x3f9] sm:$0x1] }
 0x2e2   : > { %v5568_v53 = vunpack.c.l.b16 %v2882_v2  ;;  %v5570_v34 = vunpack.c.l.b16 %v2883_v25  ;;  %v3331_v31 = vrot.slane %v5256_v40, 7  ;;  %v3333_v45 = vrot.slane %v3126_v61, 6  ;;  %v873_v2 = vld [vmem:[#allocation3 + $0x3aa] sm:$0x1] }
 0x2e3   : > { %v3335_v62 = vrot.slane %v3127_v37, 5  ;;  %v3337_v4 = vrot.slane %v3128_v63, 4  ;;  %v3339_v41 = vrot.slane %v3129_v35, 3  ;;  %v3341_v16 = vrot.slane %v3130_v3, 2  ;;  %v874_v35 = vld [vmem:[#allocation3 + $0x3b2] sm:$0x1] }
 0x2e4   : > { %v3332_v36 = vsel %vm3157_vm0, %v3331_v31, %v5919_v57  ;;  %v3343_v30 = vrot.slane %v5564_v46, 1  ;;  %v3345_v40 = vrot.slane %v5920_v58, 7  ;;  %v3347_v59 = vrot.slane %v3134_v18, 6  ;;  %v875_v3 = vld [vmem:[#allocation3 + $0x3ba] sm:$0x1] }
 0x2e5   : > { %v3334_v29 = vsel %vm3160_vm1, %v3333_v45, %v3332_v36  ;;  %v3349_v38 = vrot.slane %v3135_v52, 5  ;;  %v3351_v17 = vrot.slane %v3136_v26, 4  ;;  %v3353_v12 = vrot.slane %v5566_v24, 3  ;;  %v881_v46 = vld [vmem:[#allocation3 + $0x3ea] sm:$0x1] }
 0x2e6   : > { %v3336_v28 = vsel %vm3163_vm2, %v3335_v62, %v3334_v29  ;;  %v3346_v5 = vsel %vm3157_vm0, %v3345_v40, %v5921_v42  ;;  %v3355_v56 = vrot.slane %v5568_v53, 2  ;;  %v3357_v51 = vrot.slane %v5570_v34, 1  ;;  %v882_v53 = vld [vmem:[#allocation3 + $0x3f2] sm:$0x1]  ;;  %v883_v34 = vld [vmem:[#allocation3 + $0x3fa] sm:$0x1] }
 0x2e7   : > { %v3338_v25 = vsel %vm3166_vm3, %v3337_v4, %v3336_v28  ;;  %v3348_v61 = vsel %vm3160_vm1, %v3347_v59, %v3346_v5  ;;  %v2759_v37 = vpack.c.bf16 %v2747_v50, %v2746_v1  ;;  %v2762_v63 = vpack.c.bf16 %v5579_v13, %v5573_v54  ;;  %v1129_v31 = vld [vmem:[#allocation3 + $0x3ab] sm:$0x1]  ;;  %v1130_v54 = vld [vmem:[#allocation3 + $0x3b3] sm:$0x1]  ;;  %v1131_v4 = vld [vmem:[#allocation3 + $0x3bb] sm:$0x1] }
 0x2e8   : > { %v3340_v18 = vsel %vm3169_vm4, %v3339_v41, %v3338_v25  ;;  %v3350_v52 = vsel %vm3163_vm2, %v3349_v38, %v3348_v61  ;;  %v745_v26 = vadd.f32 %v617_v11, %v489_v21  ;;  %v746_v24 = vadd.f32 %v618_v8, %v490_v20  ;;  %v1137_v57 = vld [vmem:[#allocation3 + $0x3eb] sm:$0x1]  ;;  %v1138_v20 = vld [vmem:[#allocation3 + $0x3f3] sm:$0x1]  ;;  %v1139_v11 = vld [vmem:[#allocation3 + $0x3fb] sm:$0x1] }
 0x2e9   : > { %v3342_v45 = vsel %vm3172_vm5, %v3341_v16, %v3340_v18  ;;  %v3352_v62 = vsel %vm3166_vm3, %v3351_v17, %v3350_v52  ;;  %3612 = vmatmul.mubr.bf16.gmra.mrb[12].mxu0 %v2759_v37  ;;  %v747_v1 = vadd.f32 %v619_v60, %v491_v33  ;;  %v753_v50 = vadd.f32 %v625_v32, %v497_v22  ;;  %v1385_v8 = vld [vmem:[#allocation3 + $0x3ac] sm:$0x1]  ;;  %v1386_v29 = vld [vmem:[#allocation3 + $0x3b4] sm:$0x1]  ;;  %v1387_v33 = vld [vmem:[#allocation3 + $0x3bc] sm:$0x1] }
 0x2ea   : > { %v3344_v36 = vsel %vm3175_vm6, %v3343_v30, %v3342_v45  ;;  %v3354_v41 = vsel %vm3169_vm4, %v3353_v12, %v3352_v62  ;;  %v754_v58 = vadd.f32 %v626_v27, %v498_v6  ;;  %v755_v21 = vadd.f32 %v627_v47, %v499_v43  ;;  %v1393_v22 = vld [vmem:[#allocation3 + $0x3ec] sm:$0x1]  ;;  %v1394_v17 = vld [vmem:[#allocation3 + $0x3f4] sm:$0x1]  ;;  %v1395_v12 = vld [vmem:[#allocation3 + $0x3fc] sm:$0x1] }
 0x2eb   : > { %v3356_v40 = vsel %vm3172_vm5, %v3355_v56, %v3354_v41  ;;  %v1001_v16 = vadd.f32 %v873_v2, %v745_v26  ;;  %v1002_v59 = vadd.f32 %v874_v35, %v746_v24  ;;  %v1003_v13 = vadd.f32 %v875_v3, %v747_v1  ;;  %v1641_v6 = vld [vmem:[#allocation3 + $0x3ad] sm:$0x1]  ;;  %v1642_v5 = vld [vmem:[#allocation3 + $0x3b5] sm:$0x1]  ;;  %v1643_v56 = vld [vmem:[#allocation3 + $0x3bd] sm:$0x1] }
 0x2ec   : > { %v3358_v60 = vsel %vm3175_vm6, %v3357_v51, %v3356_v40  ;;  %v1009_v32 = vadd.f32 %v881_v46, %v753_v50  ;;  %v1010_v38 = vadd.f32 %v882_v53, %v754_v58  ;;  %v1011_v30 = vadd.f32 %v883_v34, %v755_v21  ;;  %v1649_v47 = vld [vmem:[#allocation3 + $0x3ed] sm:$0x1]  ;;  %v1650_v35 = vld [vmem:[#allocation3 + $0x3f5] sm:$0x1]  ;;  %v1651_v3 = vld [vmem:[#allocation3 + $0x3fd] sm:$0x1] }
 0x2ed   : > { %v3393_v43 = vpack.c.b16 %v3358_v60, %v3344_v36  ;;  %v1257_v27 = vadd.f32 %v1129_v31, %v1001_v16  ;;  %v1258_v28 = vadd.f32 %v1130_v54, %v1002_v59  ;;  %v1259_v42 = vadd.f32 %v1131_v4, %v1003_v13  ;;  %v1897_v46 = vld [vmem:[#allocation3 + $0x3ae] sm:$0x1]  ;;  %v1898_v24 = vld [vmem:[#allocation3 + $0x3b6] sm:$0x1]  ;;  %v1899_v53 = vld [vmem:[#allocation3 + $0x3be] sm:$0x1] }
 0x2ee   : > { %v5922_v2 = vpack.c.bf16 %v5310_v15, %v5310_v15  ;;  %v1265_v61 = vadd.f32 %v1137_v57, %v1009_v32  ;;  %v1266_v51 = vadd.f32 %v1138_v20, %v1010_v38  ;;  %v1267_v37 = vadd.f32 %v1139_v11, %v1011_v30  ;;  %v1905_v62 = vld [vmem:[#allocation3 + $0x3ee] sm:$0x1]  ;;  %v1906_v1 = vld [vmem:[#allocation3 + $0x3f6] sm:$0x1]  ;;  %v1907_v36 = vld [vmem:[#allocation3 + $0x3fe] sm:$0x1] }
 0x2ef   : > { %3635 = vmatprep.mubr.bf16.mxu1 %v3393_v43  ;;  %v1513_v18 = vadd.f32 %v1385_v8, %v1257_v27  ;;  %v1514_v52 = vadd.f32 %v1386_v29, %v1258_v28  ;;  %v1515_v26 = vadd.f32 %v1387_v33, %v1259_v42  ;;  %v2475_v34 = vrot.slane %v5298_v14, 6  ;;  %v2153_v41 = vld [vmem:[#allocation3 + $0x3af] sm:$0x1]  ;;  %v2154_v8 = vld [vmem:[#allocation3 + $0x3b7] sm:$0x1] }
 0x2f0   : > { %v5603_v25 = vunpack.c.l.b16 %v5922_v2  ;;  %3636 = vmatmul.mubr.bf16.gmra.mrb[8].mxu1 %v2762_v63  ;;  %v1521_v31 = vadd.f32 %v1393_v22, %v1265_v61  ;;  %v1522_v45 = vadd.f32 %v1394_v17, %v1266_v51  ;;  %v1523_v15 = vadd.f32 %v1395_v12, %v1267_v37  ;;  %v2155_v40 = vld [vmem:[#allocation3 + $0x3bf] sm:$0x1]  ;;  %v2161_v63 = vld [vmem:[#allocation3 + $0x3ef] sm:$0x1]  ;;  %v2162_v33 = vld [vmem:[#allocation3 + $0x3f7] sm:$0x1] }
 0x2f1   : > { %v2476_v50 = vrot.slane %v5298_v14, 7  ;;  %v1769_v54 = vadd.f32 %v1641_v6, %v1513_v18  ;;  %v1770_v4 = vadd.f32 %v1642_v5, %v1514_v52  ;;  %v1771_v57 = vadd.f32 %v1643_v56, %v1515_v26  ;;  %v2163_v22 = vld [vmem:[#allocation3 + $0x3ff] sm:$0x1] }
 0x2f2   : > { %v2482_v58 = vrot.slane %v5280_v44, 6  ;;  %v1777_v21 = vadd.f32 %v1649_v47, %v1521_v31  ;;  %v1778_v20 = vadd.f32 %v1650_v35, %v1522_v45  ;;  %v1779_v11 = vadd.f32 %v1651_v3, %v1523_v15 }
 0x2f3   : > { %v2888_v16 = vpack.c.bf16 %v5312_v48, %v5312_v48  ;;  %v2025_v59 = vadd.f32 %v1897_v46, %v1769_v54  ;;  %v2026_v13 = vadd.f32 %v1898_v24, %v1770_v4  ;;  %v2027_v29 = vadd.f32 %v1899_v53, %v1771_v57 }
 0x2f4   : > { %v2483_v60 = vrot.slane %v5280_v44, 7  ;;  %v2033_v32 = vadd.f32 %v1905_v62, %v1777_v21  ;;  %v2034_v38 = vadd.f32 %v1906_v1, %v1778_v20  ;;  %v2035_v30 = vadd.f32 %v1907_v36, %v1779_v11  ;;  %v5931_v11 = vld [vmem:[#allocation82_spill] sm:$0xff] }
 0x2f5   : > { %v2896_v17 = vpack.c.bf16 %v5290_v7, %v5290_v7  ;;  %v2281_v12 = vadd.f32 %v2153_v41, %v2025_v59  ;;  %v2282_v6 = vadd.f32 %v2154_v8, %v2026_v13  ;;  %v2283_v43 = vadd.f32 %v2155_v40, %v2027_v29  ;;  %v5929_v41 = vld [vmem:[#allocation81_spill] sm:$0xff] }
 0x2f6   : > { %v3144_v27 = vunpack.c.l.b16 %v2888_v16  ;;  %v2289_v28 = vadd.f32 %v2161_v63, %v2033_v32  ;;  %v2290_v42 = vadd.f32 %v2162_v33, %v2034_v38  ;;  %v2291_v48 = vadd.f32 %v2163_v22, %v2035_v30  ;;  %v2754_v30 = vld [vmem:[#allocation2 + $0x70] sm:$0xff] }
 0x2f7   : > { %v5923_v5 = vrot.slane %v5318_v19, 7  ;;  %v5924_v47 = vrot.slane %v5298_v14, 5  ;;  %v2730_v61 = vmul.f32 %v2475_v34, %v2282_v6  ;;  %v2731_v51 = vmul.f32 %v2476_v50, %v2283_v43  ;;  %v5927_v50 = vld [vmem:[#allocation80_spill] sm:$0xff] }
 0x2f8   : > { %v5925_v37 = vrot.slane %v5320_v49, 6  ;;  %v5926_v35 = vrot.slane %v5280_v44, 5  ;;  %v2738_v46 = vmul.f32 %v2482_v58, %v2290_v42  ;;  %v2739_v18 = vmul.f32 %v2483_v60, %v2291_v48 }
 0x2f9   : > { %v3360_v56 = vsel %vm3157_vm0, %v5923_v5, %v5316_v9  ;;  %v2729_v2 = vmul.f32 %v5924_v47, %v2281_v12  ;;  %v3363_v52 = vrot.slane %v5603_v25, 5  ;;  %v2890_v19 = vpack.c.bf16 %v2730_v61, %v2730_v61 }
 0x2fa   : > { %v3362_v7 = vsel %vm3160_vm1, %v5925_v37, %v3360_v56  ;;  %v2737_v3 = vmul.f32 %v5926_v35, %v2289_v28  ;;  %v2891_v24 = vpack.c.bf16 %v2731_v51, %v2731_v51  ;;  %v3365_v9 = vrot.slane %v3144_v27, 4 }
 0x2fb   : > { %v2889_v26 = vpack.c.bf16 %v2729_v2, %v2729_v2  ;;  %v2898_v14 = vpack.c.bf16 %v2738_v46, %v2738_v46  ;;  %v2899_v31 = vpack.c.bf16 %v2739_v18, %v2739_v18  ;;  %v3364_v34 = vsel %vm3163_vm2, %v3363_v52, %v3362_v7 }
 0x2fc   : > { %v2897_v53 = vpack.c.bf16 %v2737_v3, %v2737_v3  ;;  %v3146_v49 = vunpack.c.l.b16 %v2890_v19  ;;  %v3147_v15 = vunpack.c.l.b16 %v2891_v24  ;;  %v3152_v62 = vunpack.c.l.b16 %v2896_v17  ;;  %v2755_v17 = vld [vmem:[#allocation2 + $0x78] sm:$0xff] }
 0x2fd   : > { %v3145_v45 = vunpack.c.l.b16 %v2889_v26  ;;  %v3366_v44 = vsel %vm3166_vm3, %v3365_v9, %v3364_v34  ;;  %v5928_v54 = vrot.slane %v5927_v50, 7  ;;  %v3154_v4 = vunpack.c.l.b16 %v2898_v14 }
 0x2fe   : > { %v3153_v1 = vunpack.c.l.b16 %v2897_v53  ;;  %v3155_v57 = vunpack.c.l.b16 %v2899_v31  ;;  %v5930_v58 = vrot.slane %v5929_v41, 6  ;;  %v3369_v20 = vrot.slane %v3146_v49, 2 }
 0x2ff   : > { %v3374_v25 = vsel %vm3157_vm0, %v5928_v54, %v5294_v39  ;;  %v3367_v36 = vrot.slane %v3145_v45, 3  ;;  %v3377_v8 = vrot.slane %v5931_v11, 5  ;;  %v3371_v63 = vrot.slane %v3147_v15, 1 }
 0x300   : > { %v3376_v21 = vsel %vm3160_vm1, %v5930_v58, %v3374_v25  ;;  %v3379_v16 = vrot.slane %v3152_v62, 4  ;;  %v3988_v59 = vadd.f32 %v5542_v55, %v5539_v23  ;;  %v3381_v29 = vrot.slane %v3153_v1, 3 }
 0x301   : > { %v3368_v40 = vsel %vm3169_vm4, %v3367_v36, %v3366_v44  ;;  %v3378_v13 = vsel %vm3163_vm2, %v3377_v8, %v3376_v21  ;;  %v3991_v33 = vadd.f32 %v5546_v10, %v5544_v0  ;;  %v3383_v32 = vrot.slane %v3154_v4, 2 }
 0x302   : > { %v3370_v39 = vsel %vm3172_vm5, %v3369_v20, %v3368_v40  ;;  %v3380_v60 = vsel %vm3166_vm3, %v3379_v16, %v3378_v13  ;;  %v3385_v38 = vrot.slane %v3155_v57, 1  ;;  %3652 = vst [vmem:[%s4616_s25] sm:$0xff] %v3988_v59  ;;  %v3689_v23 = vmul.f32 %v3988_v59, %v3988_v59 }
 0x303   : > { %v3372_v22 = vsel %vm3175_vm6, %v3371_v63, %v3370_v39  ;;  %v3382_v12 = vsel %vm3169_vm4, %v3381_v29, %v3380_v60  ;;  %3653 = vst [vmem:[%s4616_s25 + $0x8] sm:$0xff] %v3991_v33  ;;  %v3668_v55 = vadd.f32 %v3991_v33, %v3988_v59  ;;  %v3690_v6 = vmul.f32 %v3991_v33, %v3991_v33 }
 0x304   : > { %v3384_v43 = vsel %vm3172_vm5, %v3383_v32, %v3382_v12  ;;  %v2763_v10 = vpack.c.bf16 %v2755_v17, %v2754_v30 }
 0x305   : > { %v3386_v0 = vsel %vm3175_vm6, %v3385_v38, %v3384_v43  ;;  %v3705_v27 = vadd.f32 %v3690_v6, %v3689_v23 }
 0x306   : > { %v3394_v28 = vpack.c.b16 %v3386_v0, %v3372_v22 }
 0x308   : > { %3643 = vmatprep.mubr.bf16.mxu1 %v3394_v28 }
 0x309   : > { %3644 = vmatmul.mubr.bf16.gmra.mrb[12].mxu1 %v2763_v10 }
 0x32c   : > { %v3992_v42 = vpop.f32.mrb[4].mxu0 }
 0x32d   : > { %v3993_v48 = vpop.f32.mrb[5].mxu0 }
 0x32e   : > { %v3994_v5 = vadd.f32 %v3993_v48, %v3992_v42  ;;  %v3995_v56 = vpop.f32.mrb[6].mxu0 }
 0x32f   : > { %v3996_v47 = vpop.f32.mrb[7].mxu0 }
 0x330   : > { %3654 = vst [vmem:[%s4616_s25 + $0x10] sm:$0xff] %v3994_v5  ;;  %v3669_v2 = vadd.f32 %v3994_v5, %v3668_v55  ;;  %v3691_v61 = vmul.f32 %v3994_v5, %v3994_v5  ;;  %v3997_v51 = vadd.f32 %v3996_v47, %v3995_v56 }
 0x332   : > { %v3706_v37 = vadd.f32 %v3705_v27, %v3691_v61  ;;  %3655 = vst [vmem:[%s4616_s25 + $0x18] sm:$0xff] %v3997_v51  ;;  %v3670_v7 = vadd.f32 %v3997_v51, %v3669_v2  ;;  %v3692_v35 = vmul.f32 %v3997_v51, %v3997_v51 }
 0x333   : > { %v4010_v3 = vpop.f32.mrb[0].mxu1 }
 0x334   : > { %v3707_v46 = vadd.f32 %v3706_v37, %v3692_v35  ;;  %v4011_v18 = vpop.f32.mrb[1].mxu1 }
 0x335   : > { %v4012_v52 = vadd.f32 %v4011_v18, %v4010_v3  ;;  %v4013_v26 = vpop.f32.mrb[2].mxu1 }
 0x336   : > { %v4014_v19 = vpop.f32.mrb[3].mxu1 }
 0x337   : > { %3660 = vst [vmem:[%s4616_s25 + $0x40] sm:$0xff] %v4012_v52  ;;  %v4015_v24 = vadd.f32 %v4014_v19, %v4013_v26  ;;  %v3697_v33 = vmul.f32 %v4012_v52, %v4012_v52 }
 0x339   : > { %3661 = vst [vmem:[%s4616_s25 + $0x48] sm:$0xff] %v4015_v24  ;;  %v3698_v17 = vmul.f32 %v4015_v24, %v4015_v24 }
 0x374   : > { %v3998_v9 = vpop.f32.mrb[8].mxu0 }
 0x375   : > { %v3999_v53 = vpop.f32.mrb[9].mxu0 }
 0x376   : > { %v4000_v14 = vadd.f32 %v3999_v53, %v3998_v9  ;;  %v4001_v31 = vpop.f32.mrb[10].mxu0 }
 0x377   : > { %v4002_v34 = vpop.f32.mrb[11].mxu0 }
 0x378   : > { %3656 = vst [vmem:[%s4616_s25 + $0x20] sm:$0xff] %v4000_v14  ;;  %v3671_v45 = vadd.f32 %v4000_v14, %v3670_v7  ;;  %v3693_v49 = vmul.f32 %v4000_v14, %v4000_v14  ;;  %v4003_v15 = vadd.f32 %v4002_v34, %v4001_v31 }
 0x37a   : > { %v3708_v62 = vadd.f32 %v3707_v46, %v3693_v49  ;;  %3657 = vst [vmem:[%s4616_s25 + $0x28] sm:$0xff] %v4003_v15  ;;  %v3672_v1 = vadd.f32 %v4003_v15, %v3671_v45  ;;  %v3694_v44 = vmul.f32 %v4003_v15, %v4003_v15 }
 0x37b   : > { %v4016_v50 = vpop.f32.mrb[4].mxu1 }
 0x37c   : > { %v3709_v54 = vadd.f32 %v3708_v62, %v3694_v44  ;;  %v4017_v25 = vpop.f32.mrb[5].mxu1 }
 0x37d   : > { %v4018_v4 = vadd.f32 %v4017_v25, %v4016_v50  ;;  %v4019_v57 = vpop.f32.mrb[6].mxu1 }
 0x37e   : > { %v4020_v36 = vpop.f32.mrb[7].mxu1 }
 0x37f   : > { %3662 = vst [vmem:[%s4616_s25 + $0x50] sm:$0xff] %v4018_v4  ;;  %v4021_v41 = vadd.f32 %v4020_v36, %v4019_v57  ;;  %v3699_v43 = vmul.f32 %v4018_v4, %v4018_v4 }
 0x381   : > { %3663 = vst [vmem:[%s4616_s25 + $0x58] sm:$0xff] %v4021_v41  ;;  %v3700_v27 = vmul.f32 %v4021_v41, %v4021_v41 }
 0x3bc   : > { %v4004_v58 = vpop.f32.mrb[12].mxu0 }
 0x3bd   : > { %v4005_v21 = vpop.f32.mrb[13].mxu0 }
 0x3be   : > { %v4006_v20 = vadd.f32 %v4005_v21, %v4004_v58  ;;  %v4007_v11 = vpop.f32.mrb[14].mxu0 }
 0x3bf   : > { %v4008_v8 = vpop.f32.mrb[15].mxu0 }
 0x3c0   : > { %3658 = vst [vmem:[%s4616_s25 + $0x30] sm:$0xff] %v4006_v20  ;;  %v3673_v40 = vadd.f32 %v4006_v20, %v3672_v1  ;;  %v3695_v63 = vmul.f32 %v4006_v20, %v4006_v20  ;;  %v4009_v16 = vadd.f32 %v4008_v8, %v4007_v11 }
 0x3c2   : > { %v3710_v59 = vadd.f32 %v3709_v54, %v3695_v63  ;;  %3659 = vst [vmem:[%s4616_s25 + $0x38] sm:$0xff] %v4009_v16  ;;  %v3674_v39 = vadd.f32 %v4009_v16, %v3673_v40  ;;  %v3696_v13 = vmul.f32 %v4009_v16, %v4009_v16 }
 0x3c3   : > { %v4022_v29 = vpop.f32.mrb[8].mxu1 }
 0x3c4   : > { %v3675_v22 = vadd.f32 %v4012_v52, %v3674_v39  ;;  %v3711_v60 = vadd.f32 %v3710_v59, %v3696_v13  ;;  %v4023_v32 = vpop.f32.mrb[9].mxu1 }
 0x3c5   : > { %v4024_v38 = vadd.f32 %v4023_v32, %v4022_v29  ;;  %v4025_v30 = vpop.f32.mrb[10].mxu1 }
 0x3c6   : > { %v3676_v12 = vadd.f32 %v4015_v24, %v3675_v22  ;;  %v3712_v23 = vadd.f32 %v3711_v60, %v3697_v33  ;;  %v4026_v55 = vpop.f32.mrb[11].mxu1 }
 0x3c7   : > { %3664 = vst [vmem:[%s4616_s25 + $0x60] sm:$0xff] %v4024_v38  ;;  %v4027_v6 = vadd.f32 %v4026_v55, %v4025_v30  ;;  %v3701_v5 = vmul.f32 %v4024_v38, %v4024_v38 }
 0x3c8   : > { %v3713_v0 = vadd.f32 %v3712_v23, %v3698_v17  ;;  %v3677_v10 = vadd.f32 %v4018_v4, %v3676_v12 }
 0x3c9   : > { %3665 = vst [vmem:[%s4616_s25 + $0x68] sm:$0xff] %v4027_v6  ;;  %v3702_v61 = vmul.f32 %v4027_v6, %v4027_v6 }
 0x3ca   : > { %v3678_v28 = vadd.f32 %v4021_v41, %v3677_v10  ;;  %v3714_v42 = vadd.f32 %v3713_v0, %v3699_v43 }
 0x3cc   : > { %v3679_v48 = vadd.f32 %v4024_v38, %v3678_v28  ;;  %v3715_v56 = vadd.f32 %v3714_v42, %v3700_v27 }
 0x3ce   : > { %v3716_v47 = vadd.f32 %v3715_v56, %v3701_v5  ;;  %v3680_v2 = vadd.f32 %v4027_v6, %v3679_v48 }
 0x3d0   : > { %v3717_v51 = vadd.f32 %v3716_v47, %v3702_v61 }
 0x3dc   : > { %v4028_v37 = vpop.f32.mrb[12].mxu1 }
 0x3dd   : > { %v4029_v7 = vpop.f32.mrb[13].mxu1 }
 0x3de   : > { %v4030_v35 = vadd.f32 %v4029_v7, %v4028_v37  ;;  %v4031_v3 = vpop.f32.mrb[14].mxu1 }
 0x3df   : > { %v4032_v46 = vpop.f32.mrb[15].mxu1 }
 0x3e0   : > { %3666 = vst [vmem:[%s4616_s25 + $0x70] sm:$0xff] %v4030_v35  ;;  %v3681_v18 = vadd.f32 %v4030_v35, %v3680_v2  ;;  %v3703_v52 = vmul.f32 %v4030_v35, %v4030_v35  ;;  %v4033_v26 = vadd.f32 %v4032_v46, %v4031_v3 }
 0x3e2   : > { %v3718_v19 = vadd.f32 %v3717_v51, %v3703_v52  ;;  %3667 = vst [vmem:[%s4616_s25 + $0x78] sm:$0xff] %v4033_v26  ;;  %v3682_v24 = vadd.f32 %v4033_v26, %v3681_v18  ;;  %v3704_v9 = vmul.f32 %v4033_v26, %v4033_v26 }
 0x3e3   : > { %4394 = shalt.err (!%p4391_p0)
}
 0x3e4   : > { %s4395_s25 = scalar_lea.hbm %s5666_s3, 2048  ;;  %s4399_s16 = scalar_lea.hbm %s5749_s5, 4096 }
 0x3e5   : > { %p4396_p3 = scmp.ne.s32.totalorder %s5666_s3, %s4395_s25  ;;  %p4400_p6 = scmp.lt.u32.totalorder %s5666_s3, %s5749_s5 }
 0x3e6   : > { %p4401_p7 = scmp.lt.u32.totalorder %s4399_s16, %s4395_s25  ;;  %p4403_p2 = scmp.lt.u32.totalorder %s4395_s25, %s5666_s3 }
 0x3e7   : > { %p4397_p4 = pnand %p4396_p3, %p4595_p1 }
 0x3e8   : > { %p4402_p8 = por %p4401_p7, %p4400_p6 }
 0x3e9   : > { %p4398_p5 = pneg %p4397_p4 }
 0x3ea   : > { %p4404_p9 = por %p4403_p2, %p4402_p8 }
 0x3ec   : > { %p4405_p10 = pnand %p4404_p9, %p4398_p5 }
 0x3ee   : > { %4408 = shalt.err (!%p4405_p10)
}
 0x3ef   : > { %s4513_s23 = smov 128   ;;  %s4514_s29 = smov 8   ;;  %v3683_v53 = vrot.slane %v3682_v24, 4  ;;  %v3719_v14 = vadd.f32 %v3718_v19, %v3704_v9  ;;  %vm3726_vm7 = vcmask 1040384  }
 0x3f0   : > { %4050 = dma.vmem_to_hbm [thread:$0]  (%p4595_p1), %s5668_s30, 2048, %s5666_s3, %s3730_s7, %s4513_s23, %s4513_s23, %s4514_s29  }
 0x3f1   : > { %v3684_v31 = vadd.f32 %v3683_v53, %v3682_v24  ;;  %v3720_v34 = vrot.slane %v3719_v14, 4  ;;  %s3965_s10 = sshll.u32 %s4578_s9, 5  ;;  %s3764_s1 = sshll.u32 %s4618_s26, 4  ;;  %s5703_s1 = int_to_ptr.vmem [resolvable:$true] %s3764_s1 }
 0x3f2   : > { %s5932_s6 = sld [smem:[#allocation84_spill]]  ;;  %s3735_s0 = scalar_lea.sflag [#allocation12], %s4606_s17 }
 0x3f3   : > { %v3685_v45 = vrot.slane %v3684_v31, 2  ;;  %v3721_v49 = vadd.f32 %v3720_v34, %v3719_v14  ;;  %s4409_s30 = scalar_lea.vmem %s5703_s1, 32  ;;  %s4515_s9 = smov [#allocation11]  }
 0x3f4   : > { %p4410_p11 = scmp.ne.s32.totalorder %s5703_s1, %s4409_s30  ;;  %s4413_s21 = sshll.u32 %s4515_s9, 4  ;;  %s4414_s21 = int_to_ptr.vmem [resolvable:$false] %s4413_s21 }
 0x3f5   : > { %v3686_v15 = vadd.f32 %v3685_v45, %v3684_v31  ;;  %v3722_v62 = vrot.slane %v3721_v49, 2  ;;  %s4415_s28 = scalar_lea.vmem %s4414_s21, 64  ;;  %p4416_p0 = scmp.lt.s32.totalorder %s5703_s1, %s4414_s21 }
 0x3f6   : > { %p4411_p12 = pnand %p4410_p11, %p4595_p1  ;;  %p4417_p3 = scmp.lt.s32.totalorder %s4415_s28, %s4409_s30 }
 0x3f7   : > { %v3687_v1 = vrot.slane %v3686_v15, 1  ;;  %v3723_v44 = vadd.f32 %v3722_v62, %v3721_v49 }
 0x3f8   : > { %s5701_s12 = scalar_lea.hbm %s5932_s6, %s3965_s10  ;;  %p4412_p13 = pneg %p4411_p12 }
 0x3f9   : > { %v3724_v50 = vrot.slane %v3723_v44, 1  ;;  %v3688_v54 = vadd.f32 %v3687_v1, %v3686_v15  ;;  %p4418_p4 = por %p4417_p3, %p4416_p0 }
 0x3fb   : > { %v3725_v25 = vadd.f32 %v3724_v50, %v3723_v44  ;;  %p4419_p5 = pnand %p4418_p4, %p4412_p13 }
 0x3fd   : > { %v3727_v4 = vsel %vm3726_vm7, %v3688_v54, %v3725_v25 }
 0x3fe   : > { %3728 = vst [vmem:[%s4618_s26] sm:$0x3] %v3727_v4 }
 0x3ff   : > { %4422 = shalt.err (!%p4419_p5)
}
 0x400   : > { %s4423_s17 = scalar_lea.hbm %s5701_s12, 32  ;;  %s4427_s7 = scalar_lea.hbm %s5932_s6, 64 }
 0x401   : > { %p4424_p6 = scmp.ne.s32.totalorder %s5701_s12, %s4423_s17  ;;  %p4428_p2 = scmp.lt.u32.totalorder %s5701_s12, %s5932_s6 }
 0x402   : > { %p4429_p9 = scmp.lt.u32.totalorder %s4427_s7, %s4423_s17  ;;  %p4431_p11 = scmp.lt.u32.totalorder %s4423_s17, %s5701_s12 }
 0x403   : > { %p4425_p7 = pnand %p4424_p6, %p4595_p1 }
 0x404   : > { %p4430_p10 = por %p4429_p9, %p4428_p2 }
 0x405   : > { %p4426_p8 = pneg %p4425_p7 }
 0x406   : > { %p4432_p12 = por %p4431_p11, %p4430_p10 }
 0x408   : > { %p4433_p13 = pnand %p4432_p12, %p4426_p8 }
 0x40a   : > { %4436 = shalt.err (!%p4433_p13)
}
 0x40b   : > { %4051 = dma.vmem_to_hbm [thread:$0]  (%p4595_p1), %s5703_s1, 32, %s5701_s12, %s3735_s0  }
 0x40c PF: > { %s5933_s14 = sld [smem:[#allocation41_spill]]  ;;  %s5934_s13 = sld [smem:[#allocation38_spill]] }
 0x40d   : > { %s5935_s25 = sld [smem:[#allocation44_spill]] }
 0x412   : > { %p4061_p0 = scmp.ge.s32.totalorder %s5933_s14, 2  ;;  %s3776_s18 = sand.u32 1, %s5934_s13  }
 0x413   : > { %p5936_p3 = scmp.ne.s32.totalorder %s5935_s25, 0  ;;  %s3777_s8 = scalar_lea.sflag [#allocation10], %s3776_s18 }
 0x415   : > { %p4055_p4 = pnand %p4061_p0, %p5936_p3 }
 0x417   : > { %4472 = dma.done.wait (!%p4055_p4), %s3777_s8, 2048  }
 0x418   : > { %4474 = vsyncadd (!%p4055_p4), %s3777_s8, 4294965248  ;;  %s3786_s16 = scalar_lea.sflag [#allocation12], %s3776_s18 }
 0x419   : > { %4476 = dma.done.wait (!%p4055_p4), %s3786_s16, 32  }
 0x41a   : > { %4478 = vsyncadd (!%p4055_p4), %s3786_s16, 4294967264  ;;  %s5937_s8 = sld [smem:[#allocation42_spill]]  ;;  %s5938_s1 = sld [smem:[#allocation39_spill]] }
 0x41b   : > { %s5939_s30 = sld [smem:[#allocation40_spill]]  ;;  %s5940_s7 = sld [smem:[#allocation43_spill]] }
 0x420   : > { %p30_p1 = scmp.ge.s32.totalorder %s5937_s8, 4  }
 0x422   :  { %32 = sbr.rel (!%p30_p1) target bundleno = 31 (0x1f), region = 188 }
 0x429   :  { %3791 = vsyncpa [#allocation10], 1 }
 0x42a   :  { %3793 = vsyncpa [#allocation10 + $0x1], 1 }
 0x42b   :  { %3794 = vsyncpa [#allocation12], 1 }
 0x42c   :  { %3796 = vsyncpa [#allocation12 + $0x1], 1 }
 0x42d   :  { %3797 = vsyncmov [#allocation5] }
 0x430   :  { %s3798_s15 = vpop.sfrf %3797 }
 0x431   :  { %p3968_p5 = scmp.ne.s32.totalorder %s3798_s15, 0 }
 0x433   :  { %3802 = shalt.err (%p3968_p5)  }

</bundles_post_ra>
